<compile_context>
chip_gen: v7x
topology: tpu7x:2x2x1
jax: 0.10.0
libtpu: 0.0.40
codegen_flags: <defaults>
</compile_context>

<pallas_src>
import jax
import jax.numpy as jnp
from jax.experimental import pallas as pl
from jax.experimental.pallas import tpu as pltpu

# ---------------- tiny synthetic "BERT" config ----------------
VOCAB_SIZE = 100
MAX_POS = 16
HIDDEN = 128
NUM_HEADS = 4
HEAD_DIM = HIDDEN // NUM_HEADS
INTERMEDIATE = 256
NUM_LAYERS = 2
NUM_CLASSES = 8
CLS_PAD = 128            # classifier output padded to a full lane register
DROPOUT_RATE = 0.1       # eval mode -> identity
LN_EPS = 1e-12
ATT_SCALE = 1.0 / (HEAD_DIM ** 0.5)


# ---------------- in-kernel helpers (f32 math, bf16 MXU inputs) ----------------
def _ln(x, gamma, beta):
    mean = jnp.mean(x, axis=-1, keepdims=True)
    var = jnp.mean((x - mean) ** 2, axis=-1, keepdims=True)
    return (x - mean) * jax.lax.rsqrt(var + LN_EPS) * gamma + beta


def _mm(a_f32, w_bf16, bias_f32):
    """bf16 MXU matmul with f32 accumulation + f32 bias add."""
    return jnp.dot(a_f32.astype(jnp.bfloat16), w_bf16,
                   preferred_element_type=jnp.float32) + bias_f32


# ---------------- the single fused kernel ----------------
def _model_kernel(x_ref, bias_ref, eg_ref, eb_ref,
                  wqkv_ref, bqkv_ref, wo_ref, bo_ref, ln1g_ref, ln1b_ref,
                  w1_ref, b1_ref, w2_ref, b2_ref, ln2g_ref, ln2b_ref,
                  wp_ref, bp_ref, wc_ref, bc_ref,
                  o_ref, ctx_scr):
    """Whole ProteinClassifier forward for one batch tile.

    x block:    [BT, S, H]   embedding sum (f32)
    bias block: [BT, 1, S]   additive attention bias (precomputed in wrapper)
    weights:    stacked over layers [L, ...], bf16 for MXU, f32 biases / LN params
    output:     [BT, CLS_PAD] tanh logits (padded to 128 lanes for a dense store)
    """
    bt, s, _ = x_ref.shape
    m = bt * s

    # ---- embedding LayerNorm (folded in; rows stacked to M = BT*S) ----
    x = _ln(x_ref[...].reshape(m, HIDDEN).astype(jnp.float32), eg_ref[...], eb_ref[...])
    bias = bias_ref[...].astype(jnp.float32)                 # (bt, 1, s)

    # ---- encoder layers, unrolled (static trip count -> full LLO visibility) ----
    for l in range(NUM_LAYERS):
        # fused Q/K/V projection: one [H, 3H] matmul over all BT*S rows
        qkv = _mm(x, wqkv_ref[l], bqkv_ref[l])               # (m, 3H) f32
        q = qkv[:, 0 * HIDDEN:1 * HIDDEN].reshape(bt, s, HIDDEN)
        k = qkv[:, 1 * HIDDEN:2 * HIDDEN].reshape(bt, s, HIDDEN)
        v = qkv[:, 2 * HIDDEN:3 * HIDDEN].reshape(bt, s, HIDDEN)

        # multi-head attention: heads unrolled, each head batched over the tile,
        # context written directly into a VMEM scratch slice (no concatenate).
        for h in range(NUM_HEADS):
            sl = slice(h * HEAD_DIM, (h + 1) * HEAD_DIM)
            qh = q[:, :, sl].astype(jnp.bfloat16)            # (bt, s, D)
            kh = k[:, :, sl].astype(jnp.bfloat16)
            vh = v[:, :, sl].astype(jnp.bfloat16)
            sc = jnp.einsum('bqd,bkd->bqk', qh, kh,
                            preferred_element_type=jnp.float32)   # (bt, s, s)
            sc = sc * ATT_SCALE + bias
            mx = jnp.max(sc, axis=-1, keepdims=True)
            e = jnp.exp(sc - mx)
            p = e / jnp.sum(e, axis=-1, keepdims=True)       # exact divide (torch parity)
            ctx_scr[:, :, sl] = jnp.einsum('bqk,bkd->bqd',
                                           p.astype(jnp.bfloat16), vh,
                                           preferred_element_type=jnp.float32)

        ctx = ctx_scr[...].reshape(m, HIDDEN)

        # output projection + residual + LayerNorm
        x = _ln(x + _mm(ctx, wo_ref[l], bo_ref[l]), ln1g_ref[l], ln1b_ref[l])

        # feed-forward (GELU) + residual + LayerNorm
        ff = _mm(x, w1_ref[l], b1_ref[l])
        ff = jax.nn.gelu(ff, approximate=True)  # TODO(synk): HF BERT default is erf gelu
        ff = _mm(ff, w2_ref[l], b2_ref[l])
        x = _ln(x + ff, ln2g_ref[l], ln2b_ref[l])

    # ---- head: CLS token -> pooler(tanh) -> Dropout(eval=id) -> classifier -> tanh ----
    cls = x.reshape(bt, s, HIDDEN)[:, 0, :]                  # (bt, H), already in vregs
    pooled = jnp.tanh(_mm(cls, wp_ref[...], bp_ref[...]))    # pooler_output
    logits = jnp.tanh(_mm(pooled, wc_ref[...], bc_ref[...])) # (bt, CLS_PAD)
    o_ref[...] = logits.astype(o_ref.dtype)


# ---------------- pallas_call wrapper ----------------
def _rep_spec(arr):
    n = arr.ndim
    return pl.BlockSpec(arr.shape, lambda b, n=n: (0,) * n)


def _pick_batch_tile(B, S, row_target=128):
    """Largest divisor of B such that BT*S rows stay near one MXU-worth (<=128)."""
    bt = max(1, min(B, max(1, row_target // S)))
    while B % bt:
        bt -= 1
    return bt


def protein_classifier_forward(iparams, input_ids, attention_mask):
    B, S = input_ids.shape
    BT = _pick_batch_tile(B, S)

    # embedding gather + sum: cheap glue in plain JAX
    x_emb = (iparams["word_emb"][input_ids]
             + iparams["pos_emb"][jnp.arange(S)][None, :, :]
             + iparams["type_emb"][0][None, None, :])
    # additive BERT-style attention bias, computed once and reused by every layer
    attn_bias = ((1.0 - attention_mask.astype(jnp.float32)) * -10000.0).reshape(B, 1, S)

    weights = (iparams["emb_ln_g"], iparams["emb_ln_b"],
               iparams["wqkv"], iparams["bqkv"], iparams["wo"], iparams["bo"],
               iparams["ln1_g"], iparams["ln1_b"],
               iparams["w1"], iparams["b1"], iparams["w2"], iparams["b2"],
               iparams["ln2_g"], iparams["ln2_b"],
               iparams["pooler_w"], iparams["pooler_b"],
               iparams["cls_w"], iparams["cls_b"])

    # TODO(synk): at real BERT sizes (H=768, S=512) tile the sequence/M dimension, mark the
    # stacked weight specs pipeline_mode=pl.Buffered(1) (they never change across the grid)
    # and set vmem_limit_bytes explicitly so the layout also fits v7x's 64 MiB VMEM.
    logits_pad = pl.pallas_call(
        _model_kernel,
        out_shape=jax.ShapeDtypeStruct((B, CLS_PAD), jnp.float32),
        grid=(B // BT,),
        in_specs=[
            pl.BlockSpec((BT, S, HIDDEN), lambda b: (b, 0, 0)),   # embeddings
            pl.BlockSpec((BT, 1, S), lambda b: (b, 0, 0)),        # additive attn bias
        ] + [_rep_spec(w) for w in weights],
        out_specs=pl.BlockSpec((BT, CLS_PAD), lambda b: (b, 0)),
        scratch_shapes=[pltpu.VMEM((BT, S, HIDDEN), jnp.float32)],
        compiler_params=pltpu.CompilerParams(dimension_semantics=("parallel",)),
    )(x_emb, attn_bias, *weights)

    return logits_pad[:, :NUM_CLASSES]


# ---------------- parameter init (synthetic BERT) + inference packing ----------------
def init_params(key):
    ks = iter(jax.random.split(key, 8 + NUM_LAYERS * 16))

    def nrm(shape, scale=0.02):
        return (scale * jax.random.normal(next(ks), shape)).astype(jnp.float32)

    params = {
        "word_emb": nrm((VOCAB_SIZE, HIDDEN)),
        "pos_emb": nrm((MAX_POS, HIDDEN)),
        "type_emb": nrm((2, HIDDEN)),
        "emb_ln_g": jnp.ones((HIDDEN,), jnp.float32),
        "emb_ln_b": jnp.zeros((HIDDEN,), jnp.float32),
        "pooler_w": nrm((HIDDEN, HIDDEN)),
        "pooler_b": jnp.zeros((HIDDEN,), jnp.float32),
        "cls_w": nrm((HIDDEN, NUM_CLASSES)),
        "cls_b": jnp.zeros((NUM_CLASSES,), jnp.float32),
        "layers": [],
    }
    for _ in range(NUM_LAYERS):
        params["layers"].append({
            "wq": nrm((HIDDEN, HIDDEN)), "bq": jnp.zeros((HIDDEN,), jnp.float32),
            "wk": nrm((HIDDEN, HIDDEN)), "bk": jnp.zeros((HIDDEN,), jnp.float32),
            "wv": nrm((HIDDEN, HIDDEN)), "bv": jnp.zeros((HIDDEN,), jnp.float32),
            "wo": nrm((HIDDEN, HIDDEN)), "bo": jnp.zeros((HIDDEN,), jnp.float32),
            "ln1_g": jnp.ones((HIDDEN,), jnp.float32),
            "ln1_b": jnp.zeros((HIDDEN,), jnp.float32),
            "w1": nrm((HIDDEN, INTERMEDIATE)), "b1": jnp.zeros((INTERMEDIATE,), jnp.float32),
            "w2": nrm((INTERMEDIATE, HIDDEN)), "b2": jnp.zeros((HIDDEN,), jnp.float32),
            "ln2_g": jnp.ones((HIDDEN,), jnp.float32),
            "ln2_b": jnp.zeros((HIDDEN,), jnp.float32),
        })
    return params


def prepare_inference_params(params):
    """Fuse QKV weights, stack layer weights on a leading L axis, cast MXU weights to
    bf16, reshape biases/LN params to [*,1,N], zero-pad the classifier to 128 lanes."""
    wdt = jnp.bfloat16
    cls_w = jnp.zeros((HIDDEN, CLS_PAD), jnp.float32).at[:, :NUM_CLASSES].set(params["cls_w"])
    cls_b = jnp.zeros((1, CLS_PAD), jnp.float32).at[0, :NUM_CLASSES].set(params["cls_b"])

    def stack(fn):
        return jnp.stack([fn(p) for p in params["layers"]], axis=0)

    return {
        "word_emb": params["word_emb"],
        "pos_emb": params["pos_emb"],
        "type_emb": params["type_emb"],
        "emb_ln_g": params["emb_ln_g"].reshape(1, HIDDEN),
        "emb_ln_b": params["emb_ln_b"].reshape(1, HIDDEN),
        "wqkv": stack(lambda p: jnp.concatenate([p["wq"], p["wk"], p["wv"]], axis=1)).astype(wdt),
        "bqkv": stack(lambda p: jnp.concatenate([p["bq"], p["bk"], p["bv"]]).reshape(1, 3 * HIDDEN)),
        "wo": stack(lambda p: p["wo"]).astype(wdt),
        "bo": stack(lambda p: p["bo"].reshape(1, HIDDEN)),
        "ln1_g": stack(lambda p: p["ln1_g"].reshape(1, HIDDEN)),
        "ln1_b": stack(lambda p: p["ln1_b"].reshape(1, HIDDEN)),
        "w1": stack(lambda p: p["w1"]).astype(wdt),
        "b1": stack(lambda p: p["b1"].reshape(1, INTERMEDIATE)),
        "w2": stack(lambda p: p["w2"]).astype(wdt),
        "b2": stack(lambda p: p["b2"].reshape(1, HIDDEN)),
        "ln2_g": stack(lambda p: p["ln2_g"].reshape(1, HIDDEN)),
        "ln2_b": stack(lambda p: p["ln2_b"].reshape(1, HIDDEN)),
        "pooler_w": params["pooler_w"].astype(wdt),
        "pooler_b": params["pooler_b"].reshape(1, HIDDEN),
        "cls_w": cls_w.astype(wdt),
        "cls_b": cls_b,
    }


# ---------------- pure-JAX reference (f32) for correctness check ----------------
def _ref_ln(x, g, b):
    mean = jnp.mean(x, axis=-1, keepdims=True)
    var = jnp.mean((x - mean) ** 2, axis=-1, keepdims=True)
    return (x - mean) * jax.lax.rsqrt(var + LN_EPS) * g + b


def reference_forward(params, input_ids, attention_mask):
    B, S = input_ids.shape
    x = (params["word_emb"][input_ids]
         + params["pos_emb"][jnp.arange(S)][None, :, :]
         + params["type_emb"][0][None, None, :])
    x = _ref_ln(x, params["emb_ln_g"], params["emb_ln_b"])
    bias = ((1.0 - attention_mask.astype(jnp.float32)) * -10000.0)[:, None, None, :]
    for p in params["layers"]:
        q = x @ p["wq"] + p["bq"]
        k = x @ p["wk"] + p["bk"]
        v = x @ p["wv"] + p["bv"]
        sp = lambda t: t.reshape(B, S, NUM_HEADS, HEAD_DIM).transpose(0, 2, 1, 3)
        sc = jnp.einsum('bhqd,bhkd->bhqk', sp(q), sp(k)) * ATT_SCALE + bias
        pr = jax.nn.softmax(sc, axis=-1)
        ctx = jnp.einsum('bhqk,bhkd->bhqd', pr, sp(v)).transpose(0, 2, 1, 3).reshape(B, S, HIDDEN)
        x = _ref_ln(x + ctx @ p["wo"] + p["bo"], p["ln1_g"], p["ln1_b"])
        ff = jax.nn.gelu(x @ p["w1"] + p["b1"], approximate=True)
        x = _ref_ln(x + ff @ p["w2"] + p["b2"], p["ln2_g"], p["ln2_b"])
    cls = x[:, 0, :]
    pooled = jnp.tanh(cls @ params["pooler_w"] + params["pooler_b"])
    return jnp.tanh(pooled @ params["cls_w"] + params["cls_b"])   # Dropout = identity (eval)


if __name__ == "__main__":
    key = jax.random.PRNGKey(0)
    pkey, dkey = jax.random.split(key)
    params = init_params(pkey)
    iparams = prepare_inference_params(params)

    B, S = 2, 8
    input_ids = jax.random.randint(dkey, (B, S), 0, VOCAB_SIZE, dtype=jnp.int32)
    attention_mask = jnp.ones((B, S), dtype=jnp.int32).at[1, 6:].set(0)  # pad last 2 of batch 1

    fwd = jax.jit(lambda ids, m: protein_classifier_forward(iparams, ids, m))
    logits = fwd(input_ids, attention_mask)
    jax.block_until_ready(logits)

    ref = reference_forward(params, input_ids, attention_mask)

    assert logits.shape == (B, NUM_CLASSES)
    assert bool(jnp.all(jnp.isfinite(logits)))
    assert bool(jnp.all(jnp.abs(logits) <= 1.0 + 1e-5))        # final Tanh bound
    assert bool(jnp.all(jnp.abs(logits - ref) < 5e-2))         # bf16-MXU tolerance vs f32 ref
    print("KERNEL_OK")
</pallas_src>

<mosaic_0001>
module attributes {stable_mosaic.version = 11 : i64} {
  func.func @_model_kernel(%arg0: i32, %arg1: memref<2x8x128xf32, #tpu.memory_space<vmem>>, %arg2: memref<2x1x8xf32, #tpu.memory_space<vmem>>, %arg3: memref<1x128xf32, #tpu.memory_space<vmem>>, %arg4: memref<1x128xf32, #tpu.memory_space<vmem>>, %arg5: memref<2x128x384xbf16, #tpu.memory_space<vmem>>, %arg6: memref<2x1x384xf32, #tpu.memory_space<vmem>>, %arg7: memref<2x128x128xbf16, #tpu.memory_space<vmem>>, %arg8: memref<2x1x128xf32, #tpu.memory_space<vmem>>, %arg9: memref<2x1x128xf32, #tpu.memory_space<vmem>>, %arg10: memref<2x1x128xf32, #tpu.memory_space<vmem>>, %arg11: memref<2x128x256xbf16, #tpu.memory_space<vmem>>, %arg12: memref<2x1x256xf32, #tpu.memory_space<vmem>>, %arg13: memref<2x256x128xbf16, #tpu.memory_space<vmem>>, %arg14: memref<2x1x128xf32, #tpu.memory_space<vmem>>, %arg15: memref<2x1x128xf32, #tpu.memory_space<vmem>>, %arg16: memref<2x1x128xf32, #tpu.memory_space<vmem>>, %arg17: memref<128x128xbf16, #tpu.memory_space<vmem>>, %arg18: memref<1x128xf32, #tpu.memory_space<vmem>>, %arg19: memref<128x128xbf16, #tpu.memory_space<vmem>>, %arg20: memref<1x128xf32, #tpu.memory_space<vmem>>, %arg21: memref<2x128xf32, #tpu.memory_space<vmem>>, %arg22: memref<2x8x128xf32, #tpu.memory_space<vmem>>) attributes {dimension_semantics = [#tpu.dimension_semantics<parallel>], iteration_bounds = array<i64: 1>, scalar_prefetch = 0 : i64, scratch_operands = 1 : i64, tpu.core_type = #tpu.core_type<tc>, window_params = [{transform_indices = @transform_0, window_bounds = array<i64: 2, 8, 128>}, {transform_indices = @transform_1, window_bounds = array<i64: 2, 1, 8>}, {pipeline_mode = #tpu.pipeline_mode<synchronous>, transform_indices = @transform_2, window_bounds = array<i64: 1, 128>}, {pipeline_mode = #tpu.pipeline_mode<synchronous>, transform_indices = @transform_3, window_bounds = array<i64: 1, 128>}, {pipeline_mode = #tpu.pipeline_mode<synchronous>, transform_indices = @transform_4, window_bounds = array<i64: 2, 128, 384>}, {pipeline_mode = #tpu.pipeline_mode<synchronous>, transform_indices = @transform_5, window_bounds = array<i64: 2, 1, 384>}, {pipeline_mode = #tpu.pipeline_mode<synchronous>, transform_indices = @transform_6, window_bounds = array<i64: 2, 128, 128>}, {pipeline_mode = #tpu.pipeline_mode<synchronous>, transform_indices = @transform_7, window_bounds = array<i64: 2, 1, 128>}, {pipeline_mode = #tpu.pipeline_mode<synchronous>, transform_indices = @transform_8, window_bounds = array<i64: 2, 1, 128>}, {pipeline_mode = #tpu.pipeline_mode<synchronous>, transform_indices = @transform_9, window_bounds = array<i64: 2, 1, 128>}, {pipeline_mode = #tpu.pipeline_mode<synchronous>, transform_indices = @transform_10, window_bounds = array<i64: 2, 128, 256>}, {pipeline_mode = #tpu.pipeline_mode<synchronous>, transform_indices = @transform_11, window_bounds = array<i64: 2, 1, 256>}, {pipeline_mode = #tpu.pipeline_mode<synchronous>, transform_indices = @transform_12, window_bounds = array<i64: 2, 256, 128>}, {pipeline_mode = #tpu.pipeline_mode<synchronous>, transform_indices = @transform_13, window_bounds = array<i64: 2, 1, 128>}, {pipeline_mode = #tpu.pipeline_mode<synchronous>, transform_indices = @transform_14, window_bounds = array<i64: 2, 1, 128>}, {pipeline_mode = #tpu.pipeline_mode<synchronous>, transform_indices = @transform_15, window_bounds = array<i64: 2, 1, 128>}, {pipeline_mode = #tpu.pipeline_mode<synchronous>, transform_indices = @transform_16, window_bounds = array<i64: 128, 128>}, {pipeline_mode = #tpu.pipeline_mode<synchronous>, transform_indices = @transform_17, window_bounds = array<i64: 1, 128>}, {pipeline_mode = #tpu.pipeline_mode<synchronous>, transform_indices = @transform_18, window_bounds = array<i64: 128, 128>}, {pipeline_mode = #tpu.pipeline_mode<synchronous>, transform_indices = @transform_19, window_bounds = array<i64: 1, 128>}, {transform_indices = @transform_20, window_bounds = array<i64: 2, 128>}]} {
    %c0 = arith.constant 0 : index
    %c0_0 = arith.constant 0 : index
    %c0_1 = arith.constant 0 : index
    %0 = vector.load %arg1[%c0, %c0_0, %c0_1] : memref<2x8x128xf32, #tpu.memory_space<vmem>>, vector<2x8x128xf32>
    %1 = vector.shape_cast %0 : vector<2x8x128xf32> to vector<16x128xf32>
    %c0_2 = arith.constant 0 : index
    %c0_3 = arith.constant 0 : index
    %2 = vector.load %arg3[%c0_2, %c0_3] : memref<1x128xf32, #tpu.memory_space<vmem>>, vector<1x128xf32>
    %c0_4 = arith.constant 0 : index
    %c0_5 = arith.constant 0 : index
    %3 = vector.load %arg4[%c0_4, %c0_5] : memref<1x128xf32, #tpu.memory_space<vmem>>, vector<1x128xf32>
    %cst = arith.constant dense<0.000000e+00> : vector<16xf32>
    %4 = vector.multi_reduction <add>, %1, %cst [1] : vector<16x128xf32> to vector<16xf32>
    %5 = vector.shape_cast %4 : vector<16xf32> to vector<16x1xf32>
    %cst_6 = arith.constant 1.280000e+02 : f32
    %6 = vector.broadcast %cst_6 : f32 to vector<16x1xf32>
    %7 = arith.divf %5, %6 : vector<16x1xf32>
    %8 = vector.broadcast %7 : vector<16x1xf32> to vector<16x128xf32>
    %9 = arith.subf %1, %8 : vector<16x128xf32>
    %10 = arith.mulf %9, %9 : vector<16x128xf32>
    %cst_7 = arith.constant dense<0.000000e+00> : vector<16xf32>
    %11 = vector.multi_reduction <add>, %10, %cst_7 [1] : vector<16x128xf32> to vector<16xf32>
    %12 = vector.shape_cast %11 : vector<16xf32> to vector<16x1xf32>
    %cst_8 = arith.constant 1.280000e+02 : f32
    %13 = vector.broadcast %cst_8 : f32 to vector<16x1xf32>
    %14 = arith.divf %12, %13 : vector<16x1xf32>
    %15 = vector.broadcast %7 : vector<16x1xf32> to vector<16x128xf32>
    %16 = arith.subf %1, %15 : vector<16x128xf32>
    %cst_9 = arith.constant 9.99999996E-13 : f32
    %17 = vector.broadcast %cst_9 : f32 to vector<16x1xf32>
    %18 = arith.addf %14, %17 : vector<16x1xf32>
    %19 = math.rsqrt %18 : vector<16x1xf32>
    %20 = vector.broadcast %19 : vector<16x1xf32> to vector<16x128xf32>
    %21 = arith.mulf %16, %20 : vector<16x128xf32>
    %22 = vector.broadcast %2 : vector<1x128xf32> to vector<16x128xf32>
    %23 = arith.mulf %21, %22 : vector<16x128xf32>
    %24 = vector.broadcast %3 : vector<1x128xf32> to vector<16x128xf32>
    %25 = arith.addf %23, %24 : vector<16x128xf32>
    %c0_10 = arith.constant 0 : index
    %c0_11 = arith.constant 0 : index
    %c0_12 = arith.constant 0 : index
    %26 = vector.load %arg2[%c0_10, %c0_11, %c0_12] : memref<2x1x8xf32, #tpu.memory_space<vmem>>, vector<2x1x8xf32>
    %c0_13 = arith.constant 0 : index
    %c0_14 = arith.constant 0 : index
    %c0_15 = arith.constant 0 : index
    %27 = vector.load %arg5[%c0_13, %c0_14, %c0_15] : memref<2x128x384xbf16, #tpu.memory_space<vmem>>, vector<1x128x384xbf16>
    %28 = vector.shape_cast %27 : vector<1x128x384xbf16> to vector<128x384xbf16>
    %c0_16 = arith.constant 0 : index
    %c0_17 = arith.constant 0 : index
    %c0_18 = arith.constant 0 : index
    %29 = vector.load %arg6[%c0_16, %c0_17, %c0_18] : memref<2x1x384xf32, #tpu.memory_space<vmem>>, vector<1x1x384xf32>
    %30 = vector.shape_cast %29 : vector<1x1x384xf32> to vector<1x384xf32>
    %31 = arith.truncf %25 : vector<16x128xf32> to vector<16x128xbf16>
    %cst_19 = arith.constant dense<0.000000e+00> : vector<16x384xf32>
    %32 = tpu.matmul %31, %28, %cst_19 {dimension_numbers = #tpu.dot_dimension_numbers<[1], [0], [0], [1], [0, 0, 1, 1], [], []>} : vector<16x128xbf16>, vector<128x384xbf16>, vector<16x384xf32> -> vector<16x384xf32>
    %33 = vector.broadcast %30 : vector<1x384xf32> to vector<16x384xf32>
    %34 = arith.addf %32, %33 : vector<16x384xf32>
    %35 = vector.extract_strided_slice %34 {offsets = [0, 0], sizes = [16, 128], strides = [1, 1]} : vector<16x384xf32> to vector<16x128xf32>
    %36 = vector.shape_cast %35 : vector<16x128xf32> to vector<2x8x128xf32>
    %37 = vector.extract_strided_slice %34 {offsets = [0, 128], sizes = [16, 128], strides = [1, 1]} : vector<16x384xf32> to vector<16x128xf32>
    %38 = vector.shape_cast %37 : vector<16x128xf32> to vector<2x8x128xf32>
    %39 = vector.extract_strided_slice %34 {offsets = [0, 256], sizes = [16, 128], strides = [1, 1]} : vector<16x384xf32> to vector<16x128xf32>
    %40 = vector.shape_cast %39 : vector<16x128xf32> to vector<2x8x128xf32>
    %41 = vector.extract_strided_slice %36 {offsets = [0, 0, 0], sizes = [2, 8, 32], strides = [1, 1, 1]} : vector<2x8x128xf32> to vector<2x8x32xf32>
    %42 = arith.truncf %41 : vector<2x8x32xf32> to vector<2x8x32xbf16>
    %43 = vector.extract_strided_slice %38 {offsets = [0, 0, 0], sizes = [2, 8, 32], strides = [1, 1, 1]} : vector<2x8x128xf32> to vector<2x8x32xf32>
    %44 = arith.truncf %43 : vector<2x8x32xf32> to vector<2x8x32xbf16>
    %45 = vector.extract_strided_slice %40 {offsets = [0, 0, 0], sizes = [2, 8, 32], strides = [1, 1, 1]} : vector<2x8x128xf32> to vector<2x8x32xf32>
    %46 = arith.truncf %45 : vector<2x8x32xf32> to vector<2x8x32xbf16>
    "tpu.trace_start"() <{level = 10 : i32, message = "bqd,bkd->bqk"}> : () -> ()
    %cst_20 = arith.constant dense<0.000000e+00> : vector<2x8x8xf32>
    %47 = tpu.matmul %42, %44, %cst_20 {dimension_numbers = #tpu.dot_dimension_numbers<[2], [2], [1], [1], [0, 0, 0, 1, 1, 1], [0], [0]>} : vector<2x8x32xbf16>, vector<2x8x32xbf16>, vector<2x8x8xf32> -> vector<2x8x8xf32>
    "tpu.trace_stop"() : () -> ()
    %cst_21 = arith.constant 0.176776692 : f32
    %48 = vector.broadcast %cst_21 : f32 to vector<2x8x8xf32>
    %49 = arith.mulf %47, %48 : vector<2x8x8xf32>
    %50 = vector.broadcast %26 : vector<2x1x8xf32> to vector<2x8x8xf32>
    %51 = arith.addf %49, %50 : vector<2x8x8xf32>
    %cst_22 = arith.constant dense<0xFF800000> : vector<2x8xf32>
    %52 = vector.multi_reduction <maximumf>, %51, %cst_22 [2] : vector<2x8x8xf32> to vector<2x8xf32>
    %53 = vector.shape_cast %52 : vector<2x8xf32> to vector<2x8x1xf32>
    %54 = vector.broadcast %53 : vector<2x8x1xf32> to vector<2x8x8xf32>
    %55 = arith.subf %51, %54 : vector<2x8x8xf32>
    %56 = math.exp %55 : vector<2x8x8xf32>
    %cst_23 = arith.constant dense<0.000000e+00> : vector<2x8xf32>
    %57 = vector.multi_reduction <add>, %56, %cst_23 [2] : vector<2x8x8xf32> to vector<2x8xf32>
    %58 = vector.shape_cast %57 : vector<2x8xf32> to vector<2x8x1xf32>
    %59 = vector.broadcast %58 : vector<2x8x1xf32> to vector<2x8x8xf32>
    %60 = arith.divf %56, %59 : vector<2x8x8xf32>
    %61 = arith.truncf %60 : vector<2x8x8xf32> to vector<2x8x8xbf16>
    "tpu.trace_start"() <{level = 10 : i32, message = "bqk,bkd->bqd"}> : () -> ()
    %cst_24 = arith.constant dense<0.000000e+00> : vector<2x8x32xf32>
    %62 = tpu.matmul %61, %46, %cst_24 {dimension_numbers = #tpu.dot_dimension_numbers<[2], [1], [1], [2], [0, 0, 0, 1, 1, 2], [0], [0]>} : vector<2x8x8xbf16>, vector<2x8x32xbf16>, vector<2x8x32xf32> -> vector<2x8x32xf32>
    "tpu.trace_stop"() : () -> ()
    %c0_25 = arith.constant 0 : index
    %c0_26 = arith.constant 0 : index
    %c0_27 = arith.constant 0 : index
    %63 = vector.load %arg22[%c0_25, %c0_26, %c0_27] : memref<2x8x128xf32, #tpu.memory_space<vmem>>, vector<2x8x32xf32>
    tpu.vector_store %arg22[%c0_25, %c0_26, %c0_27], %62 {strides = array<i32>} : memref<2x8x128xf32, #tpu.memory_space<vmem>>, vector<2x8x32xf32>,
    %64 = vector.extract_strided_slice %36 {offsets = [0, 0, 32], sizes = [2, 8, 32], strides = [1, 1, 1]} : vector<2x8x128xf32> to vector<2x8x32xf32>
    %65 = arith.truncf %64 : vector<2x8x32xf32> to vector<2x8x32xbf16>
    %66 = vector.extract_strided_slice %38 {offsets = [0, 0, 32], sizes = [2, 8, 32], strides = [1, 1, 1]} : vector<2x8x128xf32> to vector<2x8x32xf32>
    %67 = arith.truncf %66 : vector<2x8x32xf32> to vector<2x8x32xbf16>
    %68 = vector.extract_strided_slice %40 {offsets = [0, 0, 32], sizes = [2, 8, 32], strides = [1, 1, 1]} : vector<2x8x128xf32> to vector<2x8x32xf32>
    %69 = arith.truncf %68 : vector<2x8x32xf32> to vector<2x8x32xbf16>
    "tpu.trace_start"() <{level = 10 : i32, message = "bqd,bkd->bqk"}> : () -> ()
    %cst_28 = arith.constant dense<0.000000e+00> : vector<2x8x8xf32>
    %70 = tpu.matmul %65, %67, %cst_28 {dimension_numbers = #tpu.dot_dimension_numbers<[2], [2], [1], [1], [0, 0, 0, 1, 1, 1], [0], [0]>} : vector<2x8x32xbf16>, vector<2x8x32xbf16>, vector<2x8x8xf32> -> vector<2x8x8xf32>
    "tpu.trace_stop"() : () -> ()
    %cst_29 = arith.constant 0.176776692 : f32
    %71 = vector.broadcast %cst_29 : f32 to vector<2x8x8xf32>
    %72 = arith.mulf %70, %71 : vector<2x8x8xf32>
    %73 = vector.broadcast %26 : vector<2x1x8xf32> to vector<2x8x8xf32>
    %74 = arith.addf %72, %73 : vector<2x8x8xf32>
    %cst_30 = arith.constant dense<0xFF800000> : vector<2x8xf32>
    %75 = vector.multi_reduction <maximumf>, %74, %cst_30 [2] : vector<2x8x8xf32> to vector<2x8xf32>
    %76 = vector.shape_cast %75 : vector<2x8xf32> to vector<2x8x1xf32>
    %77 = vector.broadcast %76 : vector<2x8x1xf32> to vector<2x8x8xf32>
    %78 = arith.subf %74, %77 : vector<2x8x8xf32>
    %79 = math.exp %78 : vector<2x8x8xf32>
    %cst_31 = arith.constant dense<0.000000e+00> : vector<2x8xf32>
    %80 = vector.multi_reduction <add>, %79, %cst_31 [2] : vector<2x8x8xf32> to vector<2x8xf32>
    %81 = vector.shape_cast %80 : vector<2x8xf32> to vector<2x8x1xf32>
    %82 = vector.broadcast %81 : vector<2x8x1xf32> to vector<2x8x8xf32>
    %83 = arith.divf %79, %82 : vector<2x8x8xf32>
    %84 = arith.truncf %83 : vector<2x8x8xf32> to vector<2x8x8xbf16>
    "tpu.trace_start"() <{level = 10 : i32, message = "bqk,bkd->bqd"}> : () -> ()
    %cst_32 = arith.constant dense<0.000000e+00> : vector<2x8x32xf32>
    %85 = tpu.matmul %84, %69, %cst_32 {dimension_numbers = #tpu.dot_dimension_numbers<[2], [1], [1], [2], [0, 0, 0, 1, 1, 2], [0], [0]>} : vector<2x8x8xbf16>, vector<2x8x32xbf16>, vector<2x8x32xf32> -> vector<2x8x32xf32>
    "tpu.trace_stop"() : () -> ()
    %c0_33 = arith.constant 0 : index
    %c0_34 = arith.constant 0 : index
    %c32 = arith.constant 32 : index
    %86 = vector.load %arg22[%c0_33, %c0_34, %c32] : memref<2x8x128xf32, #tpu.memory_space<vmem>>, vector<2x8x32xf32>
    tpu.vector_store %arg22[%c0_33, %c0_34, %c32], %85 {strides = array<i32>} : memref<2x8x128xf32, #tpu.memory_space<vmem>>, vector<2x8x32xf32>,
    %87 = vector.extract_strided_slice %36 {offsets = [0, 0, 64], sizes = [2, 8, 32], strides = [1, 1, 1]} : vector<2x8x128xf32> to vector<2x8x32xf32>
    %88 = arith.truncf %87 : vector<2x8x32xf32> to vector<2x8x32xbf16>
    %89 = vector.extract_strided_slice %38 {offsets = [0, 0, 64], sizes = [2, 8, 32], strides = [1, 1, 1]} : vector<2x8x128xf32> to vector<2x8x32xf32>
    %90 = arith.truncf %89 : vector<2x8x32xf32> to vector<2x8x32xbf16>
    %91 = vector.extract_strided_slice %40 {offsets = [0, 0, 64], sizes = [2, 8, 32], strides = [1, 1, 1]} : vector<2x8x128xf32> to vector<2x8x32xf32>
    %92 = arith.truncf %91 : vector<2x8x32xf32> to vector<2x8x32xbf16>
    "tpu.trace_start"() <{level = 10 : i32, message = "bqd,bkd->bqk"}> : () -> ()
    %cst_35 = arith.constant dense<0.000000e+00> : vector<2x8x8xf32>
    %93 = tpu.matmul %88, %90, %cst_35 {dimension_numbers = #tpu.dot_dimension_numbers<[2], [2], [1], [1], [0, 0, 0, 1, 1, 1], [0], [0]>} : vector<2x8x32xbf16>, vector<2x8x32xbf16>, vector<2x8x8xf32> -> vector<2x8x8xf32>
    "tpu.trace_stop"() : () -> ()
    %cst_36 = arith.constant 0.176776692 : f32
    %94 = vector.broadcast %cst_36 : f32 to vector<2x8x8xf32>
    %95 = arith.mulf %93, %94 : vector<2x8x8xf32>
    %96 = vector.broadcast %26 : vector<2x1x8xf32> to vector<2x8x8xf32>
    %97 = arith.addf %95, %96 : vector<2x8x8xf32>
    %cst_37 = arith.constant dense<0xFF800000> : vector<2x8xf32>
    %98 = vector.multi_reduction <maximumf>, %97, %cst_37 [2] : vector<2x8x8xf32> to vector<2x8xf32>
    %99 = vector.shape_cast %98 : vector<2x8xf32> to vector<2x8x1xf32>
    %100 = vector.broadcast %99 : vector<2x8x1xf32> to vector<2x8x8xf32>
    %101 = arith.subf %97, %100 : vector<2x8x8xf32>
    %102 = math.exp %101 : vector<2x8x8xf32>
    %cst_38 = arith.constant dense<0.000000e+00> : vector<2x8xf32>
    %103 = vector.multi_reduction <add>, %102, %cst_38 [2] : vector<2x8x8xf32> to vector<2x8xf32>
    %104 = vector.shape_cast %103 : vector<2x8xf32> to vector<2x8x1xf32>
    %105 = vector.broadcast %104 : vector<2x8x1xf32> to vector<2x8x8xf32>
    %106 = arith.divf %102, %105 : vector<2x8x8xf32>
    %107 = arith.truncf %106 : vector<2x8x8xf32> to vector<2x8x8xbf16>
    "tpu.trace_start"() <{level = 10 : i32, message = "bqk,bkd->bqd"}> : () -> ()
    %cst_39 = arith.constant dense<0.000000e+00> : vector<2x8x32xf32>
    %108 = tpu.matmul %107, %92, %cst_39 {dimension_numbers = #tpu.dot_dimension_numbers<[2], [1], [1], [2], [0, 0, 0, 1, 1, 2], [0], [0]>} : vector<2x8x8xbf16>, vector<2x8x32xbf16>, vector<2x8x32xf32> -> vector<2x8x32xf32>
    "tpu.trace_stop"() : () -> ()
    %c0_40 = arith.constant 0 : index
    %c0_41 = arith.constant 0 : index
    %c64 = arith.constant 64 : index
    %109 = vector.load %arg22[%c0_40, %c0_41, %c64] : memref<2x8x128xf32, #tpu.memory_space<vmem>>, vector<2x8x32xf32>
    tpu.vector_store %arg22[%c0_40, %c0_41, %c64], %108 {strides = array<i32>} : memref<2x8x128xf32, #tpu.memory_space<vmem>>, vector<2x8x32xf32>,
    %110 = vector.extract_strided_slice %36 {offsets = [0, 0, 96], sizes = [2, 8, 32], strides = [1, 1, 1]} : vector<2x8x128xf32> to vector<2x8x32xf32>
    %111 = arith.truncf %110 : vector<2x8x32xf32> to vector<2x8x32xbf16>
    %112 = vector.extract_strided_slice %38 {offsets = [0, 0, 96], sizes = [2, 8, 32], strides = [1, 1, 1]} : vector<2x8x128xf32> to vector<2x8x32xf32>
    %113 = arith.truncf %112 : vector<2x8x32xf32> to vector<2x8x32xbf16>
    %114 = vector.extract_strided_slice %40 {offsets = [0, 0, 96], sizes = [2, 8, 32], strides = [1, 1, 1]} : vector<2x8x128xf32> to vector<2x8x32xf32>
    %115 = arith.truncf %114 : vector<2x8x32xf32> to vector<2x8x32xbf16>
    "tpu.trace_start"() <{level = 10 : i32, message = "bqd,bkd->bqk"}> : () -> ()
    %cst_42 = arith.constant dense<0.000000e+00> : vector<2x8x8xf32>
    %116 = tpu.matmul %111, %113, %cst_42 {dimension_numbers = #tpu.dot_dimension_numbers<[2], [2], [1], [1], [0, 0, 0, 1, 1, 1], [0], [0]>} : vector<2x8x32xbf16>, vector<2x8x32xbf16>, vector<2x8x8xf32> -> vector<2x8x8xf32>
    "tpu.trace_stop"() : () -> ()
    %cst_43 = arith.constant 0.176776692 : f32
    %117 = vector.broadcast %cst_43 : f32 to vector<2x8x8xf32>
    %118 = arith.mulf %116, %117 : vector<2x8x8xf32>
    %119 = vector.broadcast %26 : vector<2x1x8xf32> to vector<2x8x8xf32>
    %120 = arith.addf %118, %119 : vector<2x8x8xf32>
    %cst_44 = arith.constant dense<0xFF800000> : vector<2x8xf32>
    %121 = vector.multi_reduction <maximumf>, %120, %cst_44 [2] : vector<2x8x8xf32> to vector<2x8xf32>
    %122 = vector.shape_cast %121 : vector<2x8xf32> to vector<2x8x1xf32>
    %123 = vector.broadcast %122 : vector<2x8x1xf32> to vector<2x8x8xf32>
    %124 = arith.subf %120, %123 : vector<2x8x8xf32>
    %125 = math.exp %124 : vector<2x8x8xf32>
    %cst_45 = arith.constant dense<0.000000e+00> : vector<2x8xf32>
    %126 = vector.multi_reduction <add>, %125, %cst_45 [2] : vector<2x8x8xf32> to vector<2x8xf32>
    %127 = vector.shape_cast %126 : vector<2x8xf32> to vector<2x8x1xf32>
    %128 = vector.broadcast %127 : vector<2x8x1xf32> to vector<2x8x8xf32>
    %129 = arith.divf %125, %128 : vector<2x8x8xf32>
    %130 = arith.truncf %129 : vector<2x8x8xf32> to vector<2x8x8xbf16>
    "tpu.trace_start"() <{level = 10 : i32, message = "bqk,bkd->bqd"}> : () -> ()
    %cst_46 = arith.constant dense<0.000000e+00> : vector<2x8x32xf32>
    %131 = tpu.matmul %130, %115, %cst_46 {dimension_numbers = #tpu.dot_dimension_numbers<[2], [1], [1], [2], [0, 0, 0, 1, 1, 2], [0], [0]>} : vector<2x8x8xbf16>, vector<2x8x32xbf16>, vector<2x8x32xf32> -> vector<2x8x32xf32>
    "tpu.trace_stop"() : () -> ()
    %c0_47 = arith.constant 0 : index
    %c0_48 = arith.constant 0 : index
    %c96 = arith.constant 96 : index
    %132 = vector.load %arg22[%c0_47, %c0_48, %c96] : memref<2x8x128xf32, #tpu.memory_space<vmem>>, vector<2x8x32xf32>
    tpu.vector_store %arg22[%c0_47, %c0_48, %c96], %131 {strides = array<i32>} : memref<2x8x128xf32, #tpu.memory_space<vmem>>, vector<2x8x32xf32>,
    %c0_49 = arith.constant 0 : index
    %c0_50 = arith.constant 0 : index
    %c0_51 = arith.constant 0 : index
    %133 = vector.load %arg22[%c0_49, %c0_50, %c0_51] : memref<2x8x128xf32, #tpu.memory_space<vmem>>, vector<2x8x128xf32>
    %134 = vector.shape_cast %133 : vector<2x8x128xf32> to vector<16x128xf32>
    %c0_52 = arith.constant 0 : index
    %c0_53 = arith.constant 0 : index
    %c0_54 = arith.constant 0 : index
    %135 = vector.load %arg7[%c0_52, %c0_53, %c0_54] : memref<2x128x128xbf16, #tpu.memory_space<vmem>>, vector<1x128x128xbf16>
    %136 = vector.shape_cast %135 : vector<1x128x128xbf16> to vector<128x128xbf16>
    %c0_55 = arith.constant 0 : index
    %c0_56 = arith.constant 0 : index
    %c0_57 = arith.constant 0 : index
    %137 = vector.load %arg8[%c0_55, %c0_56, %c0_57] : memref<2x1x128xf32, #tpu.memory_space<vmem>>, vector<1x1x128xf32>
    %138 = vector.shape_cast %137 : vector<1x1x128xf32> to vector<1x128xf32>
    %139 = arith.truncf %134 : vector<16x128xf32> to vector<16x128xbf16>
    %cst_58 = arith.constant dense<0.000000e+00> : vector<16x128xf32>
    %140 = tpu.matmul %139, %136, %cst_58 {dimension_numbers = #tpu.dot_dimension_numbers<[1], [0], [0], [1], [0, 0, 1, 1], [], []>} : vector<16x128xbf16>, vector<128x128xbf16>, vector<16x128xf32> -> vector<16x128xf32>
    %141 = vector.broadcast %138 : vector<1x128xf32> to vector<16x128xf32>
    %142 = arith.addf %140, %141 : vector<16x128xf32>
    %143 = arith.addf %25, %142 : vector<16x128xf32>
    %c0_59 = arith.constant 0 : index
    %c0_60 = arith.constant 0 : index
    %c0_61 = arith.constant 0 : index
    %144 = vector.load %arg9[%c0_59, %c0_60, %c0_61] : memref<2x1x128xf32, #tpu.memory_space<vmem>>, vector<1x1x128xf32>
    %145 = vector.shape_cast %144 : vector<1x1x128xf32> to vector<1x128xf32>
    %c0_62 = arith.constant 0 : index
    %c0_63 = arith.constant 0 : index
    %c0_64 = arith.constant 0 : index
    %146 = vector.load %arg10[%c0_62, %c0_63, %c0_64] : memref<2x1x128xf32, #tpu.memory_space<vmem>>, vector<1x1x128xf32>
    %147 = vector.shape_cast %146 : vector<1x1x128xf32> to vector<1x128xf32>
    %cst_65 = arith.constant dense<0.000000e+00> : vector<16xf32>
    %148 = vector.multi_reduction <add>, %143, %cst_65 [1] : vector<16x128xf32> to vector<16xf32>
    %149 = vector.shape_cast %148 : vector<16xf32> to vector<16x1xf32>
    %cst_66 = arith.constant 1.280000e+02 : f32
    %150 = vector.broadcast %cst_66 : f32 to vector<16x1xf32>
    %151 = arith.divf %149, %150 : vector<16x1xf32>
    %152 = vector.broadcast %151 : vector<16x1xf32> to vector<16x128xf32>
    %153 = arith.subf %143, %152 : vector<16x128xf32>
    %154 = arith.mulf %153, %153 : vector<16x128xf32>
    %cst_67 = arith.constant dense<0.000000e+00> : vector<16xf32>
    %155 = vector.multi_reduction <add>, %154, %cst_67 [1] : vector<16x128xf32> to vector<16xf32>
    %156 = vector.shape_cast %155 : vector<16xf32> to vector<16x1xf32>
    %cst_68 = arith.constant 1.280000e+02 : f32
    %157 = vector.broadcast %cst_68 : f32 to vector<16x1xf32>
    %158 = arith.divf %156, %157 : vector<16x1xf32>
    %159 = vector.broadcast %151 : vector<16x1xf32> to vector<16x128xf32>
    %160 = arith.subf %143, %159 : vector<16x128xf32>
    %cst_69 = arith.constant 9.99999996E-13 : f32
    %161 = vector.broadcast %cst_69 : f32 to vector<16x1xf32>
    %162 = arith.addf %158, %161 : vector<16x1xf32>
    %163 = math.rsqrt %162 : vector<16x1xf32>
    %164 = vector.broadcast %163 : vector<16x1xf32> to vector<16x128xf32>
    %165 = arith.mulf %160, %164 : vector<16x128xf32>
    %166 = vector.broadcast %145 : vector<1x128xf32> to vector<16x128xf32>
    %167 = arith.mulf %165, %166 : vector<16x128xf32>
    %168 = vector.broadcast %147 : vector<1x128xf32> to vector<16x128xf32>
    %169 = arith.addf %167, %168 : vector<16x128xf32>
    %c0_70 = arith.constant 0 : index
    %c0_71 = arith.constant 0 : index
    %c0_72 = arith.constant 0 : index
    %170 = vector.load %arg11[%c0_70, %c0_71, %c0_72] : memref<2x128x256xbf16, #tpu.memory_space<vmem>>, vector<1x128x256xbf16>
    %171 = vector.shape_cast %170 : vector<1x128x256xbf16> to vector<128x256xbf16>
    %c0_73 = arith.constant 0 : index
    %c0_74 = arith.constant 0 : index
    %c0_75 = arith.constant 0 : index
    %172 = vector.load %arg12[%c0_73, %c0_74, %c0_75] : memref<2x1x256xf32, #tpu.memory_space<vmem>>, vector<1x1x256xf32>
    %173 = vector.shape_cast %172 : vector<1x1x256xf32> to vector<1x256xf32>
    %174 = arith.truncf %169 : vector<16x128xf32> to vector<16x128xbf16>
    %cst_76 = arith.constant dense<0.000000e+00> : vector<16x256xf32>
    %175 = tpu.matmul %174, %171, %cst_76 {dimension_numbers = #tpu.dot_dimension_numbers<[1], [0], [0], [1], [0, 0, 1, 1], [], []>} : vector<16x128xbf16>, vector<128x256xbf16>, vector<16x256xf32> -> vector<16x256xf32>
    %176 = vector.broadcast %173 : vector<1x256xf32> to vector<16x256xf32>
    %177 = arith.addf %175, %176 : vector<16x256xf32>
    %178 = arith.mulf %177, %177 : vector<16x256xf32>
    %179 = arith.mulf %177, %178 : vector<16x256xf32>
    %cst_77 = arith.constant 4.471500e-02 : f32
    %180 = vector.broadcast %cst_77 : f32 to vector<16x256xf32>
    %181 = arith.mulf %180, %179 : vector<16x256xf32>
    %182 = arith.addf %177, %181 : vector<16x256xf32>
    %cst_78 = arith.constant 0.797884583 : f32
    %183 = vector.broadcast %cst_78 : f32 to vector<16x256xf32>
    %184 = arith.mulf %183, %182 : vector<16x256xf32>
    %185 = math.tanh %184 : vector<16x256xf32>
    %cst_79 = arith.constant 1.000000e+00 : f32
    %186 = vector.broadcast %cst_79 : f32 to vector<16x256xf32>
    %187 = arith.addf %186, %185 : vector<16x256xf32>
    %cst_80 = arith.constant 5.000000e-01 : f32
    %188 = vector.broadcast %cst_80 : f32 to vector<16x256xf32>
    %189 = arith.mulf %188, %187 : vector<16x256xf32>
    %190 = arith.mulf %177, %189 : vector<16x256xf32>
    %c0_81 = arith.constant 0 : index
    %c0_82 = arith.constant 0 : index
    %c0_83 = arith.constant 0 : index
    %191 = vector.load %arg13[%c0_81, %c0_82, %c0_83] : memref<2x256x128xbf16, #tpu.memory_space<vmem>>, vector<1x256x128xbf16>
    %192 = vector.shape_cast %191 : vector<1x256x128xbf16> to vector<256x128xbf16>
    %c0_84 = arith.constant 0 : index
    %c0_85 = arith.constant 0 : index
    %c0_86 = arith.constant 0 : index
    %193 = vector.load %arg14[%c0_84, %c0_85, %c0_86] : memref<2x1x128xf32, #tpu.memory_space<vmem>>, vector<1x1x128xf32>
    %194 = vector.shape_cast %193 : vector<1x1x128xf32> to vector<1x128xf32>
    %195 = arith.truncf %190 : vector<16x256xf32> to vector<16x256xbf16>
    %cst_87 = arith.constant dense<0.000000e+00> : vector<16x128xf32>
    %196 = tpu.matmul %195, %192, %cst_87 {dimension_numbers = #tpu.dot_dimension_numbers<[1], [0], [0], [1], [0, 0, 1, 1], [], []>} : vector<16x256xbf16>, vector<256x128xbf16>, vector<16x128xf32> -> vector<16x128xf32>
    %197 = vector.broadcast %194 : vector<1x128xf32> to vector<16x128xf32>
    %198 = arith.addf %196, %197 : vector<16x128xf32>
    %199 = arith.addf %169, %198 : vector<16x128xf32>
    %c0_88 = arith.constant 0 : index
    %c0_89 = arith.constant 0 : index
    %c0_90 = arith.constant 0 : index
    %200 = vector.load %arg15[%c0_88, %c0_89, %c0_90] : memref<2x1x128xf32, #tpu.memory_space<vmem>>, vector<1x1x128xf32>
    %201 = vector.shape_cast %200 : vector<1x1x128xf32> to vector<1x128xf32>
    %c0_91 = arith.constant 0 : index
    %c0_92 = arith.constant 0 : index
    %c0_93 = arith.constant 0 : index
    %202 = vector.load %arg16[%c0_91, %c0_92, %c0_93] : memref<2x1x128xf32, #tpu.memory_space<vmem>>, vector<1x1x128xf32>
    %203 = vector.shape_cast %202 : vector<1x1x128xf32> to vector<1x128xf32>
    %cst_94 = arith.constant dense<0.000000e+00> : vector<16xf32>
    %204 = vector.multi_reduction <add>, %199, %cst_94 [1] : vector<16x128xf32> to vector<16xf32>
    %205 = vector.shape_cast %204 : vector<16xf32> to vector<16x1xf32>
    %cst_95 = arith.constant 1.280000e+02 : f32
    %206 = vector.broadcast %cst_95 : f32 to vector<16x1xf32>
    %207 = arith.divf %205, %206 : vector<16x1xf32>
    %208 = vector.broadcast %207 : vector<16x1xf32> to vector<16x128xf32>
    %209 = arith.subf %199, %208 : vector<16x128xf32>
    %210 = arith.mulf %209, %209 : vector<16x128xf32>
    %cst_96 = arith.constant dense<0.000000e+00> : vector<16xf32>
    %211 = vector.multi_reduction <add>, %210, %cst_96 [1] : vector<16x128xf32> to vector<16xf32>
    %212 = vector.shape_cast %211 : vector<16xf32> to vector<16x1xf32>
    %cst_97 = arith.constant 1.280000e+02 : f32
    %213 = vector.broadcast %cst_97 : f32 to vector<16x1xf32>
    %214 = arith.divf %212, %213 : vector<16x1xf32>
    %215 = vector.broadcast %207 : vector<16x1xf32> to vector<16x128xf32>
    %216 = arith.subf %199, %215 : vector<16x128xf32>
    %cst_98 = arith.constant 9.99999996E-13 : f32
    %217 = vector.broadcast %cst_98 : f32 to vector<16x1xf32>
    %218 = arith.addf %214, %217 : vector<16x1xf32>
    %219 = math.rsqrt %218 : vector<16x1xf32>
    %220 = vector.broadcast %219 : vector<16x1xf32> to vector<16x128xf32>
    %221 = arith.mulf %216, %220 : vector<16x128xf32>
    %222 = vector.broadcast %201 : vector<1x128xf32> to vector<16x128xf32>
    %223 = arith.mulf %221, %222 : vector<16x128xf32>
    %224 = vector.broadcast %203 : vector<1x128xf32> to vector<16x128xf32>
    %225 = arith.addf %223, %224 : vector<16x128xf32>
    %c1 = arith.constant 1 : index
    %c0_99 = arith.constant 0 : index
    %c0_100 = arith.constant 0 : index
    %226 = vector.load %arg5[%c1, %c0_99, %c0_100] : memref<2x128x384xbf16, #tpu.memory_space<vmem>>, vector<1x128x384xbf16>
    %227 = vector.shape_cast %226 : vector<1x128x384xbf16> to vector<128x384xbf16>
    %c1_101 = arith.constant 1 : index
    %c0_102 = arith.constant 0 : index
    %c0_103 = arith.constant 0 : index
    %228 = vector.load %arg6[%c1_101, %c0_102, %c0_103] : memref<2x1x384xf32, #tpu.memory_space<vmem>>, vector<1x1x384xf32>
    %229 = vector.shape_cast %228 : vector<1x1x384xf32> to vector<1x384xf32>
    %230 = arith.truncf %225 : vector<16x128xf32> to vector<16x128xbf16>
    %cst_104 = arith.constant dense<0.000000e+00> : vector<16x384xf32>
    %231 = tpu.matmul %230, %227, %cst_104 {dimension_numbers = #tpu.dot_dimension_numbers<[1], [0], [0], [1], [0, 0, 1, 1], [], []>} : vector<16x128xbf16>, vector<128x384xbf16>, vector<16x384xf32> -> vector<16x384xf32>
    %232 = vector.broadcast %229 : vector<1x384xf32> to vector<16x384xf32>
    %233 = arith.addf %231, %232 : vector<16x384xf32>
    %234 = vector.extract_strided_slice %233 {offsets = [0, 0], sizes = [16, 128], strides = [1, 1]} : vector<16x384xf32> to vector<16x128xf32>
    %235 = vector.shape_cast %234 : vector<16x128xf32> to vector<2x8x128xf32>
    %236 = vector.extract_strided_slice %233 {offsets = [0, 128], sizes = [16, 128], strides = [1, 1]} : vector<16x384xf32> to vector<16x128xf32>
    %237 = vector.shape_cast %236 : vector<16x128xf32> to vector<2x8x128xf32>
    %238 = vector.extract_strided_slice %233 {offsets = [0, 256], sizes = [16, 128], strides = [1, 1]} : vector<16x384xf32> to vector<16x128xf32>
    %239 = vector.shape_cast %238 : vector<16x128xf32> to vector<2x8x128xf32>
    %240 = vector.extract_strided_slice %235 {offsets = [0, 0, 0], sizes = [2, 8, 32], strides = [1, 1, 1]} : vector<2x8x128xf32> to vector<2x8x32xf32>
    %241 = arith.truncf %240 : vector<2x8x32xf32> to vector<2x8x32xbf16>
    %242 = vector.extract_strided_slice %237 {offsets = [0, 0, 0], sizes = [2, 8, 32], strides = [1, 1, 1]} : vector<2x8x128xf32> to vector<2x8x32xf32>
    %243 = arith.truncf %242 : vector<2x8x32xf32> to vector<2x8x32xbf16>
    %244 = vector.extract_strided_slice %239 {offsets = [0, 0, 0], sizes = [2, 8, 32], strides = [1, 1, 1]} : vector<2x8x128xf32> to vector<2x8x32xf32>
    %245 = arith.truncf %244 : vector<2x8x32xf32> to vector<2x8x32xbf16>
    "tpu.trace_start"() <{level = 10 : i32, message = "bqd,bkd->bqk"}> : () -> ()
    %cst_105 = arith.constant dense<0.000000e+00> : vector<2x8x8xf32>
    %246 = tpu.matmul %241, %243, %cst_105 {dimension_numbers = #tpu.dot_dimension_numbers<[2], [2], [1], [1], [0, 0, 0, 1, 1, 1], [0], [0]>} : vector<2x8x32xbf16>, vector<2x8x32xbf16>, vector<2x8x8xf32> -> vector<2x8x8xf32>
    "tpu.trace_stop"() : () -> ()
    %cst_106 = arith.constant 0.176776692 : f32
    %247 = vector.broadcast %cst_106 : f32 to vector<2x8x8xf32>
    %248 = arith.mulf %246, %247 : vector<2x8x8xf32>
    %249 = vector.broadcast %26 : vector<2x1x8xf32> to vector<2x8x8xf32>
    %250 = arith.addf %248, %249 : vector<2x8x8xf32>
    %cst_107 = arith.constant dense<0xFF800000> : vector<2x8xf32>
    %251 = vector.multi_reduction <maximumf>, %250, %cst_107 [2] : vector<2x8x8xf32> to vector<2x8xf32>
    %252 = vector.shape_cast %251 : vector<2x8xf32> to vector<2x8x1xf32>
    %253 = vector.broadcast %252 : vector<2x8x1xf32> to vector<2x8x8xf32>
    %254 = arith.subf %250, %253 : vector<2x8x8xf32>
    %255 = math.exp %254 : vector<2x8x8xf32>
    %cst_108 = arith.constant dense<0.000000e+00> : vector<2x8xf32>
    %256 = vector.multi_reduction <add>, %255, %cst_108 [2] : vector<2x8x8xf32> to vector<2x8xf32>
    %257 = vector.shape_cast %256 : vector<2x8xf32> to vector<2x8x1xf32>
    %258 = vector.broadcast %257 : vector<2x8x1xf32> to vector<2x8x8xf32>
    %259 = arith.divf %255, %258 : vector<2x8x8xf32>
    %260 = arith.truncf %259 : vector<2x8x8xf32> to vector<2x8x8xbf16>
    "tpu.trace_start"() <{level = 10 : i32, message = "bqk,bkd->bqd"}> : () -> ()
    %cst_109 = arith.constant dense<0.000000e+00> : vector<2x8x32xf32>
    %261 = tpu.matmul %260, %245, %cst_109 {dimension_numbers = #tpu.dot_dimension_numbers<[2], [1], [1], [2], [0, 0, 0, 1, 1, 2], [0], [0]>} : vector<2x8x8xbf16>, vector<2x8x32xbf16>, vector<2x8x32xf32> -> vector<2x8x32xf32>
    "tpu.trace_stop"() : () -> ()
    %c0_110 = arith.constant 0 : index
    %c0_111 = arith.constant 0 : index
    %c0_112 = arith.constant 0 : index
    %262 = vector.load %arg22[%c0_110, %c0_111, %c0_112] : memref<2x8x128xf32, #tpu.memory_space<vmem>>, vector<2x8x32xf32>
    tpu.vector_store %arg22[%c0_110, %c0_111, %c0_112], %261 {strides = array<i32>} : memref<2x8x128xf32, #tpu.memory_space<vmem>>, vector<2x8x32xf32>,
    %263 = vector.extract_strided_slice %235 {offsets = [0, 0, 32], sizes = [2, 8, 32], strides = [1, 1, 1]} : vector<2x8x128xf32> to vector<2x8x32xf32>
    %264 = arith.truncf %263 : vector<2x8x32xf32> to vector<2x8x32xbf16>
    %265 = vector.extract_strided_slice %237 {offsets = [0, 0, 32], sizes = [2, 8, 32], strides = [1, 1, 1]} : vector<2x8x128xf32> to vector<2x8x32xf32>
    %266 = arith.truncf %265 : vector<2x8x32xf32> to vector<2x8x32xbf16>
    %267 = vector.extract_strided_slice %239 {offsets = [0, 0, 32], sizes = [2, 8, 32], strides = [1, 1, 1]} : vector<2x8x128xf32> to vector<2x8x32xf32>
    %268 = arith.truncf %267 : vector<2x8x32xf32> to vector<2x8x32xbf16>
    "tpu.trace_start"() <{level = 10 : i32, message = "bqd,bkd->bqk"}> : () -> ()
    %cst_113 = arith.constant dense<0.000000e+00> : vector<2x8x8xf32>
    %269 = tpu.matmul %264, %266, %cst_113 {dimension_numbers = #tpu.dot_dimension_numbers<[2], [2], [1], [1], [0, 0, 0, 1, 1, 1], [0], [0]>} : vector<2x8x32xbf16>, vector<2x8x32xbf16>, vector<2x8x8xf32> -> vector<2x8x8xf32>
    "tpu.trace_stop"() : () -> ()
    %cst_114 = arith.constant 0.176776692 : f32
    %270 = vector.broadcast %cst_114 : f32 to vector<2x8x8xf32>
    %271 = arith.mulf %269, %270 : vector<2x8x8xf32>
    %272 = vector.broadcast %26 : vector<2x1x8xf32> to vector<2x8x8xf32>
    %273 = arith.addf %271, %272 : vector<2x8x8xf32>
    %cst_115 = arith.constant dense<0xFF800000> : vector<2x8xf32>
    %274 = vector.multi_reduction <maximumf>, %273, %cst_115 [2] : vector<2x8x8xf32> to vector<2x8xf32>
    %275 = vector.shape_cast %274 : vector<2x8xf32> to vector<2x8x1xf32>
    %276 = vector.broadcast %275 : vector<2x8x1xf32> to vector<2x8x8xf32>
    %277 = arith.subf %273, %276 : vector<2x8x8xf32>
    %278 = math.exp %277 : vector<2x8x8xf32>
    %cst_116 = arith.constant dense<0.000000e+00> : vector<2x8xf32>
    %279 = vector.multi_reduction <add>, %278, %cst_116 [2] : vector<2x8x8xf32> to vector<2x8xf32>
    %280 = vector.shape_cast %279 : vector<2x8xf32> to vector<2x8x1xf32>
    %281 = vector.broadcast %280 : vector<2x8x1xf32> to vector<2x8x8xf32>
    %282 = arith.divf %278, %281 : vector<2x8x8xf32>
    %283 = arith.truncf %282 : vector<2x8x8xf32> to vector<2x8x8xbf16>
    "tpu.trace_start"() <{level = 10 : i32, message = "bqk,bkd->bqd"}> : () -> ()
    %cst_117 = arith.constant dense<0.000000e+00> : vector<2x8x32xf32>
    %284 = tpu.matmul %283, %268, %cst_117 {dimension_numbers = #tpu.dot_dimension_numbers<[2], [1], [1], [2], [0, 0, 0, 1, 1, 2], [0], [0]>} : vector<2x8x8xbf16>, vector<2x8x32xbf16>, vector<2x8x32xf32> -> vector<2x8x32xf32>
    "tpu.trace_stop"() : () -> ()
    %c0_118 = arith.constant 0 : index
    %c0_119 = arith.constant 0 : index
    %c32_120 = arith.constant 32 : index
    %285 = vector.load %arg22[%c0_118, %c0_119, %c32_120] : memref<2x8x128xf32, #tpu.memory_space<vmem>>, vector<2x8x32xf32>
    tpu.vector_store %arg22[%c0_118, %c0_119, %c32_120], %284 {strides = array<i32>} : memref<2x8x128xf32, #tpu.memory_space<vmem>>, vector<2x8x32xf32>,
    %286 = vector.extract_strided_slice %235 {offsets = [0, 0, 64], sizes = [2, 8, 32], strides = [1, 1, 1]} : vector<2x8x128xf32> to vector<2x8x32xf32>
    %287 = arith.truncf %286 : vector<2x8x32xf32> to vector<2x8x32xbf16>
    %288 = vector.extract_strided_slice %237 {offsets = [0, 0, 64], sizes = [2, 8, 32], strides = [1, 1, 1]} : vector<2x8x128xf32> to vector<2x8x32xf32>
    %289 = arith.truncf %288 : vector<2x8x32xf32> to vector<2x8x32xbf16>
    %290 = vector.extract_strided_slice %239 {offsets = [0, 0, 64], sizes = [2, 8, 32], strides = [1, 1, 1]} : vector<2x8x128xf32> to vector<2x8x32xf32>
    %291 = arith.truncf %290 : vector<2x8x32xf32> to vector<2x8x32xbf16>
    "tpu.trace_start"() <{level = 10 : i32, message = "bqd,bkd->bqk"}> : () -> ()
    %cst_121 = arith.constant dense<0.000000e+00> : vector<2x8x8xf32>
    %292 = tpu.matmul %287, %289, %cst_121 {dimension_numbers = #tpu.dot_dimension_numbers<[2], [2], [1], [1], [0, 0, 0, 1, 1, 1], [0], [0]>} : vector<2x8x32xbf16>, vector<2x8x32xbf16>, vector<2x8x8xf32> -> vector<2x8x8xf32>
    "tpu.trace_stop"() : () -> ()
    %cst_122 = arith.constant 0.176776692 : f32
    %293 = vector.broadcast %cst_122 : f32 to vector<2x8x8xf32>
    %294 = arith.mulf %292, %293 : vector<2x8x8xf32>
    %295 = vector.broadcast %26 : vector<2x1x8xf32> to vector<2x8x8xf32>
    %296 = arith.addf %294, %295 : vector<2x8x8xf32>
    %cst_123 = arith.constant dense<0xFF800000> : vector<2x8xf32>
    %297 = vector.multi_reduction <maximumf>, %296, %cst_123 [2] : vector<2x8x8xf32> to vector<2x8xf32>
    %298 = vector.shape_cast %297 : vector<2x8xf32> to vector<2x8x1xf32>
    %299 = vector.broadcast %298 : vector<2x8x1xf32> to vector<2x8x8xf32>
    %300 = arith.subf %296, %299 : vector<2x8x8xf32>
    %301 = math.exp %300 : vector<2x8x8xf32>
    %cst_124 = arith.constant dense<0.000000e+00> : vector<2x8xf32>
    %302 = vector.multi_reduction <add>, %301, %cst_124 [2] : vector<2x8x8xf32> to vector<2x8xf32>
    %303 = vector.shape_cast %302 : vector<2x8xf32> to vector<2x8x1xf32>
    %304 = vector.broadcast %303 : vector<2x8x1xf32> to vector<2x8x8xf32>
    %305 = arith.divf %301, %304 : vector<2x8x8xf32>
    %306 = arith.truncf %305 : vector<2x8x8xf32> to vector<2x8x8xbf16>
    "tpu.trace_start"() <{level = 10 : i32, message = "bqk,bkd->bqd"}> : () -> ()
    %cst_125 = arith.constant dense<0.000000e+00> : vector<2x8x32xf32>
    %307 = tpu.matmul %306, %291, %cst_125 {dimension_numbers = #tpu.dot_dimension_numbers<[2], [1], [1], [2], [0, 0, 0, 1, 1, 2], [0], [0]>} : vector<2x8x8xbf16>, vector<2x8x32xbf16>, vector<2x8x32xf32> -> vector<2x8x32xf32>
    "tpu.trace_stop"() : () -> ()
    %c0_126 = arith.constant 0 : index
    %c0_127 = arith.constant 0 : index
    %c64_128 = arith.constant 64 : index
    %308 = vector.load %arg22[%c0_126, %c0_127, %c64_128] : memref<2x8x128xf32, #tpu.memory_space<vmem>>, vector<2x8x32xf32>
    tpu.vector_store %arg22[%c0_126, %c0_127, %c64_128], %307 {strides = array<i32>} : memref<2x8x128xf32, #tpu.memory_space<vmem>>, vector<2x8x32xf32>,
    %309 = vector.extract_strided_slice %235 {offsets = [0, 0, 96], sizes = [2, 8, 32], strides = [1, 1, 1]} : vector<2x8x128xf32> to vector<2x8x32xf32>
    %310 = arith.truncf %309 : vector<2x8x32xf32> to vector<2x8x32xbf16>
    %311 = vector.extract_strided_slice %237 {offsets = [0, 0, 96], sizes = [2, 8, 32], strides = [1, 1, 1]} : vector<2x8x128xf32> to vector<2x8x32xf32>
    %312 = arith.truncf %311 : vector<2x8x32xf32> to vector<2x8x32xbf16>
    %313 = vector.extract_strided_slice %239 {offsets = [0, 0, 96], sizes = [2, 8, 32], strides = [1, 1, 1]} : vector<2x8x128xf32> to vector<2x8x32xf32>
    %314 = arith.truncf %313 : vector<2x8x32xf32> to vector<2x8x32xbf16>
    "tpu.trace_start"() <{level = 10 : i32, message = "bqd,bkd->bqk"}> : () -> ()
    %cst_129 = arith.constant dense<0.000000e+00> : vector<2x8x8xf32>
    %315 = tpu.matmul %310, %312, %cst_129 {dimension_numbers = #tpu.dot_dimension_numbers<[2], [2], [1], [1], [0, 0, 0, 1, 1, 1], [0], [0]>} : vector<2x8x32xbf16>, vector<2x8x32xbf16>, vector<2x8x8xf32> -> vector<2x8x8xf32>
    "tpu.trace_stop"() : () -> ()
    %cst_130 = arith.constant 0.176776692 : f32
    %316 = vector.broadcast %cst_130 : f32 to vector<2x8x8xf32>
    %317 = arith.mulf %315, %316 : vector<2x8x8xf32>
    %318 = vector.broadcast %26 : vector<2x1x8xf32> to vector<2x8x8xf32>
    %319 = arith.addf %317, %318 : vector<2x8x8xf32>
    %cst_131 = arith.constant dense<0xFF800000> : vector<2x8xf32>
    %320 = vector.multi_reduction <maximumf>, %319, %cst_131 [2] : vector<2x8x8xf32> to vector<2x8xf32>
    %321 = vector.shape_cast %320 : vector<2x8xf32> to vector<2x8x1xf32>
    %322 = vector.broadcast %321 : vector<2x8x1xf32> to vector<2x8x8xf32>
    %323 = arith.subf %319, %322 : vector<2x8x8xf32>
    %324 = math.exp %323 : vector<2x8x8xf32>
    %cst_132 = arith.constant dense<0.000000e+00> : vector<2x8xf32>
    %325 = vector.multi_reduction <add>, %324, %cst_132 [2] : vector<2x8x8xf32> to vector<2x8xf32>
    %326 = vector.shape_cast %325 : vector<2x8xf32> to vector<2x8x1xf32>
    %327 = vector.broadcast %326 : vector<2x8x1xf32> to vector<2x8x8xf32>
    %328 = arith.divf %324, %327 : vector<2x8x8xf32>
    %329 = arith.truncf %328 : vector<2x8x8xf32> to vector<2x8x8xbf16>
    "tpu.trace_start"() <{level = 10 : i32, message = "bqk,bkd->bqd"}> : () -> ()
    %cst_133 = arith.constant dense<0.000000e+00> : vector<2x8x32xf32>
    %330 = tpu.matmul %329, %314, %cst_133 {dimension_numbers = #tpu.dot_dimension_numbers<[2], [1], [1], [2], [0, 0, 0, 1, 1, 2], [0], [0]>} : vector<2x8x8xbf16>, vector<2x8x32xbf16>, vector<2x8x32xf32> -> vector<2x8x32xf32>
    "tpu.trace_stop"() : () -> ()
    %c0_134 = arith.constant 0 : index
    %c0_135 = arith.constant 0 : index
    %c96_136 = arith.constant 96 : index
    %331 = vector.load %arg22[%c0_134, %c0_135, %c96_136] : memref<2x8x128xf32, #tpu.memory_space<vmem>>, vector<2x8x32xf32>
    tpu.vector_store %arg22[%c0_134, %c0_135, %c96_136], %330 {strides = array<i32>} : memref<2x8x128xf32, #tpu.memory_space<vmem>>, vector<2x8x32xf32>,
    %c0_137 = arith.constant 0 : index
    %c0_138 = arith.constant 0 : index
    %c0_139 = arith.constant 0 : index
    %332 = vector.load %arg22[%c0_137, %c0_138, %c0_139] : memref<2x8x128xf32, #tpu.memory_space<vmem>>, vector<2x8x128xf32>
    %333 = vector.shape_cast %332 : vector<2x8x128xf32> to vector<16x128xf32>
    %c1_140 = arith.constant 1 : index
    %c0_141 = arith.constant 0 : index
    %c0_142 = arith.constant 0 : index
    %334 = vector.load %arg7[%c1_140, %c0_141, %c0_142] : memref<2x128x128xbf16, #tpu.memory_space<vmem>>, vector<1x128x128xbf16>
    %335 = vector.shape_cast %334 : vector<1x128x128xbf16> to vector<128x128xbf16>
    %c1_143 = arith.constant 1 : index
    %c0_144 = arith.constant 0 : index
    %c0_145 = arith.constant 0 : index
    %336 = vector.load %arg8[%c1_143, %c0_144, %c0_145] : memref<2x1x128xf32, #tpu.memory_space<vmem>>, vector<1x1x128xf32>
    %337 = vector.shape_cast %336 : vector<1x1x128xf32> to vector<1x128xf32>
    %338 = arith.truncf %333 : vector<16x128xf32> to vector<16x128xbf16>
    %cst_146 = arith.constant dense<0.000000e+00> : vector<16x128xf32>
    %339 = tpu.matmul %338, %335, %cst_146 {dimension_numbers = #tpu.dot_dimension_numbers<[1], [0], [0], [1], [0, 0, 1, 1], [], []>} : vector<16x128xbf16>, vector<128x128xbf16>, vector<16x128xf32> -> vector<16x128xf32>
    %340 = vector.broadcast %337 : vector<1x128xf32> to vector<16x128xf32>
    %341 = arith.addf %339, %340 : vector<16x128xf32>
    %342 = arith.addf %225, %341 : vector<16x128xf32>
    %c1_147 = arith.constant 1 : index
    %c0_148 = arith.constant 0 : index
    %c0_149 = arith.constant 0 : index
    %343 = vector.load %arg9[%c1_147, %c0_148, %c0_149] : memref<2x1x128xf32, #tpu.memory_space<vmem>>, vector<1x1x128xf32>
    %344 = vector.shape_cast %343 : vector<1x1x128xf32> to vector<1x128xf32>
    %c1_150 = arith.constant 1 : index
    %c0_151 = arith.constant 0 : index
    %c0_152 = arith.constant 0 : index
    %345 = vector.load %arg10[%c1_150, %c0_151, %c0_152] : memref<2x1x128xf32, #tpu.memory_space<vmem>>, vector<1x1x128xf32>
    %346 = vector.shape_cast %345 : vector<1x1x128xf32> to vector<1x128xf32>
    %cst_153 = arith.constant dense<0.000000e+00> : vector<16xf32>
    %347 = vector.multi_reduction <add>, %342, %cst_153 [1] : vector<16x128xf32> to vector<16xf32>
    %348 = vector.shape_cast %347 : vector<16xf32> to vector<16x1xf32>
    %cst_154 = arith.constant 1.280000e+02 : f32
    %349 = vector.broadcast %cst_154 : f32 to vector<16x1xf32>
    %350 = arith.divf %348, %349 : vector<16x1xf32>
    %351 = vector.broadcast %350 : vector<16x1xf32> to vector<16x128xf32>
    %352 = arith.subf %342, %351 : vector<16x128xf32>
    %353 = arith.mulf %352, %352 : vector<16x128xf32>
    %cst_155 = arith.constant dense<0.000000e+00> : vector<16xf32>
    %354 = vector.multi_reduction <add>, %353, %cst_155 [1] : vector<16x128xf32> to vector<16xf32>
    %355 = vector.shape_cast %354 : vector<16xf32> to vector<16x1xf32>
    %cst_156 = arith.constant 1.280000e+02 : f32
    %356 = vector.broadcast %cst_156 : f32 to vector<16x1xf32>
    %357 = arith.divf %355, %356 : vector<16x1xf32>
    %358 = vector.broadcast %350 : vector<16x1xf32> to vector<16x128xf32>
    %359 = arith.subf %342, %358 : vector<16x128xf32>
    %cst_157 = arith.constant 9.99999996E-13 : f32
    %360 = vector.broadcast %cst_157 : f32 to vector<16x1xf32>
    %361 = arith.addf %357, %360 : vector<16x1xf32>
    %362 = math.rsqrt %361 : vector<16x1xf32>
    %363 = vector.broadcast %362 : vector<16x1xf32> to vector<16x128xf32>
    %364 = arith.mulf %359, %363 : vector<16x128xf32>
    %365 = vector.broadcast %344 : vector<1x128xf32> to vector<16x128xf32>
    %366 = arith.mulf %364, %365 : vector<16x128xf32>
    %367 = vector.broadcast %346 : vector<1x128xf32> to vector<16x128xf32>
    %368 = arith.addf %366, %367 : vector<16x128xf32>
    %c1_158 = arith.constant 1 : index
    %c0_159 = arith.constant 0 : index
    %c0_160 = arith.constant 0 : index
    %369 = vector.load %arg11[%c1_158, %c0_159, %c0_160] : memref<2x128x256xbf16, #tpu.memory_space<vmem>>, vector<1x128x256xbf16>
    %370 = vector.shape_cast %369 : vector<1x128x256xbf16> to vector<128x256xbf16>
    %c1_161 = arith.constant 1 : index
    %c0_162 = arith.constant 0 : index
    %c0_163 = arith.constant 0 : index
    %371 = vector.load %arg12[%c1_161, %c0_162, %c0_163] : memref<2x1x256xf32, #tpu.memory_space<vmem>>, vector<1x1x256xf32>
    %372 = vector.shape_cast %371 : vector<1x1x256xf32> to vector<1x256xf32>
    %373 = arith.truncf %368 : vector<16x128xf32> to vector<16x128xbf16>
    %cst_164 = arith.constant dense<0.000000e+00> : vector<16x256xf32>
    %374 = tpu.matmul %373, %370, %cst_164 {dimension_numbers = #tpu.dot_dimension_numbers<[1], [0], [0], [1], [0, 0, 1, 1], [], []>} : vector<16x128xbf16>, vector<128x256xbf16>, vector<16x256xf32> -> vector<16x256xf32>
    %375 = vector.broadcast %372 : vector<1x256xf32> to vector<16x256xf32>
    %376 = arith.addf %374, %375 : vector<16x256xf32>
    %377 = arith.mulf %376, %376 : vector<16x256xf32>
    %378 = arith.mulf %376, %377 : vector<16x256xf32>
    %cst_165 = arith.constant 4.471500e-02 : f32
    %379 = vector.broadcast %cst_165 : f32 to vector<16x256xf32>
    %380 = arith.mulf %379, %378 : vector<16x256xf32>
    %381 = arith.addf %376, %380 : vector<16x256xf32>
    %cst_166 = arith.constant 0.797884583 : f32
    %382 = vector.broadcast %cst_166 : f32 to vector<16x256xf32>
    %383 = arith.mulf %382, %381 : vector<16x256xf32>
    %384 = math.tanh %383 : vector<16x256xf32>
    %cst_167 = arith.constant 1.000000e+00 : f32
    %385 = vector.broadcast %cst_167 : f32 to vector<16x256xf32>
    %386 = arith.addf %385, %384 : vector<16x256xf32>
    %cst_168 = arith.constant 5.000000e-01 : f32
    %387 = vector.broadcast %cst_168 : f32 to vector<16x256xf32>
    %388 = arith.mulf %387, %386 : vector<16x256xf32>
    %389 = arith.mulf %376, %388 : vector<16x256xf32>
    %c1_169 = arith.constant 1 : index
    %c0_170 = arith.constant 0 : index
    %c0_171 = arith.constant 0 : index
    %390 = vector.load %arg13[%c1_169, %c0_170, %c0_171] : memref<2x256x128xbf16, #tpu.memory_space<vmem>>, vector<1x256x128xbf16>
    %391 = vector.shape_cast %390 : vector<1x256x128xbf16> to vector<256x128xbf16>
    %c1_172 = arith.constant 1 : index
    %c0_173 = arith.constant 0 : index
    %c0_174 = arith.constant 0 : index
    %392 = vector.load %arg14[%c1_172, %c0_173, %c0_174] : memref<2x1x128xf32, #tpu.memory_space<vmem>>, vector<1x1x128xf32>
    %393 = vector.shape_cast %392 : vector<1x1x128xf32> to vector<1x128xf32>
    %394 = arith.truncf %389 : vector<16x256xf32> to vector<16x256xbf16>
    %cst_175 = arith.constant dense<0.000000e+00> : vector<16x128xf32>
    %395 = tpu.matmul %394, %391, %cst_175 {dimension_numbers = #tpu.dot_dimension_numbers<[1], [0], [0], [1], [0, 0, 1, 1], [], []>} : vector<16x256xbf16>, vector<256x128xbf16>, vector<16x128xf32> -> vector<16x128xf32>
    %396 = vector.broadcast %393 : vector<1x128xf32> to vector<16x128xf32>
    %397 = arith.addf %395, %396 : vector<16x128xf32>
    %398 = arith.addf %368, %397 : vector<16x128xf32>
    %c1_176 = arith.constant 1 : index
    %c0_177 = arith.constant 0 : index
    %c0_178 = arith.constant 0 : index
    %399 = vector.load %arg15[%c1_176, %c0_177, %c0_178] : memref<2x1x128xf32, #tpu.memory_space<vmem>>, vector<1x1x128xf32>
    %400 = vector.shape_cast %399 : vector<1x1x128xf32> to vector<1x128xf32>
    %c1_179 = arith.constant 1 : index
    %c0_180 = arith.constant 0 : index
    %c0_181 = arith.constant 0 : index
    %401 = vector.load %arg16[%c1_179, %c0_180, %c0_181] : memref<2x1x128xf32, #tpu.memory_space<vmem>>, vector<1x1x128xf32>
    %402 = vector.shape_cast %401 : vector<1x1x128xf32> to vector<1x128xf32>
    %cst_182 = arith.constant dense<0.000000e+00> : vector<16xf32>
    %403 = vector.multi_reduction <add>, %398, %cst_182 [1] : vector<16x128xf32> to vector<16xf32>
    %404 = vector.shape_cast %403 : vector<16xf32> to vector<16x1xf32>
    %cst_183 = arith.constant 1.280000e+02 : f32
    %405 = vector.broadcast %cst_183 : f32 to vector<16x1xf32>
    %406 = arith.divf %404, %405 : vector<16x1xf32>
    %407 = vector.broadcast %406 : vector<16x1xf32> to vector<16x128xf32>
    %408 = arith.subf %398, %407 : vector<16x128xf32>
    %409 = arith.mulf %408, %408 : vector<16x128xf32>
    %cst_184 = arith.constant dense<0.000000e+00> : vector<16xf32>
    %410 = vector.multi_reduction <add>, %409, %cst_184 [1] : vector<16x128xf32> to vector<16xf32>
    %411 = vector.shape_cast %410 : vector<16xf32> to vector<16x1xf32>
    %cst_185 = arith.constant 1.280000e+02 : f32
    %412 = vector.broadcast %cst_185 : f32 to vector<16x1xf32>
    %413 = arith.divf %411, %412 : vector<16x1xf32>
    %414 = vector.broadcast %406 : vector<16x1xf32> to vector<16x128xf32>
    %415 = arith.subf %398, %414 : vector<16x128xf32>
    %cst_186 = arith.constant 9.99999996E-13 : f32
    %416 = vector.broadcast %cst_186 : f32 to vector<16x1xf32>
    %417 = arith.addf %413, %416 : vector<16x1xf32>
    %418 = math.rsqrt %417 : vector<16x1xf32>
    %419 = vector.broadcast %418 : vector<16x1xf32> to vector<16x128xf32>
    %420 = arith.mulf %415, %419 : vector<16x128xf32>
    %421 = vector.broadcast %400 : vector<1x128xf32> to vector<16x128xf32>
    %422 = arith.mulf %420, %421 : vector<16x128xf32>
    %423 = vector.broadcast %402 : vector<1x128xf32> to vector<16x128xf32>
    %424 = arith.addf %422, %423 : vector<16x128xf32>
    %425 = vector.shape_cast %424 : vector<16x128xf32> to vector<2x8x128xf32>
    %426 = vector.extract_strided_slice %425 {offsets = [0, 0, 0], sizes = [2, 1, 128], strides = [1, 1, 1]} : vector<2x8x128xf32> to vector<2x1x128xf32>
    %427 = vector.shape_cast %426 : vector<2x1x128xf32> to vector<2x128xf32>
    %c0_187 = arith.constant 0 : index
    %c0_188 = arith.constant 0 : index
    %428 = vector.load %arg17[%c0_187, %c0_188] : memref<128x128xbf16, #tpu.memory_space<vmem>>, vector<128x128xbf16>
    %c0_189 = arith.constant 0 : index
    %c0_190 = arith.constant 0 : index
    %429 = vector.load %arg18[%c0_189, %c0_190] : memref<1x128xf32, #tpu.memory_space<vmem>>, vector<1x128xf32>
    %430 = arith.truncf %427 : vector<2x128xf32> to vector<2x128xbf16>
    %cst_191 = arith.constant dense<0.000000e+00> : vector<2x128xf32>
    %431 = tpu.matmul %430, %428, %cst_191 {dimension_numbers = #tpu.dot_dimension_numbers<[1], [0], [0], [1], [0, 0, 1, 1], [], []>} : vector<2x128xbf16>, vector<128x128xbf16>, vector<2x128xf32> -> vector<2x128xf32>
    %432 = vector.broadcast %429 : vector<1x128xf32> to vector<2x128xf32>
    %433 = arith.addf %431, %432 : vector<2x128xf32>
    %434 = math.tanh %433 : vector<2x128xf32>
    %c0_192 = arith.constant 0 : index
    %c0_193 = arith.constant 0 : index
    %435 = vector.load %arg19[%c0_192, %c0_193] : memref<128x128xbf16, #tpu.memory_space<vmem>>, vector<128x128xbf16>
    %c0_194 = arith.constant 0 : index
    %c0_195 = arith.constant 0 : index
    %436 = vector.load %arg20[%c0_194, %c0_195] : memref<1x128xf32, #tpu.memory_space<vmem>>, vector<1x128xf32>
    %437 = arith.truncf %434 : vector<2x128xf32> to vector<2x128xbf16>
    %cst_196 = arith.constant dense<0.000000e+00> : vector<2x128xf32>
    %438 = tpu.matmul %437, %435, %cst_196 {dimension_numbers = #tpu.dot_dimension_numbers<[1], [0], [0], [1], [0, 0, 1, 1], [], []>} : vector<2x128xbf16>, vector<128x128xbf16>, vector<2x128xf32> -> vector<2x128xf32>
    %439 = vector.broadcast %436 : vector<1x128xf32> to vector<2x128xf32>
    %440 = arith.addf %438, %439 : vector<2x128xf32>
    %441 = math.tanh %440 : vector<2x128xf32>
    %c0_197 = arith.constant 0 : index
    %c0_198 = arith.constant 0 : index
    %442 = vector.load %arg21[%c0_197, %c0_198] : memref<2x128xf32, #tpu.memory_space<vmem>>, vector<2x128xf32>
    tpu.vector_store %arg21[%c0_197, %c0_198], %441 {strides = array<i32>} : memref<2x128xf32, #tpu.memory_space<vmem>>, vector<2x128xf32>,
    return
  }
  func.func @transform_0(%arg0: i32) -> (i32, i32, i32) {
    %c0_i32 = arith.constant 0 : i32
    %c0_i32_0 = arith.constant 0 : i32
    %c0_i32_1 = arith.constant 0 : i32
    return %arg0, %c0_i32, %c0_i32_0 : i32, i32, i32
  }
  func.func @transform_1(%arg0: i32) -> (i32, i32, i32) {
    %c0_i32 = arith.constant 0 : i32
    %c0_i32_0 = arith.constant 0 : i32
    %c0_i32_1 = arith.constant 0 : i32
    return %arg0, %c0_i32, %c0_i32_0 : i32, i32, i32
  }
  func.func @transform_2(%arg0: i32) -> (i32, i32) {
    %c0_i32 = arith.constant 0 : i32
    %c0_i32_0 = arith.constant 0 : i32
    %c0_i32_1 = arith.constant 0 : i32
    return %c0_i32, %c0_i32_0 : i32, i32
  }
  func.func @transform_3(%arg0: i32) -> (i32, i32) {
    %c0_i32 = arith.constant 0 : i32
    %c0_i32_0 = arith.constant 0 : i32
    %c0_i32_1 = arith.constant 0 : i32
    return %c0_i32, %c0_i32_0 : i32, i32
  }
  func.func @transform_4(%arg0: i32) -> (i32, i32, i32) {
    %c0_i32 = arith.constant 0 : i32
    %c0_i32_0 = arith.constant 0 : i32
    %c0_i32_1 = arith.constant 0 : i32
    %c0_i32_2 = arith.constant 0 : i32
    return %c0_i32, %c0_i32_0, %c0_i32_1 : i32, i32, i32
  }
  func.func @transform_5(%arg0: i32) -> (i32, i32, i32) {
    %c0_i32 = arith.constant 0 : i32
    %c0_i32_0 = arith.constant 0 : i32
    %c0_i32_1 = arith.constant 0 : i32
    %c0_i32_2 = arith.constant 0 : i32
    return %c0_i32, %c0_i32_0, %c0_i32_1 : i32, i32, i32
  }
  func.func @transform_6(%arg0: i32) -> (i32, i32, i32) {
    %c0_i32 = arith.constant 0 : i32
    %c0_i32_0 = arith.constant 0 : i32
    %c0_i32_1 = arith.constant 0 : i32
    %c0_i32_2 = arith.constant 0 : i32
    return %c0_i32, %c0_i32_0, %c0_i32_1 : i32, i32, i32
  }
  func.func @transform_7(%arg0: i32) -> (i32, i32, i32) {
    %c0_i32 = arith.constant 0 : i32
    %c0_i32_0 = arith.constant 0 : i32
    %c0_i32_1 = arith.constant 0 : i32
    %c0_i32_2 = arith.constant 0 : i32
    return %c0_i32, %c0_i32_0, %c0_i32_1 : i32, i32, i32
  }
  func.func @transform_8(%arg0: i32) -> (i32, i32, i32) {
    %c0_i32 = arith.constant 0 : i32
    %c0_i32_0 = arith.constant 0 : i32
    %c0_i32_1 = arith.constant 0 : i32
    %c0_i32_2 = arith.constant 0 : i32
    return %c0_i32, %c0_i32_0, %c0_i32_1 : i32, i32, i32
  }
  func.func @transform_9(%arg0: i32) -> (i32, i32, i32) {
    %c0_i32 = arith.constant 0 : i32
    %c0_i32_0 = arith.constant 0 : i32
    %c0_i32_1 = arith.constant 0 : i32
    %c0_i32_2 = arith.constant 0 : i32
    return %c0_i32, %c0_i32_0, %c0_i32_1 : i32, i32, i32
  }
  func.func @transform_10(%arg0: i32) -> (i32, i32, i32) {
    %c0_i32 = arith.constant 0 : i32
    %c0_i32_0 = arith.constant 0 : i32
    %c0_i32_1 = arith.constant 0 : i32
    %c0_i32_2 = arith.constant 0 : i32
    return %c0_i32, %c0_i32_0, %c0_i32_1 : i32, i32, i32
  }
  func.func @transform_11(%arg0: i32) -> (i32, i32, i32) {
    %c0_i32 = arith.constant 0 : i32
    %c0_i32_0 = arith.constant 0 : i32
    %c0_i32_1 = arith.constant 0 : i32
    %c0_i32_2 = arith.constant 0 : i32
    return %c0_i32, %c0_i32_0, %c0_i32_1 : i32, i32, i32
  }
  func.func @transform_12(%arg0: i32) -> (i32, i32, i32) {
    %c0_i32 = arith.constant 0 : i32
    %c0_i32_0 = arith.constant 0 : i32
    %c0_i32_1 = arith.constant 0 : i32
    %c0_i32_2 = arith.constant 0 : i32
    return %c0_i32, %c0_i32_0, %c0_i32_1 : i32, i32, i32
  }
  func.func @transform_13(%arg0: i32) -> (i32, i32, i32) {
    %c0_i32 = arith.constant 0 : i32
    %c0_i32_0 = arith.constant 0 : i32
    %c0_i32_1 = arith.constant 0 : i32
    %c0_i32_2 = arith.constant 0 : i32
    return %c0_i32, %c0_i32_0, %c0_i32_1 : i32, i32, i32
  }
  func.func @transform_14(%arg0: i32) -> (i32, i32, i32) {
    %c0_i32 = arith.constant 0 : i32
    %c0_i32_0 = arith.constant 0 : i32
    %c0_i32_1 = arith.constant 0 : i32
    %c0_i32_2 = arith.constant 0 : i32
    return %c0_i32, %c0_i32_0, %c0_i32_1 : i32, i32, i32
  }
  func.func @transform_15(%arg0: i32) -> (i32, i32, i32) {
    %c0_i32 = arith.constant 0 : i32
    %c0_i32_0 = arith.constant 0 : i32
    %c0_i32_1 = arith.constant 0 : i32
    %c0_i32_2 = arith.constant 0 : i32
    return %c0_i32, %c0_i32_0, %c0_i32_1 : i32, i32, i32
  }
  func.func @transform_16(%arg0: i32) -> (i32, i32) {
    %c0_i32 = arith.constant 0 : i32
    %c0_i32_0 = arith.constant 0 : i32
    %c0_i32_1 = arith.constant 0 : i32
    return %c0_i32, %c0_i32_0 : i32, i32
  }
  func.func @transform_17(%arg0: i32) -> (i32, i32) {
    %c0_i32 = arith.constant 0 : i32
    %c0_i32_0 = arith.constant 0 : i32
    %c0_i32_1 = arith.constant 0 : i32
    return %c0_i32, %c0_i32_0 : i32, i32
  }
  func.func @transform_18(%arg0: i32) -> (i32, i32) {
    %c0_i32 = arith.constant 0 : i32
    %c0_i32_0 = arith.constant 0 : i32
    %c0_i32_1 = arith.constant 0 : i32
    return %c0_i32, %c0_i32_0 : i32, i32
  }
  func.func @transform_19(%arg0: i32) -> (i32, i32) {
    %c0_i32 = arith.constant 0 : i32
    %c0_i32_0 = arith.constant 0 : i32
    %c0_i32_1 = arith.constant 0 : i32
    return %c0_i32, %c0_i32_0 : i32, i32
  }
  func.func @transform_20(%arg0: i32) -> (i32, i32) {
    %c0_i32 = arith.constant 0 : i32
    %c0_i32_0 = arith.constant 0 : i32
    return %arg0, %c0_i32 : i32, i32
  }
}

</mosaic_0001>

<bundles_post_ra>
// kernel: _lambda_.1
= control target key start
LH: loop header
LB: loop body
LE: loop exit
PB: predicated region body
PF: predicated region fallthrough
CT: control target
= control target key end

     0   :  { %s6121_s0 = inlined_call_operand.vmem [shape: f32[2,8,128], index: 0, kind: input, shape index: {}]   ;;  %s6122_s1 = inlined_call_operand.vmem [shape: f32[2,1,8], index: 1, kind: input, shape index: {}]   ;;  %s6123_s2 = inlined_call_operand.vmem [shape: f32[1,128], index: 2, kind: input, shape index: {}]   ;;  %s6124_s3 = inlined_call_operand.vmem [shape: f32[1,128], index: 3, kind: input, shape index: {}, may-alias: {3,17,19}]   ;;  %s6125_s4 = inlined_call_operand.vmem [shape: bf16[2,128,384], index: 4, kind: input, shape index: {}]   ;;  %s6126_s5 = inlined_call_operand.vmem [shape: f32[2,1,384], index: 5, kind: input, shape index: {}]   ;;  %s6127_s6 = inlined_call_operand.vmem [shape: bf16[2,128,128], index: 6, kind: input, shape index: {}]   ;;  %s6128_s7 = inlined_call_operand.vmem [shape: f32[2,1,128], index: 7, kind: input, shape index: {}, may-alias: {7,9,13,15}]   ;;  %s6129_s8 = inlined_call_operand.vmem [shape: f32[2,1,128], index: 8, kind: input, shape index: {}, may-alias: {8,14}]   ;;  %s6130_s9 = inlined_call_operand.vmem [shape: f32[2,1,128], index: 9, kind: input, shape index: {}, may-alias: {7,9,13,15}]   ;;  %s6131_s10 = inlined_call_operand.vmem [shape: bf16[2,128,256], index: 10, kind: input, shape index: {}]   ;;  %s6132_s11 = inlined_call_operand.vmem [shape: f32[2,1,256], index: 11, kind: input, shape index: {}]   ;;  %s6133_s12 = inlined_call_operand.vmem [shape: bf16[2,256,128], index: 12, kind: input, shape index: {}]   ;;  %s6134_s13 = inlined_call_operand.vmem [shape: f32[2,1,128], index: 13, kind: input, shape index: {}, may-alias: {7,9,13,15}]   ;;  %s6135_s14 = inlined_call_operand.vmem [shape: f32[2,1,128], index: 14, kind: input, shape index: {}, may-alias: {8,14}]   ;;  %s6136_s15 = inlined_call_operand.vmem [shape: f32[2,1,128], index: 15, kind: input, shape index: {}, may-alias: {7,9,13,15}]   ;;  %s6137_s16 = inlined_call_operand.vmem [shape: bf16[128,128], index: 16, kind: input, shape index: {}]   ;;  %s6138_s17 = inlined_call_operand.vmem [shape: f32[1,128], index: 17, kind: input, shape index: {}, may-alias: {3,17,19}]   ;;  %s6139_s18 = inlined_call_operand.vmem [shape: bf16[128,128], index: 18, kind: input, shape index: {}]   ;;  %s6140_s19 = inlined_call_operand.vmem [shape: f32[1,128], index: 19, kind: input, shape index: {}, may-alias: {3,17,19}]   ;;  %s6141_s20 = inlined_call_operand.hbm [shape: f32[2,128], index: 20, kind: output, shape index: {}]  }
   0x1   :  { %6145 = sst [smem:[#allocation6_spill]] %s6121_s0 }
   0x2   :  { %6146 = sst [smem:[#allocation7_spill]] %s6122_s1 }
   0x3   :  { %6147 = sst [smem:[#allocation8_spill]] %s6123_s2 }
   0x4   :  { %6148 = sst [smem:[#allocation9_spill]] %s6124_s3 }
   0x5   :  { %6149 = sst [smem:[#allocation10_spill]] %s6125_s4 }
   0x6   :  { %s6150_s23 = sld [smem:[#allocation6_spill]]  ;;  %s6151_s26 = sld [smem:[#allocation10_spill]]  ;;  %v4988_v4 = vmov 0.0  }
   0x7   :  { %4363 = vmatprep.subr.bf16.mxu1 %v4988_v4 }
   0xc   :  { %v67_v0 = vld [vmem:[%s6150_s23] sm:$0xff]  ;;  %v68_v1 = vld [vmem:[%s6150_s23 + $0x8] sm:$0xff] }
   0xd   :  { %71 = vadd.xlane.f32.xlu0 %v67_v0  ;;  %v4682_v2 = vld [vmem:[%s6151_s26 + $0x4] ss:$12 sps:$4 sm:$0xff]   ;;  %v4684_v3 = vld [vmem:[%s6151_s26] ss:$12 sps:$4 sm:$0xff]   ;;  %v4685_v5 = vld [vmem:[%s6151_s26 + $0x8] ss:$12 sps:$4 sm:$0xff]  }
   0xe   :  { %v4686_v6 = vld [vmem:[%s6151_s26 + $0x1c] ss:$12 sps:$4 sm:$0xff]   ;;  %290 = vmatprep.subr.bf16.mxu0 %v4682_v2  ;;  %4364 = vmatpush3.bf16.msra.mxu1 %v4685_v5 }
   0xf   :  { %291 = vmatpush1.bf16.msra.mxu0 %v4684_v3  ;;  %4365 = vmatprep.subr.bf16.mxu1 %v4988_v4 }
  0x10   :  { %292 = vmatprep.subr.bf16.mxu0 %v4686_v6 }
  0x11   :  { %73 = vadd.xlane.f32.xlu0 %v68_v1 }
  0x12   :  { %25 = vsyncpa [#allocation4], 0  ;;  %v4688_v15 = vld [vmem:[%s6151_s26 + $0x18] ss:$12 sps:$4 sm:$0xff]   ;;  %v4689_v16 = vld [vmem:[%s6151_s26 + $0x20] ss:$12 sps:$4 sm:$0xff]   ;;  %v147_v53 = vlaneseq }
  0x13   :  { %293 = vmatpush1.bf16.msra.mxu0 %v4688_v15  ;;  %4366 = vmatpush3.bf16.msra.mxu1 %v4689_v16  ;;  %v4690_v17 = vld [vmem:[%s6151_s26 + $0x34] ss:$12 sps:$4 sm:$0xff]   ;;  %v4692_v18 = vld [vmem:[%s6151_s26 + $0x30] ss:$12 sps:$4 sm:$0xff]   ;;  %v4693_v19 = vld [vmem:[%s6151_s26 + $0x38] ss:$12 sps:$4 sm:$0xff]  }
  0x14   :  { %4367 = vmatprep.subr.bf16.mxu1 %v4988_v4  ;;  %294 = vmatprep.subr.bf16.mxu0 %v4690_v17  ;;  %v4694_v20 = vld [vmem:[%s6151_s26 + $0x4c] ss:$12 sps:$4 sm:$0xff]   ;;  %v4696_v21 = vld [vmem:[%s6151_s26 + $0x48] ss:$12 sps:$4 sm:$0xff]   ;;  %v4697_v22 = vld [vmem:[%s6151_s26 + $0x50] ss:$12 sps:$4 sm:$0xff]  }
  0x15   :  { %v4698_v23 = vld [vmem:[%s6151_s26 + $0x64] ss:$12 sps:$4 sm:$0xff]   ;;  %v4700_v24 = vld [vmem:[%s6151_s26 + $0x60] ss:$12 sps:$4 sm:$0xff]   ;;  %v4701_v25 = vld [vmem:[%s6151_s26 + $0x68] ss:$12 sps:$4 sm:$0xff]  }
  0x16   :  { %v4702_v26 = vld [vmem:[%s6151_s26 + $0x7c] ss:$12 sps:$4 sm:$0xff]   ;;  %v4704_v27 = vld [vmem:[%s6151_s26 + $0x78] ss:$12 sps:$4 sm:$0xff]   ;;  %v4705_v28 = vld [vmem:[%s6151_s26 + $0x80] ss:$12 sps:$4 sm:$0xff]  }
  0x17   :  { %295 = vmatpush1.bf16.msra.mxu0 %v4692_v18  ;;  %4368 = vmatpush3.bf16.msra.mxu1 %v4693_v19  ;;  %v4706_v29 = vld [vmem:[%s6151_s26 + $0x94] ss:$12 sps:$4 sm:$0xff]   ;;  %v4989_v30 = vmov 0   ;;  %vm4990_vm0 = vmmov 0   ;;  %v4708_v31 = vld [vmem:[%s6151_s26 + $0x90] ss:$12 sps:$4 sm:$0xff]  }
  0x18   :  { %4369 = vmatprep.subr.bf16.mxu1 %v4988_v4  ;;  %296 = vmatprep.subr.bf16.mxu0 %v4694_v20  ;;  %v4709_v32 = vld [vmem:[%s6151_s26 + $0x98] ss:$12 sps:$4 sm:$0xff]   ;;  %v4712_v34 = vld [vmem:[%s6151_s26 + $0xa8] ss:$12 sps:$4 sm:$0xff]   ;;  %v4713_v35 = vld [vmem:[%s6151_s26 + $0xb0] ss:$12 sps:$4 sm:$0xff]  }
  0x19   :  { %322 = vmatprep.mubr.bf16.mxu0 %v4989_v30  ;;  %4379 = vmatprep.mubr.msk.bf16.mxu1 %vm4990_vm0, %v4988_v4  ;;  %v4710_v33 = vld [vmem:[%s6151_s26 + $0xac] ss:$12 sps:$4 sm:$0xff]   ;;  %s6152_s21 = sld [smem:[#allocation8_spill]]  ;;  %s6153_s23 = sld [smem:[#allocation9_spill]]  ;;  %v5217_v54 = vshrl.u32 %v147_v53, 7  ;;  %vm380_vm1 = vcmask 261120  }
  0x1a   :  { %v144_v56 = vld [vmem:[%s6126_s5] sm:$0x7]  ;;  %vm517_vm2 = vcmask 1043456   ;;  %s6154_s27 = sld [smem:[#allocation7_spill]]  ;;  %vm489_vm3 = vcmask 64512   ;;  %s4991_s29 = smov 96  }
  0x1b   :  { %297 = vmatpush1.bf16.msra.mxu0 %v4696_v21  ;;  %4370 = vmatpush3.bf16.msra.mxu1 %v4697_v22  ;;  %v5220_v55 = vsub.s32 1, %v5217_v54  ;;  %v157_v57 = vsub.s32 2, %v5217_v54  ;;  %v5228_v59 = vsub.s32 0, %v5217_v54  ;;  %s4992_s30 = smov 64   ;;  %s4993_s0 = smov 32   ;;  %vm847_vm4 = vcmask 523520  }
  0x1c   :  { %4371 = vmatprep.subr.bf16.mxu1 %v4988_v4  ;;  %298 = vmatprep.subr.bf16.mxu0 %v4698_v23  ;;  %vm1082_vm5 = vcmask 785920   ;;  %vm1317_vm6 = vcmask 1048320   ;;  %vm3682_vm7 = vcmask 1041409  }
  0x1d   :  { %v154_v58 = vrot.slane %v144_v56, %v5220_v55  ;;  %v158_v62 = vrot.slane %v144_v56, %v157_v57 }
  0x1f   :  { %299 = vmatpush1.bf16.msra.mxu0 %v4700_v24  ;;  %4372 = vmatpush3.bf16.msra.mxu1 %v4701_v25  ;;  %v3903_v44 = vld [vmem:[%s6152_s21] ss:$0 sm:$0xff] }
  0x20   :  { %300 = vmatprep.subr.bf16.mxu0 %v4702_v26  ;;  %4373 = vmatprep.subr.bf16.mxu1 %v4988_v4  ;;  %v3904_v48 = vld [vmem:[%s6153_s23] ss:$0 sm:$0xff] }
  0x21   :  { %v5265_v22 = vld [vmem:[%s6154_s27] ss:$0 sm:$0xff] }
  0x23   :  { %301 = vmatpush1.bf16.msra.mxu0 %v4704_v27  ;;  %4374 = vmatpush3.bf16.msra.mxu1 %v4705_v28 }
  0x24   :  { %302 = vmatprep.subr.bf16.mxu0 %v4706_v29  ;;  %4375 = vmatprep.subr.bf16.mxu1 %v4988_v4 }
  0x27   :  { %303 = vmatpush1.bf16.msra.mxu0 %v4708_v31  ;;  %4376 = vmatpush3.bf16.msra.mxu1 %v4709_v32  ;;  %v5272_v31 = vld [vmem:[%s6154_s27 + $0x1] ss:$0 sm:$0xff] }
  0x28   :  { %304 = vmatprep.subr.bf16.mxu0 %v4710_v33  ;;  %4377 = vmatprep.subr.bf16.mxu1 %v4988_v4 }
  0x2b   :  { %305 = vmatpush1.bf16.msra.mxu0 %v4712_v34  ;;  %4378 = vmatpush3.bf16.msra.mxu1 %v4713_v35 }
  0x2c   :  { %4383 = vmatprep.subr.bf16.mxu1 %v4988_v4  ;;  %4407 = vmatprep.subr.bf16.mxu0 %v4988_v4 }
  0x9a   :  { %v72_v7 = vpop.xlane.xlu0 %71 }
  0x9b   :  { %v76_v8 = vmul.f32 0.0078125, %v72_v7 }
  0x9d   :  { %v5120_v9 = vsub.f32 %v67_v0, %v76_v8  ;;  %v150_v8 = vrot.slane %v144_v56, %v5228_v59 }
  0x9e   :  { %v74_v10 = vpop.xlane.xlu0 %73 }
  0x9f   :  { %v77_v11 = vmul.f32 0.0078125, %v74_v10  ;;  %v80_v12 = vmul.f32 %v5120_v9, %v5120_v9 }
  0xa1   :  { %v5124_v13 = vsub.f32 %v68_v1, %v77_v11  ;;  %82 = vadd.xlane.f32.xlu1 %v80_v12 }
  0xa3   :  { %v81_v14 = vmul.f32 %v5124_v13, %v5124_v13 }
  0xa5   :  { %84 = vadd.xlane.f32.xlu1 %v81_v14 }
 0x12e   :  { %v83_v36 = vpop.xlane.xlu1 %82 }
 0x12f   :  { %v86_v37 = vmul.f32 0.0078125, %v83_v36 }
 0x131   :  { %v88_v38 = vadd.f32 1e-12, %v86_v37 }
 0x132   :  { %v85_v39 = vpop.xlane.xlu1 %84 }
 0x133   :  { %4858 = vrsqrt.f32 %v88_v38  ;;  %v87_v40 = vmul.f32 0.0078125, %v85_v39 }
 0x135   :  { %v89_v41 = vadd.f32 1e-12, %v87_v40 }
 0x137   :  { %4860 = vrsqrt.f32 %v89_v41 }
 0x13d   :  { %v4859_v42 = vpop.eup %4858 }
 0x13e   :  { %v92_v43 = vmul.f32 %v4859_v42, %v5120_v9 }
 0x140   :  { %v100_v47 = vmul.f32 %v3903_v44, %v92_v43 }
 0x141   :  { %v4861_v45 = vpop.eup %4860 }
 0x142   :  { %v93_v46 = vmul.f32 %v4861_v45, %v5124_v13  ;;  %v5207_v50 = vadd.f32 %v3904_v48, %v100_v47 }
 0x144   :  { %v101_v49 = vmul.f32 %v3903_v44, %v93_v46 }
 0x146   :  { %v5209_v51 = vadd.f32 %v3904_v48, %v101_v49 }
 0x148   :  { %v145_v52 = vpack.c.bf16 %v5209_v51, %v5207_v50 }
 0x14a   :  { %323 = vmatmul.mubr.bf16.vlgmr.msra.gmra.mrb[0].mxu0 %v145_v52  ;;  %4380 = vmatmul.mubr.bf16.vlgmr.msra.gmra.mrb[0].mxu1 %v145_v52 }
 0x14b   :  { %4385 = vmatprep.mubr.msk.bf16.mxu1 %vm4990_vm0, %v4988_v4  ;;  %4409 = vmatprep.mubr.msk.bf16.mxu0 %vm4990_vm0, %v4988_v4 }
 0x21d   :  { %v324_v60 = vpop.f32.mrb[0].mxu0  ;;  %v367_v61 = vpop.f32.mrb[0].mxu1 }
 0x21e   :  { %v326_v63 = vpop.f32.mrb[1].mxu0  ;;  %v4381_v0 = vpop.f32.mrb[1].mxu1  ;;  %v325_v12 = vadd.f32 %v324_v60, %v150_v8  ;;  %v368_v15 = vadd.f32 %v367_v61, %v158_v62 }
 0x21f   :  { %v327_v1 = vadd.f32 %v326_v63, %v154_v58  ;;  %v328_v2 = vpop.f32.mrb[2].mxu0  ;;  %v370_v3 = vpop.f32.mrb[2].mxu1 }
 0x220   :  { %v5232_v5 = vadd.f32 %v370_v3, %v158_v62  ;;  %v330_v6 = vpop.f32.mrb[3].mxu0  ;;  %v4382_v7 = vpop.f32.mrb[3].mxu1  ;;  %v5242_v14 = vpack.c.bf16 %v325_v12, %v325_v12  ;;  %v329_v17 = vadd.f32 %v328_v2, %v150_v8  ;;  %v5251_v18 = vpack.c.bf16 %v368_v15, %v368_v15 }
 0x221   :  { %v5235_v9 = vpack.c.bf16 %v327_v1, %v327_v1  ;;  %v331_v10 = vadd.f32 %v330_v6, %v154_v58 }
 0x222   :  { %v5253_v19 = vpack.c.bf16 %v329_v17, %v329_v17  ;;  %v519_v20 = vsel %vm517_vm2, %v5251_v18, 0  ;;  %v5290_v60 = vpack.c.bf16 %v5232_v5, %v5232_v5 }
 0x223   :  { %v385_v11 = vsel %vm380_vm1, %v5235_v9, 0  ;;  %v5240_v13 = vpack.c.bf16 %v331_v10, %v331_v10 }
 0x224   :  { %4384 = vmatpush3.bf16.xpose.msra.mxu1 %v385_v11  ;;  %v565_v0 = vsel %vm517_vm2, %v5290_v60, 0 }
 0x225   :  { %4389 = vmatprep.subr.bf16.mxu1 %v4988_v4  ;;  %v431_v16 = vsel %vm380_vm1, %v5240_v13, 0 }
 0x22b   :  { %4386 = vmatmul.mubr.msk.bf16.vlgmr.msra.gmra.mrb[4].mxu1 %vm380_vm1, %v5242_v14 }
 0x22c   :  { %4390 = vmatpush3.bf16.xpose.msra.mxu1 %v431_v16  ;;  %4391 = vmatprep.mubr.msk.bf16.mxu1 %vm4990_vm0, %v4988_v4 }
 0x22d   :  { %4395 = vmatprep.subr.bf16.mxu1 %v4988_v4 }
 0x233   :  { %4392 = vmatmul.mubr.msk.bf16.vlgmr.msra.gmra.mrb[8].mxu1 %vm380_vm1, %v5253_v19 }
 0x234   :  { %4396 = vmatpush3.bf16.msra.mxu1 %v519_v20  ;;  %4397 = vmatprep.mubr.msk.bf16.mxu1 %vm4990_vm0, %v4988_v4 }
 0x235   :  { %4401 = vmatprep.subr.bf16.mxu1 %v4988_v4 }
 0x2fe   :  { %v421_v21 = vpop.f32.mrb[4].mxu1 }
 0x2ff   :  { %v473_v23 = vmul.f32 0.17677669, %v421_v21  ;;  %v4387_v24 = vpop.f32.mrb[5].mxu1 }
 0x300   :  { %v424_v25 = vpop.f32.mrb[6].mxu1 }
 0x301   :  { %v4388_v26 = vpop.f32.mrb[7].mxu1  ;;  %v487_v27 = vadd.f32 %v5265_v22, %v473_v23 }
 0x303   :  { %v490_v28 = vsel %vm489_vm3, %v487_v27, -inf }
 0x304   :  { %491 = vmax.xlane.f32.xlu0 %v490_v28 }
 0x306   :  { %v467_v29 = vpop.f32.mrb[8].mxu1 }
 0x307   :  { %v474_v32 = vmul.f32 0.17677669, %v467_v29  ;;  %v4393_v33 = vpop.f32.mrb[9].mxu1 }
 0x308   :  { %v470_v34 = vpop.f32.mrb[10].mxu1 }
 0x309   :  { %v4394_v35 = vpop.f32.mrb[11].mxu1  ;;  %v488_v36 = vadd.f32 %v5272_v31, %v474_v32 }
 0x30b   :  { %v493_v37 = vsel %vm489_vm3, %v488_v36, -inf }
 0x30c   :  { %494 = vmax.xlane.f32.xlu1 %v493_v37 }
 0x31d   :  { %665 = vrot.lane.b32.xlu1 %v5240_v13, %s4991_s29 }
 0x391   :  { %v492_v38 = vpop.xlane.xlu0 %491 }
 0x392   :  { %v496_v39 = vsub.f32 %v487_v27, %v492_v38 }
 0x394   :  { %v498_v40 = vmul.f32 1.442695, %v496_v39 }
 0x396   :  { %4862 = vpow2.f32 %v498_v40 }
 0x399   :  { %v495_v41 = vpop.xlane.xlu1 %494 }
 0x39a   :  { %v497_v42 = vsub.f32 %v488_v36, %v495_v41 }
 0x39c   :  { %v500_v43 = vmul.f32 1.442695, %v497_v42 }
 0x39d   :  { %v666_v49 = vpop.permute.xlu1 %665 }
 0x39e   :  { %4864 = vpow2.f32 %v500_v43  ;;  %v671_v5 = vsel %vm380_vm1, %v666_v49, 0 }
 0x3a0   :  { %v4863_v44 = vpop.eup %4862 }
 0x3a1   :  { %v502_v45 = vsel %vm489_vm3, %v4863_v44, 0.0 }
 0x3a2   :  { %503 = vadd.xlane.f32.xlu0 %v502_v45 }
 0x3a8   :  { %v4865_v46 = vpop.eup %4864 }
 0x3a9   :  { %v505_v47 = vsel %vm489_vm3, %v4865_v46, 0.0 }
 0x3aa   :  { %506 = vadd.xlane.f32.xlu1 %v505_v47 }
 0x3b8   :  { %613 = vrot.lane.b32.xlu0 %v5235_v9, %s4991_s29 }
 0x3bb   :  { %610 = vrot.lane.b32.xlu1 %v5242_v14, %s4991_s29 }
 0x3bf   :  { %662 = vrot.lane.b32.xlu1 %v5253_v19, %s4991_s29 }
 0x42f   :  { %v504_v48 = vpop.xlane.xlu0 %503 }
 0x430   :  { %4866 = vrcp.f32 %v504_v48 }
 0x433   :  { %v614_v52 = vpop.permute.xlu0 %613 }
 0x434   :  { %v619_v53 = vsel %vm380_vm1, %v614_v52, 0 }
 0x435   :  { %4408 = vmatpush3.bf16.xpose.msra.mxu0 %v619_v53 }
 0x436   :  { %4419 = vmatprep.subr.bf16.mxu0 %v4988_v4 }
 0x437   :  { %v507_v56 = vpop.xlane.xlu1 %506 }
 0x438   :  { %4868 = vrcp.f32 %v507_v56 }
 0x43a   :  { %v4867_v58 = vpop.eup %4866 }
 0x43b   :  { %v509_v61 = vmul.f32 %v4867_v58, %v4863_v44  ;;  %v611_v62 = vpop.permute.xlu1 %610 }
 0x43c   :  { %4410 = vmatmul.mubr.msk.bf16.vlgmr.msra.gmra.mrb[4].mxu0 %vm380_vm1, %v611_v62 }
 0x43d   :  { %v512_v63 = vpack.c.bf16 %v509_v61, %v509_v61  ;;  %4421 = vmatprep.mubr.msk.bf16.mxu0 %vm4990_vm0, %v4988_v4 }
 0x43f   :  { %4398 = vmatmul.mubr.msk.bf16.vlgmr.msra.gmra.mrb[12].mxu1 %vm489_vm3, %v512_v63  ;;  %v663_v6 = vpop.permute.xlu1 %662 }
 0x440   :  { %4402 = vmatpush3.bf16.msra.mxu1 %v565_v0  ;;  %4403 = vmatprep.mubr.msk.bf16.mxu1 %vm4990_vm0, %v4988_v4 }
 0x441   :  { %4413 = vmatprep.subr.bf16.mxu1 %v4988_v4 }
 0x442   :  { %v4869_v1 = vpop.eup %4868 }
 0x443   :  { %v511_v2 = vmul.f32 %v4869_v1, %v4865_v46 }
 0x445   :  { %v513_v3 = vpack.c.bf16 %v511_v2, %v511_v2 }
 0x447   :  { %4404 = vmatmul.mubr.msk.bf16.vlgmr.msra.gmra.mrb[16].mxu1 %vm489_vm3, %v513_v3 }
 0x448   :  { %4415 = vmatprep.mubr.msk.bf16.mxu1 %vm4990_vm0, %v4988_v4 }
 0x449   :  { %4414 = vmatpush3.bf16.xpose.msra.mxu1 %v671_v5 }
 0x44a   :  { %4425 = vmatprep.subr.bf16.mxu1 %v4988_v4 }
 0x450   :  { %4416 = vmatmul.mubr.msk.bf16.vlgmr.msra.gmra.mrb[20].mxu1 %vm380_vm1, %v663_v6 }
 0x451   :  { %4427 = vmatprep.mubr.msk.bf16.mxu1 %vm4990_vm0, %v4988_v4 }
 0x50f   :  { %v655_v7 = vpop.f32.mrb[4].mxu0 }
 0x510   :  { %v713_v8 = vmul.f32 0.17677669, %v655_v7  ;;  %v4411_v10 = vpop.f32.mrb[5].mxu0 }
 0x511   :  { %v658_v11 = vpop.f32.mrb[6].mxu0 }
 0x512   :  { %v555_v12 = vpop.f32.mrb[12].mxu1  ;;  %v4412_v15 = vpop.f32.mrb[7].mxu0  ;;  %v715_v16 = vadd.f32 %v5265_v22, %v713_v8 }
 0x513   :  { %607 = vst.msk [vmem:[#allocation2] sm:$0xff] %vm380_vm1, %v555_v12  ;;  %v4399_v17 = vpop.f32.mrb[13].mxu1 }
 0x514   :  { %v558_v20 = vpop.f32.mrb[14].mxu1  ;;  %v717_v21 = vsel %vm489_vm3, %v715_v16, -inf }
 0x515   :  { %718 = vmax.xlane.f32.xlu0 %v717_v21  ;;  %v4400_v23 = vpop.f32.mrb[15].mxu1 }
 0x51a   :  { %v601_v24 = vpop.f32.mrb[16].mxu1 }
 0x51b   :  { %608 = vst.msk [vmem:[#allocation2 + $0x8] sm:$0xff] %vm380_vm1, %v601_v24  ;;  %v4405_v25 = vpop.f32.mrb[17].mxu1 }
 0x51c   :  { %v604_v26 = vpop.f32.mrb[18].mxu1 }
 0x51d   :  { %v4406_v27 = vpop.f32.mrb[19].mxu1 }
 0x523   :  { %v707_v28 = vpop.f32.mrb[20].mxu1 }
 0x524   :  { %v714_v29 = vmul.f32 0.17677669, %v707_v28  ;;  %v4417_v32 = vpop.f32.mrb[21].mxu1 }
 0x525   :  { %v710_v33 = vpop.f32.mrb[22].mxu1 }
 0x526   :  { %v4418_v34 = vpop.f32.mrb[23].mxu1  ;;  %v716_v35 = vadd.f32 %v5272_v31, %v714_v29 }
 0x528   :  { %v720_v36 = vsel %vm489_vm3, %v716_v35, -inf }
 0x529   :  { %721 = vmax.xlane.f32.xlu1 %v720_v36 }
 0x53a   :  { %791 = vrot.lane.b32.xlu1 %v5290_v60, %s4991_s29 }
 0x53e   :  { %852 = vrot.lane.b32.xlu1 %v5235_v9, %s4992_s30 }
 0x542   :  { %902 = vrot.lane.b32.xlu1 %v5240_v13, %s4992_s30 }
 0x546   :  { %900 = vrot.lane.b32.xlu1 %v5253_v19, %s4992_s30 }
 0x5a2   :  { %v719_v37 = vpop.xlane.xlu0 %718 }
 0x5a3   :  { %v723_v38 = vsub.f32 %v715_v16, %v719_v37 }
 0x5a5   :  { %v725_v39 = vmul.f32 1.442695, %v723_v38 }
 0x5a7   :  { %4870 = vpow2.f32 %v725_v39 }
 0x5b1   :  { %v4871_v40 = vpop.eup %4870 }
 0x5b2   :  { %v729_v41 = vsel %vm489_vm3, %v4871_v40, 0.0 }
 0x5b3   :  { %730 = vadd.xlane.f32.xlu0 %v729_v41 }
 0x5b6   :  { %v722_v42 = vpop.xlane.xlu1 %721 }
 0x5b7   :  { %v724_v43 = vsub.f32 %v716_v35, %v722_v42 }
 0x5b9   :  { %v727_v44 = vmul.f32 1.442695, %v724_v43 }
 0x5ba   :  { %v792_v45 = vpop.permute.xlu1 %791 }
 0x5bb   :  { %4872 = vpow2.f32 %v727_v44  ;;  %v797_v46 = vsel %vm517_vm2, %v792_v45, 0 }
 0x5bc   :  { %4426 = vmatpush3.bf16.msra.mxu1 %v797_v46 }
 0x5bd   :  { %4437 = vmatprep.subr.bf16.mxu1 %v4988_v4 }
 0x5be   :  { %v853_v62 = vpop.permute.xlu1 %852 }
 0x5bf   :  { %v858_v3 = vsel %vm380_vm1, %v853_v62, 0 }
 0x5c2   :  { %v903_v2 = vpop.permute.xlu1 %902 }
 0x5c3   :  { %v908_v6 = vsel %vm380_vm1, %v903_v2, 0 }
 0x5c5   :  { %v4873_v47 = vpop.eup %4872 }
 0x5c6   :  { %v732_v48 = vsel %vm489_vm3, %v4873_v47, 0.0  ;;  %v901_v8 = vpop.permute.xlu1 %900 }
 0x5c7   :  { %733 = vadd.xlane.f32.xlu0 %v732_v48 }
 0x5dd   :  { %742 = vrot.lane.b32.xlu0 %v5251_v18, %s4991_s29 }
 0x5e1   :  { %850 = vrot.lane.b32.xlu0 %v5242_v14, %s4992_s30 }
 0x640   :  { %v731_v49 = vpop.xlane.xlu0 %730 }
 0x641   :  { %4874 = vrcp.f32 %v731_v49 }
 0x64b   :  { %v4875_v52 = vpop.eup %4874 }
 0x64c   :  { %v736_v56 = vmul.f32 %v4875_v52, %v4871_v40 }
 0x64e   :  { %v739_v63 = vpack.c.bf16 %v736_v56, %v736_v56 }
 0x654   :  { %v734_v53 = vpop.xlane.xlu0 %733 }
 0x655   :  { %4876 = vrcp.f32 %v734_v53 }
 0x658   :  { %v743_v58 = vpop.permute.xlu0 %742 }
 0x659   :  { %v748_v61 = vsel %vm517_vm2, %v743_v58, 0 }
 0x65a   :  { %4420 = vmatpush3.bf16.msra.mxu0 %v748_v61 }
 0x65b   :  { %4431 = vmatprep.subr.bf16.mxu0 %v4988_v4 }
 0x65c   :  { %v851_v7 = vpop.permute.xlu0 %850 }
 0x65d   :  { %4422 = vmatmul.mubr.msk.bf16.vlgmr.msra.gmra.mrb[8].mxu0 %vm489_vm3, %v739_v63 }
 0x65e   :  { %4433 = vmatprep.mubr.msk.bf16.mxu0 %vm4990_vm0, %v4988_v4 }
 0x65f   :  { %v4877_v0 = vpop.eup %4876 }
 0x660   :  { %v738_v1 = vmul.f32 %v4877_v0, %v4873_v47 }
 0x662   :  { %v740_v5 = vpack.c.bf16 %v738_v1, %v738_v1 }
 0x663   :  { %4432 = vmatpush3.bf16.xpose.msra.mxu0 %v858_v3 }
 0x664   :  { %4428 = vmatmul.mubr.msk.bf16.vlgmr.msra.gmra.mrb[24].mxu1 %vm489_vm3, %v740_v5  ;;  %4443 = vmatprep.subr.bf16.mxu0 %v4988_v4 }
 0x665   :  { %4438 = vmatpush3.bf16.xpose.msra.mxu1 %v908_v6  ;;  %4439 = vmatprep.mubr.msk.bf16.mxu1 %vm4990_vm0, %v4988_v4 }
 0x666   :  { %4449 = vmatprep.subr.bf16.mxu1 %v4988_v4 }
 0x66a   :  { %4434 = vmatmul.mubr.msk.bf16.vlgmr.msra.gmra.mrb[12].mxu0 %vm380_vm1, %v851_v7 }
 0x66b   :  { %4445 = vmatprep.mubr.msk.bf16.mxu0 %vm4990_vm0, %v4988_v4 }
 0x66c   :  { %4440 = vmatmul.mubr.msk.bf16.vlgmr.msra.gmra.mrb[28].mxu1 %vm380_vm1, %v901_v8 }
 0x66d   :  { %4451 = vmatprep.mubr.msk.bf16.mxu1 %vm4990_vm0, %v4988_v4 }
 0x730   :  { %v5349_v10 = vpop.f32.mrb[8].mxu0 }
 0x731   :  { %v4423_v11 = vpop.f32.mrb[9].mxu0 }
 0x732   :  { %v787_v12 = vpop.f32.mrb[10].mxu0 }
 0x733   :  { %v4424_v15 = vpop.f32.mrb[11].mxu0 }
 0x737   :  { %v5351_v16 = vpop.f32.mrb[24].mxu1 }
 0x738   :  { %v4429_v17 = vpop.f32.mrb[25].mxu1 }
 0x739   :  { %v836_v20 = vpop.f32.mrb[26].mxu1 }
 0x73a   :  { %v4430_v21 = vpop.f32.mrb[27].mxu1 }
 0x73d   :  { %v894_v23 = vpop.f32.mrb[12].mxu0 }
 0x73e   :  { %v950_v24 = vmul.f32 0.17677669, %v894_v23  ;;  %v4435_v25 = vpop.f32.mrb[13].mxu0 }
 0x73f   :  { %v897_v26 = vpop.f32.mrb[14].mxu0  ;;  %v944_v27 = vpop.f32.mrb[28].mxu1 }
 0x740   :  { %v951_v28 = vmul.f32 0.17677669, %v944_v27  ;;  %v4436_v29 = vpop.f32.mrb[15].mxu0  ;;  %v4441_v32 = vpop.f32.mrb[29].mxu1  ;;  %v952_v33 = vadd.f32 %v5265_v22, %v950_v24 }
 0x741   :  { %v947_v34 = vpop.f32.mrb[30].mxu1 }
 0x742   :  { %v4442_v35 = vpop.f32.mrb[31].mxu1  ;;  %v954_v36 = vsel %vm489_vm3, %v952_v33, -inf  ;;  %v953_v37 = vadd.f32 %v5272_v31, %v951_v28 }
 0x743   :  { %955 = vmax.xlane.f32.xlu0 %v954_v36 }
 0x744   :  { %v957_v38 = vsel %vm489_vm3, %v953_v37, -inf }
 0x745   :  { %958 = vmax.xlane.f32.xlu1 %v957_v38 }
 0x756   :  { %1026 = vrot.lane.b32.xlu1 %v5290_v60, %s4992_s30 }
 0x75a   :  { %1087 = vrot.lane.b32.xlu1 %v5235_v9, %s4993_s0 }
 0x75e   :  { %1137 = vrot.lane.b32.xlu1 %v5240_v13, %s4993_s0 }
 0x762   :  { %1135 = vrot.lane.b32.xlu1 %v5253_v19, %s4993_s0 }
 0x7d0   :  { %v956_v39 = vpop.xlane.xlu0 %955 }
 0x7d1   :  { %v960_v40 = vsub.f32 %v952_v33, %v956_v39 }
 0x7d2   :  { %v959_v41 = vpop.xlane.xlu1 %958 }
 0x7d3   :  { %v962_v42 = vmul.f32 1.442695, %v960_v40  ;;  %v961_v43 = vsub.f32 %v953_v37, %v959_v41 }
 0x7d5   :  { %4878 = vpow2.f32 %v962_v42  ;;  %v964_v44 = vmul.f32 1.442695, %v961_v43 }
 0x7d6   :  { %v1027_v45 = vpop.permute.xlu1 %1026 }
 0x7d7   :  { %4880 = vpow2.f32 %v964_v44  ;;  %v1032_v46 = vsel %vm517_vm2, %v1027_v45, 0 }
 0x7d8   :  { %4450 = vmatpush3.bf16.msra.mxu1 %v1032_v46 }
 0x7d9   :  { %4461 = vmatprep.subr.bf16.mxu1 %v4988_v4 }
 0x7da   :  { %v1088_v58 = vpop.permute.xlu1 %1087 }
 0x7de   :  { %v1138_v1 = vpop.permute.xlu1 %1137 }
 0x7df   :  { %v4879_v9 = vpop.eup %4878  ;;  %v1143_v3 = vsel %vm380_vm1, %v1138_v1, 0  ;;  %v4716_v1 = vld [vmem:[%s6127_s6 + $0x10] sm:$0xff]  }
 0x7e0   :  { %v966_v13 = vsel %vm489_vm3, %v4879_v9, 0.0 }
 0x7e1   :  { %v4881_v47 = vpop.eup %4880  ;;  %967 = vadd.xlane.f32.xlu0 %v966_v13 }
 0x7e2   :  { %v969_v19 = vsel %vm489_vm3, %v4881_v47, 0.0  ;;  %v1136_v6 = vpop.permute.xlu1 %1135 }
 0x7e5   :  { %970 = vadd.xlane.f32.xlu0 %v969_v19 }
 0x7fb   :  { %978 = vrot.lane.b32.xlu0 %v5251_v18, %s4992_s30 }
 0x7ff   :  { %1085 = vrot.lane.b32.xlu0 %v5242_v14, %s4993_s0  ;;  %v1093_v14 = vsel %vm380_vm1, %v1088_v58, 0 }
 0x86e   :  { %v968_v48 = vpop.xlane.xlu0 %967 }
 0x86f   :  { %4882 = vrcp.f32 %v968_v48 }
 0x872   :  { %v971_v49 = vpop.xlane.xlu0 %970 }
 0x873   :  { %4884 = vrcp.f32 %v971_v49 }
 0x876   :  { %v979_v52 = vpop.permute.xlu0 %978 }
 0x877   :  { %v984_v53 = vsel %vm517_vm2, %v979_v52, 0 }
 0x878   :  { %4444 = vmatpush3.bf16.msra.mxu0 %v984_v53 }
 0x879   :  { %v4883_v56 = vpop.eup %4882  ;;  %4455 = vmatprep.subr.bf16.mxu0 %v4988_v4 }
 0x87a   :  { %v973_v61 = vmul.f32 %v4883_v56, %v4879_v9  ;;  %v1086_v5 = vpop.permute.xlu0 %1085 }
 0x87c   :  { %v976_v62 = vpack.c.bf16 %v973_v61, %v973_v61 }
 0x87d   :  { %v4885_v63 = vpop.eup %4884 }
 0x87e   :  { %v975_v0 = vmul.f32 %v4885_v63, %v4881_v47  ;;  %4446 = vmatmul.mubr.msk.bf16.vlgmr.msra.gmra.mrb[16].mxu0 %vm489_vm3, %v976_v62  ;;  %v4714_v63 = vld [vmem:[%s6127_s6] sm:$0xff]  }
 0x87f   :  { %4457 = vmatprep.mubr.msk.bf16.mxu0 %vm4990_vm0, %v4988_v4 }
 0x880   :  { %v977_v2 = vpack.c.bf16 %v975_v0, %v975_v0  ;;  %v4715_v0 = vld [vmem:[%s6127_s6 + $0x8] sm:$0xff]  }
 0x881   :  { %4456 = vmatpush3.bf16.xpose.msra.mxu0 %v1093_v14  ;;  %v4717_v14 = vld [vmem:[%s6127_s6 + $0x18] sm:$0xff]  }
 0x882   :  { %4452 = vmatmul.mubr.msk.bf16.vlgmr.msra.gmra.mrb[32].mxu1 %vm489_vm3, %v977_v2  ;;  %4467 = vmatprep.subr.bf16.mxu0 %v4988_v4  ;;  %v4718_v2 = vld [vmem:[%s6127_s6 + $0x20] sm:$0xff]  }
 0x883   :  { %4462 = vmatpush3.bf16.xpose.msra.mxu1 %v1143_v3  ;;  %4463 = vmatprep.mubr.msk.bf16.mxu1 %vm4990_vm0, %v4988_v4  ;;  %v4719_v3 = vld [vmem:[%s6127_s6 + $0x28] sm:$0xff]  }
 0x884   :  { %4473 = vmatprep.subr.bf16.mxu1 %v4988_v4 }
 0x888   :  { %4458 = vmatmul.mubr.msk.bf16.vlgmr.msra.gmra.mrb[20].mxu0 %vm380_vm1, %v1086_v5  ;;  %v4720_v5 = vld [vmem:[%s6127_s6 + $0x30] sm:$0xff]  }
 0x889   :  { %4469 = vmatprep.mubr.msk.bf16.mxu0 %vm4990_vm0, %v4988_v4 }
 0x88a   :  { %4464 = vmatmul.mubr.msk.bf16.vlgmr.msra.gmra.mrb[36].mxu1 %vm380_vm1, %v1136_v6  ;;  %v4721_v6 = vld [vmem:[%s6127_s6 + $0x38] sm:$0xff]  }
 0x88b   :  { %4475 = vmatprep.mubr.msk.bf16.mxu1 %vm4990_vm0, %v4988_v4 }
 0x951   :  { %v1020_v7 = vpop.f32.mrb[16].mxu0 }
 0x952   :  { %v4447_v8 = vpop.f32.mrb[17].mxu0 }
 0x953   :  { %v1023_v11 = vpop.f32.mrb[18].mxu0 }
 0x954   :  { %v4448_v12 = vpop.f32.mrb[19].mxu0 }
 0x955   :  { %v1068_v15 = vpop.f32.mrb[32].mxu1 }
 0x956   :  { %v4453_v17 = vpop.f32.mrb[33].mxu1 }
 0x957   :  { %v1071_v20 = vpop.f32.mrb[34].mxu1 }
 0x958   :  { %v4454_v21 = vpop.f32.mrb[35].mxu1 }
 0x95b   :  { %v1129_v23 = vpop.f32.mrb[20].mxu0 }
 0x95c   :  { %v1185_v24 = vmul.f32 0.17677669, %v1129_v23  ;;  %v4459_v25 = vpop.f32.mrb[21].mxu0 }
 0x95d   :  { %v1132_v26 = vpop.f32.mrb[22].mxu0  ;;  %v1179_v27 = vpop.f32.mrb[36].mxu1 }
 0x95e   :  { %v1186_v28 = vmul.f32 0.17677669, %v1179_v27  ;;  %v4460_v29 = vpop.f32.mrb[23].mxu0  ;;  %v4465_v32 = vpop.f32.mrb[37].mxu1  ;;  %v1187_v33 = vadd.f32 %v5265_v22, %v1185_v24 }
 0x95f   :  { %v1182_v34 = vpop.f32.mrb[38].mxu1 }
 0x960   :  { %v4466_v35 = vpop.f32.mrb[39].mxu1  ;;  %v1189_v36 = vsel %vm489_vm3, %v1187_v33, -inf  ;;  %v1188_v37 = vadd.f32 %v5272_v31, %v1186_v28  ;;  %v3947_v28 = vld [vmem:[%s6128_s7] ss:$0 sm:$0xff] }
 0x961   :  { %1190 = vmax.xlane.f32.xlu0 %v1189_v36 }
 0x962   :  { %v1192_v38 = vsel %vm489_vm3, %v1188_v37, -inf }
 0x963   :  { %1193 = vmax.xlane.f32.xlu1 %v1192_v38 }
 0x974   :  { %1261 = vrot.lane.b32.xlu1 %v5290_v60, %s4993_s0 }
 0x978   :  { %841 = vrot.lane.b32.xlu1 %v5349_v10, %s4993_s0 }
 0x97c   :  { %843 = vrot.lane.b32.xlu1 %v5351_v16, %s4993_s0 }
 0x980   :  { %1078 = vrot.lane.b32.xlu1 %v1068_v15, %s4992_s30 }
 0x9ee   :  { %v1191_v22 = vpop.xlane.xlu0 %1190 }
 0x9ef   :  { %v1195_v39 = vsub.f32 %v1187_v33, %v1191_v22  ;;  %v4722_v22 = vld [vmem:[%s6131_s10] ss:$8 sps:$4 sm:$0xff]  }
 0x9f0   :  { %v1194_v40 = vpop.xlane.xlu1 %1193 }
 0x9f1   :  { %v1197_v41 = vmul.f32 1.442695, %v1195_v39  ;;  %v1196_v31 = vsub.f32 %v1188_v37, %v1194_v40  ;;  %v4724_v39 = vld [vmem:[%s6131_s10 + $0x4] ss:$8 sps:$4 sm:$0xff]   ;;  %v4727_v40 = vld [vmem:[%s6131_s10 + $0x14] ss:$8 sps:$4 sm:$0xff]  }
 0x9f3   :  { %4886 = vpow2.f32 %v1197_v41  ;;  %v1199_v42 = vmul.f32 1.442695, %v1196_v31 }
 0x9f4   :  { %v1262_v43 = vpop.permute.xlu1 %1261 }
 0x9f5   :  { %4888 = vpow2.f32 %v1199_v42  ;;  %v1267_v44 = vsel %vm517_vm2, %v1262_v43, 0 }
 0x9f6   :  { %4474 = vmatpush3.bf16.msra.mxu1 %v1267_v44 }
 0x9f7   :  { %1586 = vmatprep.subr.bf16.mxu1 %v4724_v39 }
 0x9f8   :  { %v842_v60 = vpop.permute.xlu1 %841 }
 0x9f9   :  { %848 = vst.msk [vmem:[#allocation2] sm:$0xff] %vm847_vm4, %v842_v60 }
 0x9fc   :  { %v844_v10 = vpop.permute.xlu1 %843 }
 0x9fd   :  { %v4887_v16 = vpop.eup %4886  ;;  %849 = vst.msk [vmem:[#allocation2 + $0x8] sm:$0xff] %vm847_vm4, %v844_v10 }
 0x9fe   :  { %v1201_v45 = vsel %vm489_vm3, %v4887_v16, 0.0 }
 0x9ff   :  { %v4889_v46 = vpop.eup %4888  ;;  %1202 = vadd.xlane.f32.xlu0 %v1201_v45  ;;  %v4728_v45 = vld [vmem:[%s6131_s10 + $0x20] ss:$8 sps:$4 sm:$0xff]  }
 0xa00   :  { %v1079_v9 = vpop.permute.xlu1 %1078  ;;  %v1204_v13 = vsel %vm489_vm3, %v4889_v46, 0.0 }
 0xa01   :  { %1084 = vst.msk [vmem:[#allocation2 + $0x8] sm:$0xff] %vm1082_vm5, %v1079_v9  ;;  %v4731_v9 = vld [vmem:[%s6131_s10 + $0x30] ss:$8 sps:$4 sm:$0xff]  }
 0xa03   :  { %1205 = vadd.xlane.f32.xlu0 %v1204_v13  ;;  %v4736_v13 = vld [vmem:[%s6131_s10 + $0x44] ss:$8 sps:$4 sm:$0xff]  }
 0xa19   :  { %1213 = vrot.lane.b32.xlu0 %v5251_v18, %s4993_s0 }
 0xa1d   :  { %1076 = vrot.lane.b32.xlu0 %v1020_v7, %s4992_s30 }
 0xa8c   :  { %v1203_v47 = vpop.xlane.xlu0 %1202 }
 0xa8d   :  { %4890 = vrcp.f32 %v1203_v47  ;;  %v4734_v47 = vld [vmem:[%s6131_s10 + $0x40] ss:$8 sps:$4 sm:$0xff]  }
 0xa90   :  { %v1206_v19 = vpop.xlane.xlu0 %1205 }
 0xa91   :  { %4892 = vrcp.f32 %v1206_v19  ;;  %v4739_v19 = vld [vmem:[%s6131_s10 + $0x54] ss:$8 sps:$4 sm:$0xff]  }
 0xa94   :  { %v1214_v48 = vpop.permute.xlu0 %1213 }
 0xa95   :  { %v1219_v49 = vsel %vm517_vm2, %v1214_v48, 0  ;;  %v4737_v48 = vld [vmem:[%s6131_s10 + $0x50] ss:$8 sps:$4 sm:$0xff]  }
 0xa96   :  { %4468 = vmatpush3.bf16.msra.mxu0 %v1219_v49  ;;  %v4742_v49 = vld [vmem:[%s6131_s10 + $0x64] ss:$8 sps:$4 sm:$0xff]  }
 0xa97   :  { %v4891_v52 = vpop.eup %4890  ;;  %4479 = vmatprep.subr.bf16.mxu0 %v4988_v4 }
 0xa98   :  { %v1208_v53 = vmul.f32 %v4891_v52, %v4887_v16  ;;  %v1077_v56 = vpop.permute.xlu0 %1076  ;;  %v4730_v16 = vld [vmem:[%s6131_s10 + $0x24] ss:$8 sps:$4 sm:$0xff]   ;;  %v4740_v52 = vld [vmem:[%s6131_s10 + $0x60] ss:$8 sps:$4 sm:$0xff]  }
 0xa99   :  { %1083 = vst.msk [vmem:[#allocation2] sm:$0xff] %vm1082_vm5, %v1077_v56  ;;  %v4743_v56 = vld [vmem:[%s6131_s10 + $0x70] ss:$8 sps:$4 sm:$0xff]  }
 0xa9a   :  { %v1211_v58 = vpack.c.bf16 %v1208_v53, %v1208_v53  ;;  %v4745_v53 = vld [vmem:[%s6131_s10 + $0x74] ss:$8 sps:$4 sm:$0xff]  }
 0xa9b   :  { %v4893_v61 = vpop.eup %4892 }
 0xa9c   :  { %v1210_v18 = vmul.f32 %v4893_v61, %v4889_v46  ;;  %4470 = vmatmul.mubr.msk.bf16.vlgmr.msra.gmra.mrb[24].mxu0 %vm489_vm3, %v1211_v58  ;;  %v4733_v46 = vld [vmem:[%s6131_s10 + $0x34] ss:$8 sps:$4 sm:$0xff]  }
 0xa9d   :  { %4495 = vmatprep.mubr.msk.bf16.mxu0 %vm4990_vm0, %v4988_v4  ;;  %4480 = vmatpush3.bf16.msra.mxu0 %v4714_v63 }
 0xa9e   :  { %v1212_v62 = vpack.c.bf16 %v1210_v18, %v1210_v18  ;;  %4481 = vmatprep.subr.bf16.mxu0 %v4988_v4 }
 0xaa0   :  { %4476 = vmatmul.mubr.msk.bf16.vlgmr.msra.gmra.mrb[40].mxu1 %vm489_vm3, %v1212_v62 }
 0xaa1   :  { %1618 = vmatprep.mubr.bf16.mxu1 %v4989_v30  ;;  %4482 = vmatpush3.bf16.msra.mxu0 %v4715_v0 }
 0xaa2   :  { %4483 = vmatprep.subr.bf16.mxu0 %v4988_v4  ;;  %1587 = vmatpush1.bf16.msra.mxu1 %v4722_v22 }
 0xaa3   :  { %1588 = vmatprep.subr.bf16.mxu1 %v4727_v40 }
 0xaa5   :  { %4484 = vmatpush3.bf16.msra.mxu0 %v4716_v1 }
 0xaa6   :  { %4485 = vmatprep.subr.bf16.mxu0 %v4988_v4 }
 0xaa9   :  { %4486 = vmatpush3.bf16.msra.mxu0 %v4717_v14 }
 0xaaa   :  { %4487 = vmatprep.subr.bf16.mxu0 %v4988_v4 }
 0xaad   :  { %4488 = vmatpush3.bf16.msra.mxu0 %v4718_v2  ;;  %v3956_v2 = vld [vmem:[%s6129_s8] ss:$0 sm:$0xff] }
 0xaae   :  { %4489 = vmatprep.subr.bf16.mxu0 %v4988_v4 }
 0xab1   :  { %4490 = vmatpush3.bf16.msra.mxu0 %v4719_v3 }
 0xab2   :  { %4491 = vmatprep.subr.bf16.mxu0 %v4988_v4 }
 0xab5   :  { %4492 = vmatpush3.bf16.msra.mxu0 %v4720_v5 }
 0xab6   :  { %4493 = vmatprep.subr.bf16.mxu0 %v4988_v4 }
 0xab9   :  { %4494 = vmatpush3.bf16.msra.mxu0 %v4721_v6 }
 0xb6f   :  { %v1255_v7 = vpop.f32.mrb[24].mxu0 }
 0xb70   :  { %1311 = vrot.lane.b32.xlu0 %v1255_v7, %s4991_s29  ;;  %v4471_v8 = vpop.f32.mrb[25].mxu0  ;;  %v3957_v7 = vld [vmem:[%s6130_s9] ss:$0 sm:$0xff] }
 0xb71   :  { %v1258_v11 = vpop.f32.mrb[26].mxu0 }
 0xb72   :  { %v4472_v12 = vpop.f32.mrb[27].mxu0 }
 0xb73   :  { %v1303_v15 = vpop.f32.mrb[40].mxu1 }
 0xb74   :  { %1313 = vrot.lane.b32.xlu1 %v1303_v15, %s4991_s29  ;;  %v4477_v17 = vpop.f32.mrb[41].mxu1 }
 0xb75   :  { %v1306_v20 = vpop.f32.mrb[42].mxu1  ;;  %v4746_v17 = vld [vmem:[%s6133_s12 + $0x40] sm:$0xff]  }
 0xb76   :  { %v4478_v21 = vpop.f32.mrb[43].mxu1  ;;  %v4747_v20 = vld [vmem:[%s6133_s12] sm:$0xff]   ;;  %4251 = vmatprep.subr.bf16.mxu0 %v4746_v17 }
 0xb77   :  { %v4748_v21 = vld [vmem:[%s6133_s12 + $0x48] sm:$0xff]  }
 0xbe2   :  { %v1312_v23 = vpop.permute.xlu0 %1311 }
 0xbe3   :  { %1318 = vst.msk [vmem:[#allocation2] sm:$0xff] %vm1317_vm6, %v1312_v23  ;;  %v4749_v23 = vld [vmem:[%s6133_s12 + $0x8] sm:$0xff]  }
 0xbe6   :  { %v1314_v24 = vpop.permute.xlu1 %1313 }
 0xbe7   :  { %1319 = vst.msk [vmem:[#allocation2 + $0x8] sm:$0xff] %vm1317_vm6, %v1314_v24  ;;  %v4750_v24 = vld [vmem:[%s6133_s12 + $0x50] sm:$0xff]  }
 0xbea   :  { %v1320_v25 = vld [vmem:[#allocation2] sm:$0xff] }
 0xbee   :  { %v1321_v26 = vld [vmem:[#allocation2 + $0x8] sm:$0xff] }
 0xbef   :  { %v1339_v27 = vpack.c.bf16 %v1321_v26, %v1320_v25  ;;  %v4751_v25 = vld [vmem:[%s6133_s12 + $0x10] sm:$0xff]   ;;  %v4752_v26 = vld [vmem:[%s6133_s12 + $0x58] sm:$0xff]  }
 0xbf1   :  { %4496 = vmatmul.mubr.bf16.vlgmr.msra.gmra.mrb[28].mxu0 %v1339_v27  ;;  %v4753_v27 = vld [vmem:[%s6133_s12 + $0x18] sm:$0xff]  }
 0xbf2   :  { %4252 = vmatpush3.bf16.msra.mxu0 %v4747_v20 }
 0xbf3   :  { %4253 = vmatprep.subr.bf16.mxu0 %v4748_v21 }
 0xbf6   :  { %4254 = vmatpush3.bf16.msra.mxu0 %v4749_v23 }
 0xbf7   :  { %4255 = vmatprep.subr.bf16.mxu0 %v4750_v24 }
 0xbfa   :  { %4256 = vmatpush3.bf16.msra.mxu0 %v4751_v25 }
 0xbfb   :  { %4257 = vmatprep.subr.bf16.mxu0 %v4752_v26 }
 0xbfe   :  { %4258 = vmatpush3.bf16.msra.mxu0 %v4753_v27 }
 0xcc4   :  { %v1428_v29 = vpop.f32.mrb[28].mxu0 }
 0xcc5   :  { %v1429_v32 = vadd.f32 %v3947_v28, %v1428_v29  ;;  %v4497_v33 = vpop.f32.mrb[29].mxu0  ;;  %v4755_v29 = vld [vmem:[%s6133_s12 + $0x20] sm:$0xff]  }
 0xcc6   :  { %v1431_v34 = vpop.f32.mrb[30].mxu0  ;;  %v4757_v33 = vld [vmem:[%s6133_s12 + $0x28] sm:$0xff]  }
 0xcc7   :  { %v1432_v35 = vadd.f32 %v3947_v28, %v1431_v34  ;;  %v4498_v36 = vpop.f32.mrb[31].mxu0  ;;  %v1435_v37 = vadd.f32 %v1429_v32, %v5207_v50  ;;  %v4725_v50 = vld [vmem:[%s6131_s10 + $0x10] ss:$8 sps:$4 sm:$0xff]   ;;  %v4754_v28 = vld [vmem:[%s6133_s12 + $0x60] sm:$0xff]   ;;  %v4756_v32 = vld [vmem:[%s6133_s12 + $0x68] sm:$0xff]  }
 0xcc8   :  { %1589 = vmatpush1.bf16.msra.mxu1 %v4725_v50  ;;  %4259 = vmatprep.subr.bf16.mxu0 %v4754_v28  ;;  %v4758_v34 = vld [vmem:[%s6133_s12 + $0x70] sm:$0xff]   ;;  %v4760_v36 = vld [vmem:[%s6133_s12 + $0x78] sm:$0xff]  }
 0xcc9   :  { %1439 = vadd.xlane.f32.xlu0 %v1435_v37  ;;  %v1436_v38 = vadd.f32 %v1432_v35, %v5209_v51  ;;  %1590 = vmatprep.subr.bf16.mxu1 %v4730_v16  ;;  %v4759_v35 = vld [vmem:[%s6133_s12 + $0x30] sm:$0xff]  }
 0xcca   :  { %4260 = vmatpush3.bf16.msra.mxu0 %v4755_v29 }
 0xccb   :  { %1441 = vadd.xlane.f32.xlu1 %v1436_v38  ;;  %4261 = vmatprep.subr.bf16.mxu0 %v4756_v32  ;;  %v3974_v32 = vld [vmem:[%s6134_s13] ss:$0 sm:$0xff] }
 0xccc   :  { %1591 = vmatpush1.bf16.msra.mxu1 %v4728_v45 }
 0xccd   :  { %1592 = vmatprep.subr.bf16.mxu1 %v4733_v46 }
 0xcce   :  { %4262 = vmatpush3.bf16.msra.mxu0 %v4757_v33 }
 0xccf   :  { %4263 = vmatprep.subr.bf16.mxu0 %v4758_v34 }
 0xcd0   :  { %1593 = vmatpush1.bf16.msra.mxu1 %v4731_v9 }
 0xcd1   :  { %1594 = vmatprep.subr.bf16.mxu1 %v4736_v13 }
 0xcd2   :  { %4264 = vmatpush3.bf16.msra.mxu0 %v4759_v35 }
 0xcd3   :  { %4265 = vmatprep.subr.bf16.mxu0 %v4760_v36 }
 0xcd4   :  { %1595 = vmatpush1.bf16.msra.mxu1 %v4734_v47 }
 0xcd5   :  { %1596 = vmatprep.subr.bf16.mxu1 %v4739_v19 }
 0xcd8   :  { %1597 = vmatpush1.bf16.msra.mxu1 %v4737_v48 }
 0xcd9   :  { %1598 = vmatprep.subr.bf16.mxu1 %v4742_v49 }
 0xcdc   :  { %1599 = vmatpush1.bf16.msra.mxu1 %v4740_v52 }
 0xcdd   :  { %1600 = vmatprep.subr.bf16.mxu1 %v4745_v53 }
 0xce0   :  { %1601 = vmatpush1.bf16.msra.mxu1 %v4743_v56 }
 0xd56   :  { %v1440_v51 = vpop.xlane.xlu0 %1439 }
 0xd57   :  { %v1443_v41 = vmul.f32 0.0078125, %v1440_v51 }
 0xd58   :  { %v1442_v31 = vpop.xlane.xlu1 %1441 }
 0xd59   :  { %v1445_v42 = vsub.f32 %v1435_v37, %v1443_v41  ;;  %v1444_v43 = vmul.f32 0.0078125, %v1442_v31  ;;  %v4761_v37 = vld [vmem:[%s6133_s12 + $0x38] sm:$0xff]  }
 0xd5a   :  { %4266 = vmatpush3.bf16.msra.mxu0 %v4761_v37 }
 0xd5b   :  { %v1446_v44 = vsub.f32 %v1436_v38, %v1444_v43  ;;  %v1447_v60 = vmul.f32 %v1445_v42, %v1445_v42  ;;  %4499 = vmatprep.subr.bf16.mxu0 %v4988_v4  ;;  %v1493_v38 = vld [vmem:[%s6132_s11] sm:$0x3] }
 0xd5c   :  { %v1499_v22 = vrot.slane %v1493_v38, %v5228_v59  ;;  %v1503_v39 = vrot.slane %v1493_v38, %v5220_v55 }
 0xd5d   :  { %1449 = vadd.xlane.f32.xlu0 %v1447_v60  ;;  %v1448_v10 = vmul.f32 %v1446_v44, %v1446_v44 }
 0xd61   :  { %1451 = vadd.xlane.f32.xlu0 %v1448_v10 }
 0xdea   :  { %v1450_v58 = vpop.xlane.xlu0 %1449 }
 0xdeb   :  { %v1453_v61 = vmul.f32 0.0078125, %v1450_v58 }
 0xded   :  { %v1455_v18 = vadd.f32 1e-12, %v1453_v61 }
 0xdee   :  { %v1452_v62 = vpop.xlane.xlu0 %1451 }
 0xdef   :  { %4894 = vrsqrt.f32 %v1455_v18  ;;  %v1454_v63 = vmul.f32 0.0078125, %v1452_v62 }
 0xdf1   :  { %v1456_v0 = vadd.f32 1e-12, %v1454_v63 }
 0xdf3   :  { %4896 = vrsqrt.f32 %v1456_v0 }
 0xdf9   :  { %v4895_v1 = vpop.eup %4894 }
 0xdfa   :  { %v1459_v14 = vmul.f32 %v4895_v1, %v1445_v42 }
 0xdfc   :  { %v1467_v6 = vmul.f32 %v3956_v2, %v1459_v14 }
 0xdfd   :  { %v4897_v3 = vpop.eup %4896 }
 0xdfe   :  { %v1460_v5 = vmul.f32 %v4897_v3, %v1446_v44  ;;  %v5513_v11 = vadd.f32 %v3957_v7, %v1467_v6 }
 0xe00   :  { %v1468_v8 = vmul.f32 %v3956_v2, %v1460_v5 }
 0xe02   :  { %v5515_v12 = vadd.f32 %v3957_v7, %v1468_v8 }
 0xe04   :  { %v1494_v15 = vpack.c.bf16 %v5515_v12, %v5513_v11 }
 0xe06   :  { %1619 = vmatmul.mubr.bf16.vlgmr.msra.gmra.mrb[44].mxu1 %v1494_v15 }
 0xe07   :  { %2097 = vmatprep.mubr.bf16.mxu1 %v4989_v30 }
 0xed9   :  { %v1620_v40 = vpop.f32.mrb[44].mxu1 }
 0xeda   :  { %v1621_v50 = vadd.f32 %v1620_v40, %v1499_v22  ;;  %v1622_v51 = vpop.f32.mrb[45].mxu1 }
 0xedb   :  { %v1623_v41 = vadd.f32 %v1622_v51, %v1503_v39  ;;  %v1624_v31 = vpop.f32.mrb[46].mxu1  ;;  %v4764_v51 = vld [vmem:[%s6151_s26 + $0xc4] ss:$12 sps:$4 sm:$0xff]  }
 0xedc   :  { %v1629_v42 = vmul.f32 %v1621_v50, %v1621_v50  ;;  %v1625_v43 = vadd.f32 %v1624_v31, %v1499_v22  ;;  %v1626_v44 = vpop.f32.mrb[47].mxu1  ;;  %2065 = vmatprep.subr.bf16.mxu1 %v4764_v51  ;;  %v4766_v31 = vld [vmem:[%s6151_s26 + $0xd8] ss:$12 sps:$4 sm:$0xff]  }
 0xedd   :  { %v1630_v60 = vmul.f32 %v1623_v41, %v1623_v41  ;;  %v1627_v10 = vadd.f32 %v1626_v44, %v1503_v39 }
 0xede   :  { %v1633_v16 = vmul.f32 %v1629_v42, %v1621_v50  ;;  %v1631_v45 = vmul.f32 %v1625_v43, %v1625_v43 }
 0xedf   :  { %v1634_v46 = vmul.f32 %v1630_v60, %v1623_v41  ;;  %v1632_v9 = vmul.f32 %v1627_v10, %v1627_v10 }
 0xee0   :  { %v1637_v13 = vmul.f32 0.044715, %v1633_v16  ;;  %v1635_v47 = vmul.f32 %v1631_v45, %v1625_v43 }
 0xee1   :  { %v1638_v19 = vmul.f32 0.044715, %v1634_v46  ;;  %v1636_v48 = vmul.f32 %v1632_v9, %v1627_v10  ;;  %v4772_v9 = vld [vmem:[%s6151_s26 + $0xf4] ss:$12 sps:$4 sm:$0xff]  }
 0xee2   :  { %v1641_v49 = vadd.f32 %v1637_v13, %v1621_v50  ;;  %v1639_v52 = vmul.f32 0.044715, %v1635_v47  ;;  %v4770_v13 = vld [vmem:[%s6151_s26 + $0xf0] ss:$12 sps:$4 sm:$0xff]   ;;  %v4773_v47 = vld [vmem:[%s6151_s26 + $0xf8] ss:$12 sps:$4 sm:$0xff]  }
 0xee3   :  { %v1642_v53 = vadd.f32 %v1638_v19, %v1623_v41  ;;  %v1640_v56 = vmul.f32 0.044715, %v1636_v48  ;;  %v4776_v19 = vld [vmem:[%s6151_s26 + $0x10c] ss:$12 sps:$4 sm:$0xff]   ;;  %v4774_v48 = vld [vmem:[%s6151_s26 + $0x108] ss:$12 sps:$4 sm:$0xff]  }
 0xee4   :  { %v1645_v58 = vmul.f32 0.7978846, %v1641_v49  ;;  %v1643_v61 = vadd.f32 %v1639_v52, %v1625_v43  ;;  %v4777_v49 = vld [vmem:[%s6151_s26 + $0x110] ss:$12 sps:$4 sm:$0xff]  }
 0xee5   :  { %v1646_v18 = vmul.f32 0.7978846, %v1642_v53  ;;  %v1644_v62 = vadd.f32 %v1640_v56, %v1627_v10  ;;  %v4780_v52 = vld [vmem:[%s6151_s26 + $0x124] ss:$12 sps:$4 sm:$0xff]   ;;  %v4778_v53 = vld [vmem:[%s6151_s26 + $0x120] ss:$12 sps:$4 sm:$0xff]  }
 0xee6   :  { %4898 = vtanh.f32 %v1645_v58  ;;  %v1647_v63 = vmul.f32 0.7978846, %v1643_v61  ;;  %v4781_v56 = vld [vmem:[%s6151_s26 + $0x128] ss:$12 sps:$4 sm:$0xff]   ;;  %v4782_v61 = vld [vmem:[%s6151_s26 + $0x138] ss:$12 sps:$4 sm:$0xff]  }
 0xee7   :  { %4900 = vtanh.f32 %v1646_v18  ;;  %v1648_v0 = vmul.f32 0.7978846, %v1644_v62  ;;  %v4784_v58 = vld [vmem:[%s6151_s26 + $0x13c] ss:$12 sps:$4 sm:$0xff]   ;;  %v4785_v18 = vld [vmem:[%s6151_s26 + $0x140] ss:$12 sps:$4 sm:$0xff]  }
 0xee8   :  { %4902 = vtanh.f32 %v1647_v63  ;;  %v4788_v62 = vld [vmem:[%s6151_s26 + $0x154] ss:$12 sps:$4 sm:$0xff]   ;;  %v4786_v63 = vld [vmem:[%s6151_s26 + $0x150] ss:$12 sps:$4 sm:$0xff]  }
 0xee9   :  { %4904 = vtanh.f32 %v1648_v0  ;;  %v4789_v0 = vld [vmem:[%s6151_s26 + $0x158] ss:$12 sps:$4 sm:$0xff]  }
 0xef0   :  { %v4899_v1 = vpop.eup %4898 }
 0xef1   :  { %v4901_v14 = vpop.eup %4900  ;;  %v1653_v2 = vadd.f32 1.0, %v4899_v1  ;;  %v4792_v1 = vld [vmem:[%s6151_s26 + $0x16c] ss:$12 sps:$4 sm:$0xff]  }
 0xef2   :  { %v4903_v3 = vpop.eup %4902  ;;  %v1654_v5 = vadd.f32 1.0, %v4901_v14  ;;  %v4790_v14 = vld [vmem:[%s6151_s26 + $0x168] ss:$12 sps:$4 sm:$0xff]  }
 0xef3   :  { %v4905_v6 = vpop.eup %4904  ;;  %v1657_v7 = vmul.f32 0.5, %v1653_v2  ;;  %v1655_v8 = vadd.f32 1.0, %v4903_v3  ;;  %v4793_v2 = vld [vmem:[%s6151_s26 + $0x170] ss:$12 sps:$4 sm:$0xff]  }
 0xef4   :  { %v1656_v15 = vadd.f32 1.0, %v4905_v6  ;;  %v1658_v17 = vmul.f32 0.5, %v1654_v5 }
 0xef5   :  { %v1659_v20 = vmul.f32 0.5, %v1655_v8  ;;  %v1661_v23 = vmul.f32 %v1657_v7, %v1621_v50  ;;  %v4762_v50 = vld [vmem:[%s6151_s26 + $0xc0] ss:$12 sps:$4 sm:$0xff]  }
 0xef6   :  { %v1660_v21 = vmul.f32 0.5, %v1656_v15  ;;  %v1662_v25 = vmul.f32 %v1658_v17, %v1623_v41  ;;  %v4765_v41 = vld [vmem:[%s6151_s26 + $0xc8] ss:$12 sps:$4 sm:$0xff]   ;;  %2066 = vmatpush1.bf16.msra.mxu1 %v4762_v50 }
 0xef7   :  { %v1663_v24 = vmul.f32 %v1659_v20, %v1625_v43  ;;  %v3991_v20 = vld [vmem:[%s6135_s14] ss:$0 sm:$0xff] }
 0xef8   :  { %v1664_v26 = vmul.f32 %v1660_v21, %v1627_v10 }
 0xef9   :  { %v1698_v27 = vpack.c.bf16 %v1663_v24, %v1661_v23 }
 0xefa   :  { %v1699_v28 = vpack.c.bf16 %v1664_v26, %v1662_v25  ;;  %v3992_v26 = vld [vmem:[%s6136_s15] ss:$0 sm:$0xff] }
 0xefc   :  { %1834 = vmatprep.mubr.bf16.mxu0 %v1699_v28 }
 0xefd   :  { %1835 = vmatmul.mubr.bf16.vlgmr.msra.gmra.mrb[32].mxu0 %v1698_v27 }
 0xefe   :  { %4515 = vmatprep.mubr.msk.bf16.mxu0 %vm4990_vm0, %v4988_v4  ;;  %4500 = vmatpush3.bf16.msra.mxu0 %v4765_v41 }
 0xeff   :  { %4501 = vmatprep.subr.bf16.mxu0 %v4988_v4 }
 0xfd0   :  { %v4267_v29 = vpop.f32.mrb[32].mxu0 }
 0xfd1   :  { %v4268_v33 = vpop.f32.mrb[33].mxu0 }
 0xfd2   :  { %v4269_v34 = vadd.f32 %v4268_v33, %v4267_v29  ;;  %v4270_v35 = vpop.f32.mrb[34].mxu0  ;;  %v4025_v33 = vld [vmem:[%s6126_s5 + $0x3] sm:$0x7] }
 0xfd3   :  { %v4271_v36 = vpop.f32.mrb[35].mxu0 }
 0xfd4   :  { %v1837_v37 = vadd.f32 %v4269_v34, %v3974_v32  ;;  %v4272_v38 = vadd.f32 %v4271_v36, %v4270_v35  ;;  %v1929_v34 = vrot.slane %v4025_v33, %v5220_v55 }
 0xfd6   :  { %v1840_v22 = vadd.f32 %v4272_v38, %v3974_v32  ;;  %v1843_v39 = vadd.f32 %v1837_v37, %v5513_v11  ;;  %v4768_v11 = vld [vmem:[%s6151_s26 + $0xdc] ss:$12 sps:$4 sm:$0xff]   ;;  %v1933_v37 = vrot.slane %v4025_v33, %v157_v57 }
 0xfd7   :  { %2067 = vmatprep.subr.bf16.mxu1 %v4768_v11 }
 0xfd8   :  { %1847 = vadd.xlane.f32.xlu0 %v1843_v39  ;;  %v1844_v40 = vadd.f32 %v1840_v22, %v5515_v12  ;;  %v4769_v12 = vld [vmem:[%s6151_s26 + $0xe0] ss:$12 sps:$4 sm:$0xff]   ;;  %2068 = vmatpush1.bf16.msra.mxu1 %v4766_v31 }
 0xfd9   :  { %4502 = vmatpush3.bf16.msra.mxu0 %v4769_v12  ;;  %2069 = vmatprep.subr.bf16.mxu1 %v4772_v9  ;;  %v1925_v12 = vrot.slane %v4025_v33, %v5228_v59 }
 0xfda   :  { %1849 = vadd.xlane.f32.xlu1 %v1844_v40  ;;  %4503 = vmatprep.subr.bf16.mxu0 %v4988_v4 }
 0xfdc   :  { %2070 = vmatpush1.bf16.msra.mxu1 %v4770_v13 }
 0xfdd   :  { %4504 = vmatpush3.bf16.msra.mxu0 %v4773_v47  ;;  %2071 = vmatprep.subr.bf16.mxu1 %v4776_v19 }
 0xfde   :  { %4505 = vmatprep.subr.bf16.mxu0 %v4988_v4 }
 0xfe0   :  { %2072 = vmatpush1.bf16.msra.mxu1 %v4774_v48 }
 0xfe1   :  { %4506 = vmatpush3.bf16.msra.mxu0 %v4777_v49  ;;  %2073 = vmatprep.subr.bf16.mxu1 %v4780_v52  ;;  %v5717_v52 = vld [vmem:[%s6154_s27] ss:$0 sm:$0xff] }
 0xfe2   :  { %4507 = vmatprep.subr.bf16.mxu0 %v4988_v4 }
 0xfe4   :  { %2074 = vmatpush1.bf16.msra.mxu1 %v4778_v53 }
 0xfe5   :  { %4508 = vmatpush3.bf16.msra.mxu0 %v4781_v56  ;;  %2075 = vmatprep.subr.bf16.mxu1 %v4784_v58 }
 0xfe6   :  { %4509 = vmatprep.subr.bf16.mxu0 %v4988_v4 }
 0xfe8   :  { %2076 = vmatpush1.bf16.msra.mxu1 %v4782_v61 }
 0xfe9   :  { %4510 = vmatpush3.bf16.msra.mxu0 %v4785_v18  ;;  %2077 = vmatprep.subr.bf16.mxu1 %v4788_v62 }
 0xfea   :  { %4511 = vmatprep.subr.bf16.mxu0 %v4988_v4 }
 0xfec   :  { %2078 = vmatpush1.bf16.msra.mxu1 %v4786_v63 }
 0xfed   :  { %4512 = vmatpush3.bf16.msra.mxu0 %v4789_v0  ;;  %2079 = vmatprep.subr.bf16.mxu1 %v4792_v1  ;;  %v5724_v0 = vld [vmem:[%s6154_s27 + $0x1] ss:$0 sm:$0xff] }
 0xfee   :  { %4513 = vmatprep.subr.bf16.mxu0 %v4988_v4 }
 0xff0   :  { %2080 = vmatpush1.bf16.msra.mxu1 %v4790_v14 }
 0xff1   :  { %4514 = vmatpush3.bf16.msra.mxu0 %v4793_v2  ;;  %4519 = vmatprep.subr.bf16.mxu1 %v4988_v4 }
 0xff2   :  { %4543 = vmatprep.subr.bf16.mxu0 %v4988_v4 }
0x1065   :  { %v1848_v42 = vpop.xlane.xlu0 %1847 }
0x1066   :  { %v1851_v43 = vmul.f32 0.0078125, %v1848_v42 }
0x1067   :  { %v1850_v44 = vpop.xlane.xlu1 %1849 }
0x1068   :  { %v1853_v60 = vsub.f32 %v1843_v39, %v1851_v43  ;;  %v1852_v10 = vmul.f32 0.0078125, %v1850_v44 }
0x106a   :  { %v1854_v16 = vsub.f32 %v1844_v40, %v1852_v10  ;;  %v1855_v45 = vmul.f32 %v1853_v60, %v1853_v60 }
0x106c   :  { %1857 = vadd.xlane.f32.xlu0 %v1855_v45  ;;  %v1856_v46 = vmul.f32 %v1854_v16, %v1854_v16 }
0x106e   :  { %1859 = vadd.xlane.f32.xlu1 %v1856_v46 }
0x10f9   :  { %v1858_v3 = vpop.xlane.xlu0 %1857 }
0x10fa   :  { %v1861_v5 = vmul.f32 0.0078125, %v1858_v3 }
0x10fb   :  { %v1860_v6 = vpop.xlane.xlu1 %1859 }
0x10fc   :  { %v1863_v7 = vadd.f32 1e-12, %v1861_v5  ;;  %v1862_v8 = vmul.f32 0.0078125, %v1860_v6 }
0x10fe   :  { %4906 = vrsqrt.f32 %v1863_v7  ;;  %v1864_v15 = vadd.f32 1e-12, %v1862_v8 }
0x1100   :  { %4908 = vrsqrt.f32 %v1864_v15 }
0x1108   :  { %v4907_v17 = vpop.eup %4906 }
0x1109   :  { %v1867_v21 = vmul.f32 %v4907_v17, %v1853_v60 }
0x110a   :  { %v4909_v23 = vpop.eup %4908 }
0x110b   :  { %v1868_v24 = vmul.f32 %v4909_v23, %v1854_v16  ;;  %v1875_v25 = vmul.f32 %v3991_v20, %v1867_v21 }
0x110d   :  { %v1876_v27 = vmul.f32 %v3991_v20, %v1868_v24  ;;  %v5668_v28 = vadd.f32 %v3992_v26, %v1875_v25 }
0x110f   :  { %v5670_v29 = vadd.f32 %v3992_v26, %v1876_v27 }
0x1111   :  { %v1920_v32 = vpack.c.bf16 %v5670_v29, %v5668_v28 }
0x1113   :  { %2098 = vmatmul.mubr.bf16.vlgmr.msra.gmra.mrb[48].mxu1 %v1920_v32  ;;  %4516 = vmatmul.mubr.bf16.vlgmr.msra.gmra.mrb[36].mxu0 %v1920_v32 }
0x1114   :  { %4521 = vmatprep.mubr.msk.bf16.mxu1 %vm4990_vm0, %v4988_v4  ;;  %4545 = vmatprep.mubr.msk.bf16.mxu0 %vm4990_vm0, %v4988_v4 }
0x11e6   :  { %v2099_v35 = vpop.f32.mrb[48].mxu1  ;;  %v2142_v36 = vpop.f32.mrb[36].mxu0 }
0x11e7   :  { %v2101_v38 = vpop.f32.mrb[49].mxu1  ;;  %v4517_v22 = vpop.f32.mrb[37].mxu0  ;;  %v2100_v54 = vadd.f32 %v2099_v35, %v1925_v12  ;;  %v2143_v60 = vadd.f32 %v2142_v36, %v1933_v37 }
0x11e8   :  { %v2102_v39 = vadd.f32 %v2101_v38, %v1929_v34  ;;  %v2103_v40 = vpop.f32.mrb[50].mxu1  ;;  %v2145_v50 = vpop.f32.mrb[38].mxu0 }
0x11e9   :  { %v5684_v51 = vadd.f32 %v2145_v50, %v1933_v37  ;;  %v2105_v41 = vpop.f32.mrb[51].mxu1  ;;  %v4518_v11 = vpop.f32.mrb[39].mxu0  ;;  %v5694_v44 = vpack.c.bf16 %v2100_v54, %v2100_v54  ;;  %v2104_v16 = vadd.f32 %v2103_v40, %v1925_v12  ;;  %v5703_v45 = vpack.c.bf16 %v2143_v60, %v2143_v60 }
0x11ea   :  { %v5687_v31 = vpack.c.bf16 %v2102_v39, %v2102_v39  ;;  %v2106_v42 = vadd.f32 %v2105_v41, %v1929_v34 }
0x11eb   :  { %v5705_v46 = vpack.c.bf16 %v2104_v16, %v2104_v16  ;;  %v2279_v9 = vsel %vm517_vm2, %v5703_v45, 0  ;;  %v5742_v33 = vpack.c.bf16 %v5684_v51, %v5684_v51 }
0x11ec   :  { %v2159_v43 = vsel %vm380_vm1, %v5687_v31, 0  ;;  %v5692_v57 = vpack.c.bf16 %v2106_v42, %v2106_v42 }
0x11ed   :  { %4520 = vmatpush3.bf16.xpose.msra.mxu1 %v2159_v43  ;;  %v2325_v37 = vsel %vm517_vm2, %v5742_v33, 0 }
0x11ee   :  { %4525 = vmatprep.subr.bf16.mxu1 %v4988_v4  ;;  %v2205_v10 = vsel %vm380_vm1, %v5692_v57, 0 }
0x11f4   :  { %4522 = vmatmul.mubr.msk.bf16.vlgmr.msra.gmra.mrb[52].mxu1 %vm380_vm1, %v5694_v44 }
0x11f5   :  { %4526 = vmatpush3.bf16.xpose.msra.mxu1 %v2205_v10  ;;  %4527 = vmatprep.mubr.msk.bf16.mxu1 %vm4990_vm0, %v4988_v4 }
0x11f6   :  { %4531 = vmatprep.subr.bf16.mxu1 %v4988_v4 }
0x11fc   :  { %4528 = vmatmul.mubr.msk.bf16.vlgmr.msra.gmra.mrb[56].mxu1 %vm380_vm1, %v5705_v46 }
0x11fd   :  { %4532 = vmatpush3.bf16.msra.mxu1 %v2279_v9  ;;  %4533 = vmatprep.mubr.msk.bf16.mxu1 %vm4990_vm0, %v4988_v4 }
0x11fe   :  { %4537 = vmatprep.subr.bf16.mxu1 %v4988_v4 }
0x12c7   :  { %v2195_v13 = vpop.f32.mrb[52].mxu1 }
0x12c8   :  { %v2247_v47 = vmul.f32 0.17677669, %v2195_v13  ;;  %v4523_v19 = vpop.f32.mrb[53].mxu1 }
0x12c9   :  { %v2198_v48 = vpop.f32.mrb[54].mxu1 }
0x12ca   :  { %v4524_v49 = vpop.f32.mrb[55].mxu1  ;;  %v2249_v53 = vadd.f32 %v5717_v52, %v2247_v47 }
0x12cc   :  { %v2251_v56 = vsel %vm489_vm3, %v2249_v53, -inf }
0x12cd   :  { %2252 = vmax.xlane.f32.xlu0 %v2251_v56 }
0x12cf   :  { %v2241_v58 = vpop.f32.mrb[56].mxu1 }
0x12d0   :  { %v2248_v61 = vmul.f32 0.17677669, %v2241_v58  ;;  %v4529_v18 = vpop.f32.mrb[57].mxu1 }
0x12d1   :  { %v2244_v62 = vpop.f32.mrb[58].mxu1 }
0x12d2   :  { %v4530_v63 = vpop.f32.mrb[59].mxu1  ;;  %v2250_v1 = vadd.f32 %v5724_v0, %v2248_v61 }
0x12d4   :  { %v2254_v14 = vsel %vm489_vm3, %v2250_v1, -inf }
0x12d5   :  { %2255 = vmax.xlane.f32.xlu1 %v2254_v14 }
0x12e6   :  { %2425 = vrot.lane.b32.xlu1 %v5692_v57, %s4991_s29 }
0x135a   :  { %v2253_v2 = vpop.xlane.xlu0 %2252 }
0x135b   :  { %v2257_v3 = vsub.f32 %v2249_v53, %v2253_v2 }
0x135d   :  { %v2259_v5 = vmul.f32 1.442695, %v2257_v3 }
0x135f   :  { %4910 = vpow2.f32 %v2259_v5 }
0x1362   :  { %v2256_v6 = vpop.xlane.xlu1 %2255 }
0x1363   :  { %v2258_v7 = vsub.f32 %v2250_v1, %v2256_v6 }
0x1365   :  { %v2261_v8 = vmul.f32 1.442695, %v2258_v7 }
0x1366   :  { %v2426_v24 = vpop.permute.xlu1 %2425 }
0x1367   :  { %4912 = vpow2.f32 %v2261_v8  ;;  %v2431_v40 = vsel %vm380_vm1, %v2426_v24, 0 }
0x1369   :  { %v4911_v15 = vpop.eup %4910 }
0x136a   :  { %v2263_v17 = vsel %vm489_vm3, %v4911_v15, 0.0 }
0x136b   :  { %2264 = vadd.xlane.f32.xlu0 %v2263_v17 }
0x1371   :  { %v4913_v20 = vpop.eup %4912 }
0x1372   :  { %v2266_v21 = vsel %vm489_vm3, %v4913_v20, 0.0 }
0x1373   :  { %2267 = vadd.xlane.f32.xlu1 %v2266_v21 }
0x1381   :  { %2373 = vrot.lane.b32.xlu0 %v5687_v31, %s4991_s29 }
0x1384   :  { %2370 = vrot.lane.b32.xlu1 %v5694_v44, %s4991_s29 }
0x1388   :  { %2422 = vrot.lane.b32.xlu1 %v5705_v46, %s4991_s29 }
0x13f8   :  { %v2265_v23 = vpop.xlane.xlu0 %2264 }
0x13f9   :  { %4914 = vrcp.f32 %v2265_v23 }
0x13fc   :  { %v2374_v25 = vpop.permute.xlu0 %2373 }
0x13fd   :  { %v2379_v26 = vsel %vm380_vm1, %v2374_v25, 0 }
0x13fe   :  { %4544 = vmatpush3.bf16.xpose.msra.mxu0 %v2379_v26 }
0x13ff   :  { %4555 = vmatprep.subr.bf16.mxu0 %v4988_v4 }
0x1400   :  { %v2268_v27 = vpop.xlane.xlu1 %2267 }
0x1401   :  { %4916 = vrcp.f32 %v2268_v27 }
0x1403   :  { %v4915_v32 = vpop.eup %4914 }
0x1404   :  { %v2270_v34 = vmul.f32 %v4915_v32, %v4911_v15  ;;  %v2371_v35 = vpop.permute.xlu1 %2370 }
0x1405   :  { %4546 = vmatmul.mubr.msk.bf16.vlgmr.msra.gmra.mrb[40].mxu0 %vm380_vm1, %v2371_v35 }
0x1406   :  { %v2273_v36 = vpack.c.bf16 %v2270_v34, %v2270_v34  ;;  %4557 = vmatprep.mubr.msk.bf16.mxu0 %vm4990_vm0, %v4988_v4 }
0x1408   :  { %4534 = vmatmul.mubr.msk.bf16.vlgmr.msra.gmra.mrb[60].mxu1 %vm489_vm3, %v2273_v36  ;;  %v2423_v50 = vpop.permute.xlu1 %2422 }
0x1409   :  { %4538 = vmatpush3.bf16.msra.mxu1 %v2325_v37  ;;  %4539 = vmatprep.mubr.msk.bf16.mxu1 %vm4990_vm0, %v4988_v4 }
0x140a   :  { %4549 = vmatprep.subr.bf16.mxu1 %v4988_v4 }
0x140b   :  { %v4917_v38 = vpop.eup %4916 }
0x140c   :  { %v2272_v22 = vmul.f32 %v4917_v38, %v4913_v20 }
0x140e   :  { %v2274_v39 = vpack.c.bf16 %v2272_v22, %v2272_v22 }
0x1410   :  { %4540 = vmatmul.mubr.msk.bf16.vlgmr.msra.gmra.mrb[64].mxu1 %vm489_vm3, %v2274_v39 }
0x1411   :  { %4551 = vmatprep.mubr.msk.bf16.mxu1 %vm4990_vm0, %v4988_v4 }
0x1412   :  { %4550 = vmatpush3.bf16.xpose.msra.mxu1 %v2431_v40 }
0x1413   :  { %4561 = vmatprep.subr.bf16.mxu1 %v4988_v4 }
0x1419   :  { %4552 = vmatmul.mubr.msk.bf16.vlgmr.msra.gmra.mrb[68].mxu1 %vm380_vm1, %v2423_v50 }
0x141a   :  { %4563 = vmatprep.mubr.msk.bf16.mxu1 %vm4990_vm0, %v4988_v4 }
0x14d8   :  { %v2415_v51 = vpop.f32.mrb[40].mxu0 }
0x14d9   :  { %v2473_v41 = vmul.f32 0.17677669, %v2415_v51  ;;  %v4547_v11 = vpop.f32.mrb[41].mxu0 }
0x14da   :  { %v2418_v12 = vpop.f32.mrb[42].mxu0 }
0x14db   :  { %v2315_v42 = vpop.f32.mrb[60].mxu1  ;;  %v4548_v43 = vpop.f32.mrb[43].mxu0  ;;  %v2475_v54 = vadd.f32 %v5717_v52, %v2473_v41 }
0x14dc   :  { %2367 = vst.msk [vmem:[#allocation2] sm:$0xff] %vm380_vm1, %v2315_v42  ;;  %v4535_v60 = vpop.f32.mrb[61].mxu1 }
0x14dd   :  { %v2318_v10 = vpop.f32.mrb[62].mxu1  ;;  %v2477_v16 = vsel %vm489_vm3, %v2475_v54, -inf }
0x14de   :  { %2478 = vmax.xlane.f32.xlu0 %v2477_v16  ;;  %v4536_v9 = vpop.f32.mrb[63].mxu1 }
0x14e3   :  { %v2361_v13 = vpop.f32.mrb[64].mxu1 }
0x14e4   :  { %2368 = vst.msk [vmem:[#allocation2 + $0x8] sm:$0xff] %vm380_vm1, %v2361_v13  ;;  %v4541_v47 = vpop.f32.mrb[65].mxu1 }
0x14e5   :  { %v2364_v19 = vpop.f32.mrb[66].mxu1 }
0x14e6   :  { %v4542_v48 = vpop.f32.mrb[67].mxu1 }
0x14ec   :  { %v2467_v49 = vpop.f32.mrb[68].mxu1 }
0x14ed   :  { %v2474_v53 = vmul.f32 0.17677669, %v2467_v49  ;;  %v4553_v56 = vpop.f32.mrb[69].mxu1 }
0x14ee   :  { %v2470_v58 = vpop.f32.mrb[70].mxu1 }
0x14ef   :  { %v4554_v61 = vpop.f32.mrb[71].mxu1  ;;  %v2476_v18 = vadd.f32 %v5724_v0, %v2474_v53 }
0x14f1   :  { %v2480_v62 = vsel %vm489_vm3, %v2476_v18, -inf }
0x14f2   :  { %2481 = vmax.xlane.f32.xlu1 %v2480_v62 }
0x1503   :  { %2551 = vrot.lane.b32.xlu1 %v5742_v33, %s4991_s29 }
0x1507   :  { %2611 = vrot.lane.b32.xlu1 %v5687_v31, %s4992_s30 }
0x150b   :  { %2661 = vrot.lane.b32.xlu1 %v5692_v57, %s4992_s30 }
0x150f   :  { %2659 = vrot.lane.b32.xlu1 %v5705_v46, %s4992_s30 }
0x156b   :  { %v2479_v63 = vpop.xlane.xlu0 %2478 }
0x156c   :  { %v2483_v1 = vsub.f32 %v2475_v54, %v2479_v63 }
0x156e   :  { %v2485_v14 = vmul.f32 1.442695, %v2483_v1 }
0x1570   :  { %4918 = vpow2.f32 %v2485_v14 }
0x157a   :  { %v4919_v2 = vpop.eup %4918 }
0x157b   :  { %v2489_v3 = vsel %vm489_vm3, %v4919_v2, 0.0 }
0x157c   :  { %2490 = vadd.xlane.f32.xlu0 %v2489_v3 }
0x157f   :  { %v2482_v5 = vpop.xlane.xlu1 %2481 }
0x1580   :  { %v2484_v6 = vsub.f32 %v2476_v18, %v2482_v5 }
0x1582   :  { %v2487_v7 = vmul.f32 1.442695, %v2484_v6 }
0x1583   :  { %v2552_v8 = vpop.permute.xlu1 %2551 }
0x1584   :  { %4920 = vpow2.f32 %v2487_v7  ;;  %v2557_v15 = vsel %vm517_vm2, %v2552_v8, 0 }
0x1585   :  { %4562 = vmatpush3.bf16.msra.mxu1 %v2557_v15 }
0x1586   :  { %4573 = vmatprep.subr.bf16.mxu1 %v4988_v4 }
0x1587   :  { %v2612_v32 = vpop.permute.xlu1 %2611 }
0x1588   :  { %v2617_v38 = vsel %vm380_vm1, %v2612_v32, 0 }
0x158b   :  { %v2662_v37 = vpop.permute.xlu1 %2661 }
0x158c   :  { %v2667_v39 = vsel %vm380_vm1, %v2662_v37, 0 }
0x158e   :  { %v4921_v17 = vpop.eup %4920 }
0x158f   :  { %v2492_v20 = vsel %vm489_vm3, %v4921_v17, 0.0  ;;  %v2660_v50 = vpop.permute.xlu1 %2659 }
0x1590   :  { %2493 = vadd.xlane.f32.xlu0 %v2492_v20 }
0x15a6   :  { %2502 = vrot.lane.b32.xlu0 %v5703_v45, %s4991_s29 }
0x15aa   :  { %2609 = vrot.lane.b32.xlu0 %v5694_v44, %s4992_s30 }
0x1609   :  { %v2491_v21 = vpop.xlane.xlu0 %2490 }
0x160a   :  { %4922 = vrcp.f32 %v2491_v21 }
0x1614   :  { %v4923_v23 = vpop.eup %4922 }
0x1615   :  { %v2496_v25 = vmul.f32 %v4923_v23, %v4919_v2 }
0x1617   :  { %v2499_v34 = vpack.c.bf16 %v2496_v25, %v2496_v25 }
0x161d   :  { %v2494_v24 = vpop.xlane.xlu0 %2493 }
0x161e   :  { %4924 = vrcp.f32 %v2494_v24 }
0x1621   :  { %v2503_v26 = vpop.permute.xlu0 %2502 }
0x1622   :  { %v2508_v27 = vsel %vm517_vm2, %v2503_v26, 0 }
0x1623   :  { %4556 = vmatpush3.bf16.msra.mxu0 %v2508_v27 }
0x1624   :  { %4567 = vmatprep.subr.bf16.mxu0 %v4988_v4 }
0x1625   :  { %v2610_v40 = vpop.permute.xlu0 %2609 }
0x1626   :  { %4558 = vmatmul.mubr.msk.bf16.vlgmr.msra.gmra.mrb[44].mxu0 %vm489_vm3, %v2499_v34 }
0x1627   :  { %4569 = vmatprep.mubr.msk.bf16.mxu0 %vm4990_vm0, %v4988_v4 }
0x1628   :  { %v4925_v35 = vpop.eup %4924 }
0x1629   :  { %v2498_v36 = vmul.f32 %v4925_v35, %v4921_v17 }
0x162b   :  { %v2500_v22 = vpack.c.bf16 %v2498_v36, %v2498_v36 }
0x162c   :  { %4568 = vmatpush3.bf16.xpose.msra.mxu0 %v2617_v38 }
0x162d   :  { %4564 = vmatmul.mubr.msk.bf16.vlgmr.msra.gmra.mrb[72].mxu1 %vm489_vm3, %v2500_v22  ;;  %4579 = vmatprep.subr.bf16.mxu0 %v4988_v4 }
0x162e   :  { %4574 = vmatpush3.bf16.xpose.msra.mxu1 %v2667_v39  ;;  %4575 = vmatprep.mubr.msk.bf16.mxu1 %vm4990_vm0, %v4988_v4 }
0x162f   :  { %4585 = vmatprep.subr.bf16.mxu1 %v4988_v4 }
0x1633   :  { %4570 = vmatmul.mubr.msk.bf16.vlgmr.msra.gmra.mrb[48].mxu0 %vm380_vm1, %v2610_v40 }
0x1634   :  { %4581 = vmatprep.mubr.msk.bf16.mxu0 %vm4990_vm0, %v4988_v4 }
0x1635   :  { %4576 = vmatmul.mubr.msk.bf16.vlgmr.msra.gmra.mrb[76].mxu1 %vm380_vm1, %v2660_v50 }
0x1636   :  { %4587 = vmatprep.mubr.msk.bf16.mxu1 %vm4990_vm0, %v4988_v4 }
0x16f9   :  { %v5801_v51 = vpop.f32.mrb[44].mxu0 }
0x16fa   :  { %v4559_v41 = vpop.f32.mrb[45].mxu0 }
0x16fb   :  { %v2547_v11 = vpop.f32.mrb[46].mxu0 }
0x16fc   :  { %v4560_v12 = vpop.f32.mrb[47].mxu0 }
0x1700   :  { %v5803_v42 = vpop.f32.mrb[72].mxu1 }
0x1701   :  { %v4565_v43 = vpop.f32.mrb[73].mxu1 }
0x1702   :  { %v2596_v54 = vpop.f32.mrb[74].mxu1 }
0x1703   :  { %v4566_v60 = vpop.f32.mrb[75].mxu1 }
0x1706   :  { %v2653_v10 = vpop.f32.mrb[48].mxu0 }
0x1707   :  { %v2709_v16 = vmul.f32 0.17677669, %v2653_v10  ;;  %v4571_v9 = vpop.f32.mrb[49].mxu0 }
0x1708   :  { %v2656_v13 = vpop.f32.mrb[50].mxu0  ;;  %v2703_v47 = vpop.f32.mrb[76].mxu1 }
0x1709   :  { %v2710_v19 = vmul.f32 0.17677669, %v2703_v47  ;;  %v4572_v48 = vpop.f32.mrb[51].mxu0  ;;  %v4577_v49 = vpop.f32.mrb[77].mxu1  ;;  %v2711_v53 = vadd.f32 %v5717_v52, %v2709_v16 }
0x170a   :  { %v2706_v56 = vpop.f32.mrb[78].mxu1 }
0x170b   :  { %v4578_v58 = vpop.f32.mrb[79].mxu1  ;;  %v2713_v61 = vsel %vm489_vm3, %v2711_v53, -inf  ;;  %v2712_v18 = vadd.f32 %v5724_v0, %v2710_v19 }
0x170c   :  { %2714 = vmax.xlane.f32.xlu0 %v2713_v61 }
0x170d   :  { %v2716_v62 = vsel %vm489_vm3, %v2712_v18, -inf }
0x170e   :  { %2717 = vmax.xlane.f32.xlu1 %v2716_v62 }
0x171f   :  { %2785 = vrot.lane.b32.xlu1 %v5742_v33, %s4992_s30 }
0x1723   :  { %2845 = vrot.lane.b32.xlu1 %v5687_v31, %s4993_s0 }
0x1727   :  { %2895 = vrot.lane.b32.xlu1 %v5692_v57, %s4993_s0 }
0x172b   :  { %2893 = vrot.lane.b32.xlu1 %v5705_v46, %s4993_s0 }
0x1799   :  { %v2715_v63 = vpop.xlane.xlu0 %2714 }
0x179a   :  { %v2719_v1 = vsub.f32 %v2711_v53, %v2715_v63 }
0x179b   :  { %v2718_v14 = vpop.xlane.xlu1 %2717 }
0x179c   :  { %v2721_v2 = vmul.f32 1.442695, %v2719_v1  ;;  %v2720_v3 = vsub.f32 %v2712_v18, %v2718_v14 }
0x179e   :  { %4926 = vpow2.f32 %v2721_v2  ;;  %v2723_v5 = vmul.f32 1.442695, %v2720_v3 }
0x179f   :  { %v2786_v6 = vpop.permute.xlu1 %2785 }
0x17a0   :  { %4928 = vpow2.f32 %v2723_v5  ;;  %v2791_v7 = vsel %vm517_vm2, %v2786_v6, 0 }
0x17a1   :  { %4586 = vmatpush3.bf16.msra.mxu1 %v2791_v7 }
0x17a2   :  { %4597 = vmatprep.subr.bf16.mxu1 %v4988_v4 }
0x17a3   :  { %v2846_v24 = vpop.permute.xlu1 %2845 }
0x17a7   :  { %v2896_v34 = vpop.permute.xlu1 %2895 }
0x17a8   :  { %v4927_v31 = vpop.eup %4926  ;;  %v2901_v36 = vsel %vm380_vm1, %v2896_v34, 0  ;;  %v4799_v34 = vld [vmem:[%s6127_s6 + $0x68] sm:$0xff]  }
0x17a9   :  { %v2725_v57 = vsel %vm489_vm3, %v4927_v31, 0.0 }
0x17aa   :  { %v4929_v8 = vpop.eup %4928  ;;  %2726 = vadd.xlane.f32.xlu0 %v2725_v57 }
0x17ab   :  { %v2728_v46 = vsel %vm489_vm3, %v4929_v8, 0.0  ;;  %v2894_v38 = vpop.permute.xlu1 %2893 }
0x17ae   :  { %2729 = vadd.xlane.f32.xlu0 %v2728_v46 }
0x17c4   :  { %2737 = vrot.lane.b32.xlu0 %v5703_v45, %s4992_s30 }
0x17c8   :  { %2843 = vrot.lane.b32.xlu0 %v5694_v44, %s4993_s0  ;;  %v2851_v44 = vsel %vm380_vm1, %v2846_v24, 0 }
0x1837   :  { %v2727_v15 = vpop.xlane.xlu0 %2726 }
0x1838   :  { %4930 = vrcp.f32 %v2727_v15 }
0x183b   :  { %v2730_v17 = vpop.xlane.xlu0 %2729 }
0x183c   :  { %4932 = vrcp.f32 %v2730_v17 }
0x183f   :  { %v2738_v20 = vpop.permute.xlu0 %2737 }
0x1840   :  { %v2743_v21 = vsel %vm517_vm2, %v2738_v20, 0 }
0x1841   :  { %4580 = vmatpush3.bf16.msra.mxu0 %v2743_v21 }
0x1842   :  { %v4931_v23 = vpop.eup %4930  ;;  %4591 = vmatprep.subr.bf16.mxu0 %v4988_v4 }
0x1843   :  { %v2732_v25 = vmul.f32 %v4931_v23, %v4927_v31  ;;  %v2844_v37 = vpop.permute.xlu0 %2843 }
0x1845   :  { %v2735_v26 = vpack.c.bf16 %v2732_v25, %v2732_v25  ;;  %v4794_v25 = vld [vmem:[%s6127_s6 + $0x40] sm:$0xff]  }
0x1846   :  { %v4933_v27 = vpop.eup %4932 }
0x1847   :  { %v2734_v32 = vmul.f32 %v4933_v27, %v4929_v8  ;;  %4582 = vmatmul.mubr.msk.bf16.vlgmr.msra.gmra.mrb[52].mxu0 %vm489_vm3, %v2735_v26  ;;  %v4795_v26 = vld [vmem:[%s6127_s6 + $0x48] sm:$0xff]   ;;  %v4796_v27 = vld [vmem:[%s6127_s6 + $0x50] sm:$0xff]  }
0x1848   :  { %4593 = vmatprep.mubr.msk.bf16.mxu0 %vm4990_vm0, %v4988_v4 }
0x1849   :  { %v2736_v35 = vpack.c.bf16 %v2734_v32, %v2734_v32  ;;  %v4798_v32 = vld [vmem:[%s6127_s6 + $0x60] sm:$0xff]  }
0x184a   :  { %4592 = vmatpush3.bf16.xpose.msra.mxu0 %v2851_v44  ;;  %v4800_v44 = vld [vmem:[%s6127_s6 + $0x70] sm:$0xff]  }
0x184b   :  { %4588 = vmatmul.mubr.msk.bf16.vlgmr.msra.gmra.mrb[80].mxu1 %vm489_vm3, %v2736_v35  ;;  %4603 = vmatprep.subr.bf16.mxu0 %v4988_v4  ;;  %v4801_v35 = vld [vmem:[%s6127_s6 + $0x78] sm:$0xff]  }
0x184c   :  { %4598 = vmatpush3.bf16.xpose.msra.mxu1 %v2901_v36  ;;  %4599 = vmatprep.mubr.msk.bf16.mxu1 %vm4990_vm0, %v4988_v4 }
0x184d   :  { %4609 = vmatprep.subr.bf16.mxu1 %v4988_v4 }
0x1851   :  { %4594 = vmatmul.mubr.msk.bf16.vlgmr.msra.gmra.mrb[56].mxu0 %vm380_vm1, %v2844_v37 }
0x1852   :  { %4605 = vmatprep.mubr.msk.bf16.mxu0 %vm4990_vm0, %v4988_v4 }
0x1853   :  { %4600 = vmatmul.mubr.msk.bf16.vlgmr.msra.gmra.mrb[84].mxu1 %vm380_vm1, %v2894_v38 }
0x1854   :  { %4611 = vmatprep.mubr.msk.bf16.mxu1 %vm4990_vm0, %v4988_v4 }
0x191a   :  { %v2779_v22 = vpop.f32.mrb[52].mxu0 }
0x191b   :  { %v4583_v39 = vpop.f32.mrb[53].mxu0 }
0x191c   :  { %v2782_v40 = vpop.f32.mrb[54].mxu0 }
0x191d   :  { %v4584_v50 = vpop.f32.mrb[55].mxu0 }
0x191e   :  { %v2827_v41 = vpop.f32.mrb[80].mxu1 }
0x191f   :  { %v4589_v11 = vpop.f32.mrb[81].mxu1 }
0x1920   :  { %v2830_v12 = vpop.f32.mrb[82].mxu1 }
0x1921   :  { %v4590_v43 = vpop.f32.mrb[83].mxu1 }
0x1924   :  { %v2887_v54 = vpop.f32.mrb[56].mxu0 }
0x1925   :  { %v2943_v60 = vmul.f32 0.17677669, %v2887_v54  ;;  %v4595_v10 = vpop.f32.mrb[57].mxu0 }
0x1926   :  { %v2890_v16 = vpop.f32.mrb[58].mxu0  ;;  %v2937_v9 = vpop.f32.mrb[84].mxu1  ;;  %v4083_v10 = vld [vmem:[%s6128_s7 + $0x1] ss:$0 sm:$0xff] }
0x1927   :  { %v2944_v13 = vmul.f32 0.17677669, %v2937_v9  ;;  %v4596_v47 = vpop.f32.mrb[59].mxu0  ;;  %v4601_v19 = vpop.f32.mrb[85].mxu1  ;;  %v2945_v48 = vadd.f32 %v5717_v52, %v2943_v60 }
0x1928   :  { %v2940_v49 = vpop.f32.mrb[86].mxu1 }
0x1929   :  { %v4602_v53 = vpop.f32.mrb[87].mxu1  ;;  %v2947_v56 = vsel %vm489_vm3, %v2945_v48, -inf  ;;  %v2946_v58 = vadd.f32 %v5724_v0, %v2944_v13 }
0x192a   :  { %2948 = vmax.xlane.f32.xlu0 %v2947_v56  ;;  %v4802_v56 = vld [vmem:[%s6131_s10 + $0x80] ss:$8 sps:$4 sm:$0xff]  }
0x192b   :  { %v2950_v61 = vsel %vm489_vm3, %v2946_v58, -inf }
0x192c   :  { %2951 = vmax.xlane.f32.xlu1 %v2950_v61  ;;  %v4807_v61 = vld [vmem:[%s6131_s10 + $0x94] ss:$8 sps:$4 sm:$0xff]  }
0x193d   :  { %3019 = vrot.lane.b32.xlu1 %v5742_v33, %s4993_s0 }
0x1941   :  { %2601 = vrot.lane.b32.xlu1 %v5801_v51, %s4993_s0 }
0x1945   :  { %2603 = vrot.lane.b32.xlu1 %v5803_v42, %s4993_s0 }
0x1949   :  { %2837 = vrot.lane.b32.xlu1 %v2827_v41, %s4992_s30 }
0x19b7   :  { %v2949_v52 = vpop.xlane.xlu0 %2948 }
0x19b8   :  { %v2953_v18 = vsub.f32 %v2945_v48, %v2949_v52 }
0x19b9   :  { %v2952_v62 = vpop.xlane.xlu1 %2951 }
0x19ba   :  { %v2955_v63 = vmul.f32 1.442695, %v2953_v18  ;;  %v2954_v0 = vsub.f32 %v2946_v58, %v2952_v62  ;;  %v4804_v58 = vld [vmem:[%s6131_s10 + $0x84] ss:$8 sps:$4 sm:$0xff]  }
0x19bc   :  { %4934 = vpow2.f32 %v2955_v63  ;;  %v2957_v1 = vmul.f32 1.442695, %v2954_v0 }
0x19bd   :  { %v3020_v14 = vpop.permute.xlu1 %3019 }
0x19be   :  { %4936 = vpow2.f32 %v2957_v1  ;;  %v3025_v2 = vsel %vm517_vm2, %v3020_v14, 0 }
0x19bf   :  { %4610 = vmatpush3.bf16.msra.mxu1 %v3025_v2  ;;  %v4810_v2 = vld [vmem:[%s6131_s10 + $0xa4] ss:$8 sps:$4 sm:$0xff]  }
0x19c0   :  { %3349 = vmatprep.subr.bf16.mxu1 %v4804_v58 }
0x19c1   :  { %v2602_v33 = vpop.permute.xlu1 %2601 }
0x19c2   :  { %2607 = vst.msk [vmem:[#allocation2] sm:$0xff] %vm847_vm4, %v2602_v33  ;;  %v4808_v33 = vld [vmem:[%s6131_s10 + $0xa0] ss:$8 sps:$4 sm:$0xff]  }
0x19c5   :  { %v2604_v51 = vpop.permute.xlu1 %2603 }
0x19c6   :  { %v4935_v3 = vpop.eup %4934  ;;  %2608 = vst.msk [vmem:[#allocation2 + $0x8] sm:$0xff] %vm847_vm4, %v2604_v51  ;;  %v4813_v51 = vld [vmem:[%s6131_s10 + $0xb4] ss:$8 sps:$4 sm:$0xff]  }
0x19c7   :  { %v2959_v42 = vsel %vm489_vm3, %v4935_v3, 0.0 }
0x19c8   :  { %v4937_v5 = vpop.eup %4936  ;;  %2960 = vadd.xlane.f32.xlu0 %v2959_v42  ;;  %v4816_v42 = vld [vmem:[%s6131_s10 + $0xc4] ss:$8 sps:$4 sm:$0xff]  }
0x19c9   :  { %v2838_v6 = vpop.permute.xlu1 %2837  ;;  %v2962_v7 = vsel %vm489_vm3, %v4937_v5, 0.0 }
0x19ca   :  { %2842 = vst.msk [vmem:[#allocation2 + $0x8] sm:$0xff] %vm1082_vm5, %v2838_v6  ;;  %v4819_v6 = vld [vmem:[%s6131_s10 + $0xd4] ss:$8 sps:$4 sm:$0xff]  }
0x19cc   :  { %2963 = vadd.xlane.f32.xlu0 %v2962_v7  ;;  %v4817_v7 = vld [vmem:[%s6131_s10 + $0xd0] ss:$8 sps:$4 sm:$0xff]  }
0x19e2   :  { %2971 = vrot.lane.b32.xlu0 %v5703_v45, %s4993_s0 }
0x19e6   :  { %2835 = vrot.lane.b32.xlu0 %v2779_v22, %s4992_s30 }
0x1a55   :  { %v2961_v31 = vpop.xlane.xlu0 %2960 }
0x1a56   :  { %4938 = vrcp.f32 %v2961_v31  ;;  %v4822_v31 = vld [vmem:[%s6131_s10 + $0xe4] ss:$8 sps:$4 sm:$0xff]  }
0x1a59   :  { %v2964_v57 = vpop.xlane.xlu0 %2963 }
0x1a5a   :  { %4940 = vrcp.f32 %v2964_v57  ;;  %v4820_v57 = vld [vmem:[%s6131_s10 + $0xe0] ss:$8 sps:$4 sm:$0xff]  }
0x1a5d   :  { %v2972_v8 = vpop.permute.xlu0 %2971 }
0x1a5e   :  { %v2977_v46 = vsel %vm517_vm2, %v2972_v8, 0  ;;  %v4825_v8 = vld [vmem:[%s6131_s10 + $0xf4] ss:$8 sps:$4 sm:$0xff]  }
0x1a5f   :  { %4604 = vmatpush3.bf16.msra.mxu0 %v2977_v46  ;;  %v4823_v46 = vld [vmem:[%s6131_s10 + $0xf0] ss:$8 sps:$4 sm:$0xff]  }
0x1a60   :  { %v4939_v15 = vpop.eup %4938  ;;  %4615 = vmatprep.subr.bf16.mxu0 %v4988_v4 }
0x1a61   :  { %v2966_v17 = vmul.f32 %v4939_v15, %v4935_v3  ;;  %v2836_v20 = vpop.permute.xlu0 %2835  ;;  %v4811_v3 = vld [vmem:[%s6131_s10 + $0xb0] ss:$8 sps:$4 sm:$0xff]  }
0x1a62   :  { %2841 = vst.msk [vmem:[#allocation2] sm:$0xff] %vm1082_vm5, %v2836_v20 }
0x1a63   :  { %v2969_v21 = vpack.c.bf16 %v2966_v17, %v2966_v17 }
0x1a64   :  { %v4941_v23 = vpop.eup %4940 }
0x1a65   :  { %v2968_v45 = vmul.f32 %v4941_v23, %v4937_v5  ;;  %4606 = vmatmul.mubr.msk.bf16.vlgmr.msra.gmra.mrb[60].mxu0 %vm489_vm3, %v2969_v21  ;;  %v4814_v5 = vld [vmem:[%s6131_s10 + $0xc0] ss:$8 sps:$4 sm:$0xff]  }
0x1a66   :  { %4631 = vmatprep.mubr.msk.bf16.mxu0 %vm4990_vm0, %v4988_v4  ;;  %4616 = vmatpush3.bf16.msra.mxu0 %v4794_v25 }
0x1a67   :  { %v2970_v24 = vpack.c.bf16 %v2968_v45, %v2968_v45  ;;  %4617 = vmatprep.subr.bf16.mxu0 %v4988_v4 }
0x1a69   :  { %4612 = vmatmul.mubr.msk.bf16.vlgmr.msra.gmra.mrb[88].mxu1 %vm489_vm3, %v2970_v24 }
0x1a6a   :  { %3381 = vmatprep.mubr.bf16.mxu1 %v4989_v30  ;;  %4618 = vmatpush3.bf16.msra.mxu0 %v4795_v26  ;;  %v4797_v30 = vld [vmem:[%s6127_s6 + $0x58] sm:$0xff]   ;;  %v4094_v26 = vld [vmem:[%s6129_s8 + $0x1] ss:$0 sm:$0xff] }
0x1a6b   :  { %4619 = vmatprep.subr.bf16.mxu0 %v4988_v4  ;;  %3350 = vmatpush1.bf16.msra.mxu1 %v4802_v56 }
0x1a6c   :  { %3351 = vmatprep.subr.bf16.mxu1 %v4807_v61 }
0x1a6e   :  { %4620 = vmatpush3.bf16.msra.mxu0 %v4796_v27 }
0x1a6f   :  { %4621 = vmatprep.subr.bf16.mxu0 %v4988_v4 }
0x1a72   :  { %4622 = vmatpush3.bf16.msra.mxu0 %v4797_v30 }
0x1a73   :  { %4623 = vmatprep.subr.bf16.mxu0 %v4988_v4 }
0x1a76   :  { %4624 = vmatpush3.bf16.msra.mxu0 %v4798_v32 }
0x1a77   :  { %4625 = vmatprep.subr.bf16.mxu0 %v4988_v4 }
0x1a7a   :  { %4626 = vmatpush3.bf16.msra.mxu0 %v4799_v34  ;;  %v4095_v34 = vld [vmem:[%s6130_s9 + $0x1] ss:$0 sm:$0xff] }
0x1a7b   :  { %4627 = vmatprep.subr.bf16.mxu0 %v4988_v4 }
0x1a7e   :  { %4628 = vmatpush3.bf16.msra.mxu0 %v4800_v44 }
0x1a7f   :  { %4629 = vmatprep.subr.bf16.mxu0 %v4988_v4 }
0x1a82   :  { %4630 = vmatpush3.bf16.msra.mxu0 %v4801_v35 }
0x1b38   :  { %v3013_v36 = vpop.f32.mrb[60].mxu0 }
0x1b39   :  { %3069 = vrot.lane.b32.xlu0 %v3013_v36, %s4991_s29  ;;  %v4607_v37 = vpop.f32.mrb[61].mxu0 }
0x1b3a   :  { %v3016_v38 = vpop.f32.mrb[62].mxu0 }
0x1b3b   :  { %v4608_v22 = vpop.f32.mrb[63].mxu0  ;;  %v4826_v38 = vld [vmem:[%s6133_s12 + $0xc0] sm:$0xff]  }
0x1b3c   :  { %v3061_v39 = vpop.f32.mrb[88].mxu1  ;;  %v4827_v22 = vld [vmem:[%s6133_s12 + $0x80] sm:$0xff]   ;;  %4323 = vmatprep.subr.bf16.mxu0 %v4826_v38 }
0x1b3d   :  { %3071 = vrot.lane.b32.xlu1 %v3061_v39, %s4991_s29  ;;  %v4613_v40 = vpop.f32.mrb[89].mxu1  ;;  %v4828_v39 = vld [vmem:[%s6133_s12 + $0xc8] sm:$0xff]  }
0x1b3e   :  { %v3064_v50 = vpop.f32.mrb[90].mxu1  ;;  %v4829_v40 = vld [vmem:[%s6133_s12 + $0x88] sm:$0xff]  }
0x1b3f   :  { %v4614_v41 = vpop.f32.mrb[91].mxu1  ;;  %v4830_v50 = vld [vmem:[%s6133_s12 + $0xd0] sm:$0xff]  }
0x1b40   :  { %v4831_v41 = vld [vmem:[%s6133_s12 + $0x90] sm:$0xff]  }
0x1bab   :  { %v3070_v11 = vpop.permute.xlu0 %3069 }
0x1bac   :  { %3075 = vst.msk [vmem:[#allocation2] sm:$0xff] %vm1317_vm6, %v3070_v11  ;;  %v4832_v11 = vld [vmem:[%s6133_s12 + $0xd8] sm:$0xff]  }
0x1baf   :  { %v3072_v12 = vpop.permute.xlu1 %3071 }
0x1bb0   :  { %3076 = vst.msk [vmem:[#allocation2 + $0x8] sm:$0xff] %vm1317_vm6, %v3072_v12  ;;  %v4833_v12 = vld [vmem:[%s6133_s12 + $0x98] sm:$0xff]  }
0x1bb3   :  { %v3077_v43 = vld [vmem:[#allocation2] sm:$0xff] }
0x1bb7   :  { %v3078_v54 = vld [vmem:[#allocation2 + $0x8] sm:$0xff] }
0x1bb8   :  { %v3098_v60 = vpack.c.bf16 %v3078_v54, %v3077_v43  ;;  %v4834_v43 = vld [vmem:[%s6133_s12 + $0xe0] sm:$0xff]  }
0x1bb9   :  { %v4835_v54 = vld [vmem:[%s6133_s12 + $0xa0] sm:$0xff]  }
0x1bba   :  { %4632 = vmatmul.mubr.bf16.vlgmr.msra.gmra.mrb[64].mxu0 %v3098_v60  ;;  %v4836_v60 = vld [vmem:[%s6133_s12 + $0xe8] sm:$0xff]  }
0x1bbb   :  { %4324 = vmatpush3.bf16.msra.mxu0 %v4827_v22 }
0x1bbc   :  { %4325 = vmatprep.subr.bf16.mxu0 %v4828_v39 }
0x1bbf   :  { %4326 = vmatpush3.bf16.msra.mxu0 %v4829_v40 }
0x1bc0   :  { %4327 = vmatprep.subr.bf16.mxu0 %v4830_v50 }
0x1bc3   :  { %4328 = vmatpush3.bf16.msra.mxu0 %v4831_v41  ;;  %v4162_v41 = vld [vmem:[%s6134_s13 + $0x1] ss:$0 sm:$0xff] }
0x1bc4   :  { %4329 = vmatprep.subr.bf16.mxu0 %v4832_v11 }
0x1bc7   :  { %4330 = vmatpush3.bf16.msra.mxu0 %v4833_v12 }
0x1bc8   :  { %4331 = vmatprep.subr.bf16.mxu0 %v4834_v43 }
0x1bcb   :  { %4332 = vmatpush3.bf16.msra.mxu0 %v4835_v54 }
0x1bcc   :  { %4333 = vmatprep.subr.bf16.mxu0 %v4836_v60 }
0x1c8d   :  { %v3187_v16 = vpop.f32.mrb[64].mxu0 }
0x1c8e   :  { %v3188_v9 = vadd.f32 %v4083_v10, %v3187_v16  ;;  %v4633_v13 = vpop.f32.mrb[65].mxu0  ;;  %v4838_v16 = vld [vmem:[%s6133_s12 + $0xf0] sm:$0xff]  }
0x1c8f   :  { %v3190_v47 = vpop.f32.mrb[66].mxu0  ;;  %v4840_v13 = vld [vmem:[%s6133_s12 + $0xf8] sm:$0xff]  }
0x1c90   :  { %v3191_v19 = vadd.f32 %v4083_v10, %v3190_v47  ;;  %v4634_v48 = vpop.f32.mrb[67].mxu0  ;;  %v3194_v49 = vadd.f32 %v3188_v9, %v5668_v28  ;;  %v4805_v28 = vld [vmem:[%s6131_s10 + $0x90] ss:$8 sps:$4 sm:$0xff]   ;;  %v4837_v10 = vld [vmem:[%s6133_s12 + $0xa8] sm:$0xff]  }
0x1c91   :  { %3352 = vmatpush1.bf16.msra.mxu1 %v4805_v28  ;;  %4334 = vmatpush3.bf16.msra.mxu0 %v4837_v10  ;;  %v4839_v9 = vld [vmem:[%s6133_s12 + $0xb0] sm:$0xff]   ;;  %v4841_v47 = vld [vmem:[%s6133_s12 + $0xb8] sm:$0xff]  }
0x1c92   :  { %3200 = vadd.xlane.f32.xlu0 %v3194_v49  ;;  %v3195_v53 = vadd.f32 %v3191_v19, %v5670_v29  ;;  %3353 = vmatprep.subr.bf16.mxu1 %v4810_v2  ;;  %v4112_v19 = vld [vmem:[%s6132_s11 + $0x2] sm:$0x3] }
0x1c93   :  { %4335 = vmatprep.subr.bf16.mxu0 %v4838_v16  ;;  %v3262_v48 = vrot.slane %v4112_v19, %v5228_v59 }
0x1c94   :  { %3202 = vadd.xlane.f32.xlu1 %v3195_v53 }
0x1c95   :  { %3354 = vmatpush1.bf16.msra.mxu1 %v4808_v33  ;;  %4336 = vmatpush3.bf16.msra.mxu0 %v4839_v9 }
0x1c96   :  { %3355 = vmatprep.subr.bf16.mxu1 %v4813_v51  ;;  %4337 = vmatprep.subr.bf16.mxu0 %v4840_v13 }
0x1c99   :  { %3356 = vmatpush1.bf16.msra.mxu1 %v4811_v3  ;;  %4338 = vmatpush3.bf16.msra.mxu0 %v4841_v47 }
0x1c9a   :  { %3357 = vmatprep.subr.bf16.mxu1 %v4816_v42  ;;  %4655 = vmatprep.subr.bf16.mxu0 %v4988_v4 }
0x1c9d   :  { %3358 = vmatpush1.bf16.msra.mxu1 %v4814_v5 }
0x1c9e   :  { %3359 = vmatprep.subr.bf16.mxu1 %v4819_v6 }
0x1ca1   :  { %3360 = vmatpush1.bf16.msra.mxu1 %v4817_v7 }
0x1ca2   :  { %3361 = vmatprep.subr.bf16.mxu1 %v4822_v31 }
0x1ca5   :  { %3362 = vmatpush1.bf16.msra.mxu1 %v4820_v57 }
0x1ca6   :  { %3363 = vmatprep.subr.bf16.mxu1 %v4825_v8 }
0x1ca9   :  { %3364 = vmatpush1.bf16.msra.mxu1 %v4823_v46 }
0x1caa   :  { %4635 = vmatprep.subr.bf16.mxu1 %v4988_v4 }
0x1d1f   :  { %v3201_v29 = vpop.xlane.xlu0 %3200 }
0x1d20   :  { %v3204_v52 = vmul.f32 0.0078125, %v3201_v29 }
0x1d21   :  { %v3203_v18 = vpop.xlane.xlu1 %3202 }
0x1d22   :  { %v3206_v62 = vsub.f32 %v3194_v49, %v3204_v52  ;;  %v3205_v63 = vmul.f32 0.0078125, %v3203_v18  ;;  %v3266_v49 = vrot.slane %v4112_v19, %v5220_v55 }
0x1d24   :  { %v3207_v0 = vsub.f32 %v3195_v53, %v3205_v63  ;;  %v3208_v1 = vmul.f32 %v3206_v62, %v3206_v62 }
0x1d26   :  { %3210 = vadd.xlane.f32.xlu0 %v3208_v1  ;;  %v3209_v14 = vmul.f32 %v3207_v0, %v3207_v0 }
0x1d2a   :  { %3212 = vadd.xlane.f32.xlu0 %v3209_v14 }
0x1db3   :  { %v3211_v15 = vpop.xlane.xlu0 %3210 }
0x1db4   :  { %v3214_v17 = vmul.f32 0.0078125, %v3211_v15 }
0x1db6   :  { %v3216_v20 = vadd.f32 1e-12, %v3214_v17 }
0x1db7   :  { %v3213_v21 = vpop.xlane.xlu0 %3212 }
0x1db8   :  { %4942 = vrsqrt.f32 %v3216_v20  ;;  %v3215_v23 = vmul.f32 0.0078125, %v3213_v21 }
0x1dba   :  { %v3217_v45 = vadd.f32 1e-12, %v3215_v23 }
0x1dbc   :  { %4944 = vrsqrt.f32 %v3217_v45 }
0x1dc2   :  { %v4943_v24 = vpop.eup %4942 }
0x1dc3   :  { %v3220_v25 = vmul.f32 %v4943_v24, %v3206_v62 }
0x1dc5   :  { %v3228_v32 = vmul.f32 %v4094_v26, %v3220_v25 }
0x1dc6   :  { %v4945_v27 = vpop.eup %4944 }
0x1dc7   :  { %v3221_v30 = vmul.f32 %v4945_v27, %v3207_v0  ;;  %v5966_v35 = vadd.f32 %v4095_v34, %v3228_v32 }
0x1dc9   :  { %v3229_v44 = vmul.f32 %v4094_v26, %v3221_v30 }
0x1dcb   :  { %v5968_v36 = vadd.f32 %v4095_v34, %v3229_v44 }
0x1dcd   :  { %v3257_v37 = vpack.c.bf16 %v5968_v36, %v5966_v35 }
0x1dcf   :  { %3382 = vmatmul.mubr.bf16.vlgmr.msra.gmra.mrb[92].mxu1 %v3257_v37 }
0x1dd0   :  { %4651 = vmatprep.mubr.msk.bf16.mxu1 %vm4990_vm0, %v4988_v4 }
0x1ea2   :  { %v3383_v53 = vpop.f32.mrb[92].mxu1 }
0x1ea3   :  { %v3384_v56 = vadd.f32 %v3383_v53, %v3262_v48  ;;  %v3385_v58 = vpop.f32.mrb[93].mxu1 }
0x1ea4   :  { %v3386_v61 = vadd.f32 %v3385_v58, %v3266_v49  ;;  %v3387_v28 = vpop.f32.mrb[94].mxu1 }
0x1ea5   :  { %v3392_v29 = vmul.f32 %v3384_v56, %v3384_v56  ;;  %v3388_v52 = vadd.f32 %v3387_v28, %v3262_v48  ;;  %v3389_v18 = vpop.f32.mrb[95].mxu1  ;;  %v4842_v28 = vld [vmem:[%s6137_s16] sm:$0xff]  }
0x1ea6   :  { %v3393_v62 = vmul.f32 %v3386_v61, %v3386_v61  ;;  %v3390_v63 = vadd.f32 %v3389_v18, %v3266_v49  ;;  %4636 = vmatpush3.bf16.msra.mxu1 %v4842_v28  ;;  %v4847_v18 = vld [vmem:[%s6137_s16 + $0x28] sm:$0xff]  }
0x1ea7   :  { %v3396_v0 = vmul.f32 %v3392_v29, %v3384_v56  ;;  %v3394_v1 = vmul.f32 %v3388_v52, %v3388_v52  ;;  %4637 = vmatprep.subr.bf16.mxu1 %v4988_v4  ;;  %v4845_v29 = vld [vmem:[%s6137_s16 + $0x18] sm:$0xff]  }
0x1ea8   :  { %v3397_v14 = vmul.f32 %v3393_v62, %v3386_v61  ;;  %v3395_v2 = vmul.f32 %v3390_v63, %v3390_v63  ;;  %v4848_v62 = vld [vmem:[%s6137_s16 + $0x30] sm:$0xff]  }
0x1ea9   :  { %v3400_v33 = vmul.f32 0.044715, %v3396_v0  ;;  %v3398_v51 = vmul.f32 %v3394_v1, %v3388_v52  ;;  %v4850_v0 = vld [vmem:[%s6139_s18] sm:$0xff]   ;;  %v4851_v1 = vld [vmem:[%s6139_s18 + $0x8] sm:$0xff]  }
0x1eaa   :  { %v3401_v3 = vmul.f32 0.044715, %v3397_v14  ;;  %v3399_v59 = vmul.f32 %v3395_v2, %v3390_v63  ;;  %v4852_v14 = vld [vmem:[%s6139_s18 + $0x10] sm:$0xff]   ;;  %v4853_v2 = vld [vmem:[%s6139_s18 + $0x18] sm:$0xff]  }
0x1eab   :  { %v3404_v42 = vadd.f32 %v3400_v33, %v3384_v56  ;;  %v3402_v55 = vmul.f32 0.044715, %v3398_v51 }
0x1eac   :  { %v3405_v5 = vadd.f32 %v3401_v3, %v3386_v61  ;;  %v3403_v6 = vmul.f32 0.044715, %v3399_v59 }
0x1ead   :  { %v3408_v7 = vmul.f32 0.7978846, %v3404_v42  ;;  %v3406_v31 = vadd.f32 %v3402_v55, %v3388_v52 }
0x1eae   :  { %v3409_v57 = vmul.f32 0.7978846, %v3405_v5  ;;  %v3407_v8 = vadd.f32 %v3403_v6, %v3390_v63  ;;  %v4181_v6 = vld [vmem:[%s6135_s14 + $0x1] ss:$0 sm:$0xff] }
0x1eaf   :  { %4946 = vtanh.f32 %v3408_v7  ;;  %v3410_v46 = vmul.f32 0.7978846, %v3406_v31 }
0x1eb0   :  { %4948 = vtanh.f32 %v3409_v57  ;;  %v3411_v15 = vmul.f32 0.7978846, %v3407_v8  ;;  %v4182_v57 = vld [vmem:[%s6136_s15 + $0x1] ss:$0 sm:$0xff] }
0x1eb1   :  { %4950 = vtanh.f32 %v3410_v46 }
0x1eb2   :  { %4952 = vtanh.f32 %v3411_v15 }
0x1eb9   :  { %v4947_v17 = vpop.eup %4946 }
0x1eba   :  { %v4949_v20 = vpop.eup %4948  ;;  %v3416_v21 = vadd.f32 1.0, %v4947_v17 }
0x1ebb   :  { %v4951_v23 = vpop.eup %4950  ;;  %v3417_v45 = vadd.f32 1.0, %v4949_v20 }
0x1ebc   :  { %v4953_v24 = vpop.eup %4952  ;;  %v3420_v25 = vmul.f32 0.5, %v3416_v21  ;;  %v3418_v26 = vadd.f32 1.0, %v4951_v23 }
0x1ebd   :  { %v3419_v27 = vadd.f32 1.0, %v4953_v24  ;;  %v3421_v30 = vmul.f32 0.5, %v3417_v45 }
0x1ebe   :  { %v3422_v32 = vmul.f32 0.5, %v3418_v26  ;;  %v3424_v44 = vmul.f32 %v3420_v25, %v3384_v56 }
0x1ebf   :  { %v3423_v34 = vmul.f32 0.5, %v3419_v27  ;;  %v3425_v38 = vmul.f32 %v3421_v30, %v3386_v61  ;;  %v4854_v30 = vld [vmem:[%s6139_s18 + $0x20] sm:$0xff]  }
0x1ec0   :  { %v3426_v37 = vmul.f32 %v3422_v32, %v3388_v52  ;;  %v4846_v52 = vld [vmem:[%s6137_s16 + $0x20] sm:$0xff]   ;;  %v4855_v32 = vld [vmem:[%s6139_s18 + $0x28] sm:$0xff]  }
0x1ec1   :  { %v3427_v22 = vmul.f32 %v3423_v34, %v3390_v63  ;;  %v4849_v63 = vld [vmem:[%s6137_s16 + $0x38] sm:$0xff]   ;;  %v4856_v34 = vld [vmem:[%s6139_s18 + $0x30] sm:$0xff]  }
0x1ec2   :  { %v3463_v39 = vpack.c.bf16 %v3426_v37, %v3424_v44  ;;  %v4857_v44 = vld [vmem:[%s6139_s18 + $0x38] sm:$0xff]   ;;  %v4183_v37 = vld [vmem:[%s6138_s17] ss:$0 sm:$0xff]  ;;  %s4994_s17 = smov [#allocation3]  }
0x1ec3   :  { %v3464_v40 = vpack.c.bf16 %v3427_v22, %v3425_v38  ;;  %s3895_s18 = sshll.u32 %s4994_s17, 4  ;;  %s3896_s18 = int_to_ptr.vmem [resolvable:$true] %s3895_s18 }
0x1ec4   :  { %s4964_s9 = scalar_lea.vmem %s3896_s18, 32  ;;  %p4969_p1 = scmp.lt.s32.totalorder %s3896_s18, %s3896_s18 }
0x1ec5   :  { %3599 = vmatprep.mubr.bf16.mxu0 %v3464_v40  ;;  %p4965_p0 = scmp.ne.s32.totalorder %s3896_s18, %s4964_s9  ;;  %p4970_p2 = scmp.lt.s32.totalorder %s4964_s9, %s4964_s9 }
0x1ec6   :  { %3600 = vmatmul.mubr.bf16.vlgmr.msra.gmra.mrb[68].mxu0 %v3463_v39 }
0x1ec7   :  { %4671 = vmatprep.mubr.msk.bf16.mxu0 %vm4990_vm0, %v4988_v4  ;;  %4656 = vmatpush3.bf16.msra.mxu0 %v4850_v0  ;;  %p4971_p3 = por %p4970_p2, %p4969_p1 }
0x1ec8   :  { %4657 = vmatprep.subr.bf16.mxu0 %v4988_v4 }
0x1ec9   :  { %p4972_p4 = pnand %p4971_p3, %p4965_p0 }
0x1ecb   :  { %4658 = vmatpush3.bf16.msra.mxu0 %v4851_v1 }
0x1ecc   :  { %4659 = vmatprep.subr.bf16.mxu0 %v4988_v4 }
0x1ecf   :  { %4660 = vmatpush3.bf16.msra.mxu0 %v4852_v14 }
0x1ed0   :  { %4661 = vmatprep.subr.bf16.mxu0 %v4988_v4 }
0x1ed3   :  { %4662 = vmatpush3.bf16.msra.mxu0 %v4853_v2 }
0x1ed4   :  { %4663 = vmatprep.subr.bf16.mxu0 %v4988_v4 }
0x1ed7   :  { %4664 = vmatpush3.bf16.msra.mxu0 %v4854_v30 }
0x1ed8   :  { %4665 = vmatprep.subr.bf16.mxu0 %v4988_v4 }
0x1edb   :  { %4666 = vmatpush3.bf16.msra.mxu0 %v4855_v32 }
0x1edc   :  { %4667 = vmatprep.subr.bf16.mxu0 %v4988_v4 }
0x1edf   :  { %4668 = vmatpush3.bf16.msra.mxu0 %v4856_v34 }
0x1ee0   :  { %4669 = vmatprep.subr.bf16.mxu0 %v4988_v4 }
0x1ee3   :  { %4670 = vmatpush3.bf16.msra.mxu0 %v4857_v44 }
0x1f99   :  { %v4339_v50 = vpop.f32.mrb[68].mxu0 }
0x1f9a   :  { %v4340_v11 = vpop.f32.mrb[69].mxu0 }
0x1f9b   :  { %v4341_v12 = vadd.f32 %v4340_v11, %v4339_v50  ;;  %v4342_v43 = vpop.f32.mrb[70].mxu0 }
0x1f9c   :  { %v4343_v54 = vpop.f32.mrb[71].mxu0 }
0x1f9d   :  { %v3602_v60 = vadd.f32 %v4341_v12, %v4162_v41  ;;  %v4344_v10 = vadd.f32 %v4343_v54, %v4342_v43 }
0x1f9f   :  { %v3605_v16 = vadd.f32 %v4344_v10, %v4162_v41  ;;  %v3608_v9 = vadd.f32 %v3602_v60, %v5966_v35  ;;  %v4843_v35 = vld [vmem:[%s6137_s16 + $0x8] sm:$0xff]  }
0x1fa0   :  { %4638 = vmatpush3.bf16.msra.mxu1 %v4843_v35 }
0x1fa1   :  { %3614 = vadd.xlane.f32.xlu1 %v3608_v9  ;;  %v3609_v13 = vadd.f32 %v3605_v16, %v5968_v36  ;;  %4639 = vmatprep.subr.bf16.mxu1 %v4988_v4  ;;  %v4844_v36 = vld [vmem:[%s6137_s16 + $0x10] sm:$0xff]  }
0x1fa3   :  { %3616 = vadd.xlane.f32.xlu0 %v3609_v13 }
0x1fa4   :  { %4640 = vmatpush3.bf16.msra.mxu1 %v4844_v36 }
0x1fa5   :  { %4641 = vmatprep.subr.bf16.mxu1 %v4988_v4 }
0x1fa8   :  { %4642 = vmatpush3.bf16.msra.mxu1 %v4845_v29 }
0x1fa9   :  { %4643 = vmatprep.subr.bf16.mxu1 %v4988_v4 }
0x1fac   :  { %4644 = vmatpush3.bf16.msra.mxu1 %v4846_v52 }
0x1fad   :  { %4645 = vmatprep.subr.bf16.mxu1 %v4988_v4 }
0x1fb0   :  { %4646 = vmatpush3.bf16.msra.mxu1 %v4847_v18 }
0x1fb1   :  { %4647 = vmatprep.subr.bf16.mxu1 %v4988_v4 }
0x1fb4   :  { %4648 = vmatpush3.bf16.msra.mxu1 %v4848_v62 }
0x1fb5   :  { %4649 = vmatprep.subr.bf16.mxu1 %v4988_v4  ;;  %v4192_v4 = vld [vmem:[%s6140_s19] ss:$0 sm:$0xff] }
0x1fb8   :  { %4650 = vmatpush3.bf16.msra.mxu1 %v4849_v63 }
0x202e   :  { %v3615_v47 = vpop.xlane.xlu1 %3614 }
0x202f   :  { %v3618_v19 = vmul.f32 0.0078125, %v3615_v47 }
0x2030   :  { %v3617_v48 = vpop.xlane.xlu0 %3616 }
0x2031   :  { %v3620_v49 = vsub.f32 %v3608_v9, %v3618_v19  ;;  %v3619_v53 = vmul.f32 0.0078125, %v3617_v48 }
0x2033   :  { %v3621_v56 = vsub.f32 %v3609_v13, %v3619_v53  ;;  %v3622_v58 = vmul.f32 %v3620_v49, %v3620_v49 }
0x2035   :  { %3624 = vadd.xlane.f32.xlu1 %v3622_v58  ;;  %v3623_v61 = vmul.f32 %v3621_v56, %v3621_v56 }
0x2037   :  { %3626 = vadd.xlane.f32.xlu0 %v3623_v61 }
0x20c2   :  { %v3625_v33 = vpop.xlane.xlu1 %3624 }
0x20c3   :  { %v3628_v51 = vmul.f32 0.0078125, %v3625_v33 }
0x20c4   :  { %v3627_v3 = vpop.xlane.xlu0 %3626 }
0x20c5   :  { %v3630_v59 = vadd.f32 1e-12, %v3628_v51  ;;  %v3629_v42 = vmul.f32 0.0078125, %v3627_v3 }
0x20c7   :  { %4954 = vrsqrt.f32 %v3630_v59  ;;  %v3631_v55 = vadd.f32 1e-12, %v3629_v42 }
0x20c9   :  { %4956 = vrsqrt.f32 %v3631_v55 }
0x20d1   :  { %v4955_v5 = vpop.eup %4954 }
0x20d2   :  { %v3634_v7 = vmul.f32 %v4955_v5, %v3620_v49 }
0x20d3   :  { %v4957_v31 = vpop.eup %4956 }
0x20d4   :  { %v3642_v8 = vmul.f32 %v4181_v6, %v3634_v7  ;;  %v3635_v46 = vmul.f32 %v4957_v31, %v3621_v56 }
0x20d6   :  { %v3643_v15 = vmul.f32 %v4181_v6, %v3635_v46  ;;  %v3650_v17 = vadd.f32 %v4182_v57, %v3642_v8 }
0x20d8   :  { %v3651_v20 = vadd.f32 %v4182_v57, %v3643_v15  ;;  %v3669_v21 = vpack.c.bf16 %v3650_v17, %v3650_v17 }
0x20da   :  { %v3670_v23 = vpack.c.bf16 %v3651_v20, %v3651_v20  ;;  %v3679_v24 = vunpack.c.l.b16 %v3669_v21 }
0x20dc   :  { %v3680_v45 = vunpack.c.l.b16 %v3670_v23 }
0x20de   :  { %v3681_v25 = vrot.slane %v3680_v45, 7 }
0x20e0   :  { %v3683_v26 = vsel %vm3682_vm7, %v3681_v25, %v3679_v24 }
0x20e1   :  { %v3684_v27 = vpack.c.b16 %v3683_v26, %v3683_v26 }
0x20e3   :  { %4652 = vmatmul.mubr.bf16.vlgmr.msra.gmra.mrb[96].mxu1 %v3684_v27 }
0x21b6   :  { %v3768_v38 = vpop.f32.mrb[96].mxu1 }
0x21b7   :  { %v3769_v22 = vadd.f32 %v4183_v37, %v3768_v38  ;;  %v4653_v39 = vpop.f32.mrb[97].mxu1 }
0x21b8   :  { %v3771_v40 = vpop.f32.mrb[98].mxu1 }
0x21b9   :  { %4958 = vtanh.f32 %v3769_v22  ;;  %v4654_v50 = vpop.f32.mrb[99].mxu1 }
0x21c3   :  { %v4959_v41 = vpop.eup %4958 }
0x21c4   :  { %v3792_v11 = vpack.c.bf16 %v4959_v41, %v4959_v41 }
0x21c6   :  { %4672 = vmatmul.mubr.bf16.vlgmr.msra.gmra.mrb[72].mxu0 %v3792_v11 }
0x2299   :  { %v3881_v12 = vpop.f32.mrb[72].mxu0 }
0x229a   :  { %v3882_v43 = vadd.f32 %v4192_v4, %v3881_v12  ;;  %v4673_v54 = vpop.f32.mrb[73].mxu0 }
0x229b   :  { %v3884_v60 = vpop.f32.mrb[74].mxu0 }
0x229c   :  { %4960 = vtanh.f32 %v3882_v43  ;;  %v4674_v10 = vpop.f32.mrb[75].mxu0 }
0x22a6   :  { %v4961_v16 = vpop.eup %4960 }
0x22a7   :  { %3888 = vst [vmem:[#allocation3] sm:$0x3] %v4961_v16 }
0x22a8   :  { %4975 = shalt.err (!%p4972_p4)
}
0x22a9   :  { %s4976_s3 = scalar_lea.hbm %s6141_s20, 32 }
0x22aa   :  { %p4977_p5 = scmp.ne.s32.totalorder %s6141_s20, %s4976_s3  ;;  %p4980_p6 = scmp.lt.u32.totalorder %s4976_s3, %s6141_s20 }
0x22ac   :  { %p4982_p7 = pnand %p4980_p6, %p4977_p5 }
0x22ae   :  { %4985 = shalt.err (!%p4982_p7)
}
0x22af   :  { %3898 = dma.vmem_to_hbm [thread:$0]  %s3896_s18, 32, %s6141_s20, [#allocation4]  }
0x22b0   :  { %4986 = dma.done.wait [#allocation4], 32  }
0x22b1   :  { %4987 = vsyncadd [#allocation4], 4294967264 }
0x22b2   :  { %3902 = vsyncpa [#allocation4], 1 }

</bundles_post_ra>
